<compile_context>
chip_gen: v7x
topology: tpu7x:2x2x1
jax: 0.10.0
libtpu: 0.0.40
codegen_flags: <defaults>
</compile_context>

<pallas_src>
import jax
import jax.numpy as jnp
from jax.experimental import pallas as pl
from jax.experimental.pallas import tpu as pltpu

# Model constants (from the PyTorch module)
H = 128         # LSTM hidden size
CIN = 5
L_IN = 103
K1, S1 = 16, 3
T1 = (L_IN - K1) // S1 + 1          # 30 conv1 positions
P1 = T1 // 2                        # 15 after pool1
K2 = 6
T2 = P1 - K2 + 1                    # 10 conv2 positions
P2 = T2 // 2                        # 5 after pool2 == LSTM seq len
XFLAT = L_IN * CIN                  # 515
XPAD = 640                          # >= 30*(P1-1) + 128 = 548, multiple of 128
KC1 = K1 * CIN                      # 80  (conv1 contraction length)
SW = 2 * S1 * CIN                   # 30  (flat-lane stride between pooled conv1 windows)

_PARAM_ORDER = ('w1', 'b1', 'w2', 'b2', 'wih', 'whhf', 'whhr',
                'bgf', 'bgr', 'fcw', 'fcb')


def _round_up(x, m):
    return (x + m - 1) // m * m


def _const_spec(a):
    # Whole-array block, same block index every grid step (no re-DMA across steps).
    return pl.BlockSpec(a.shape, lambda i: (0,) * a.ndim)


# ----------------------------- fused Pallas kernel --------------------------

def fused_kernel(x_ref, w1_ref, b1_ref, w2_ref, b2_ref, wih_ref,
                 whhf_ref, whhr_ref, bgf_ref, bgr_ref,
                 fcw_ref, fcb_ref, out_ref,
                 p1_scr, p2_scr, xs_scr, feat_scr):
    TB = x_ref.shape[0]
    f32 = jnp.float32
    bf16 = jnp.bfloat16

    xb = x_ref[...]                                            # (TB, 640) bf16

    # ---- conv1 (Cin=5,K=16,s=3) + ReLU + MaxPool(2,2): one matmul ----------
    # One 128-lane window per pooled position p covers BOTH conv positions
    # 2p (weight rows 0..79, cols 0:64) and 2p+1 (weight rows 15..94, cols
    # 64:128); rows 95..127 of the weight are zero so trailing lanes vanish.
    for p_ in range(P1):                                       # 15 aligned stores
        p1_scr[p_ * TB:(p_ + 1) * TB, :] = xb[:, SW * p_: SW * p_ + 128]
    y1 = jnp.dot(p1_scr[...], w1_ref[...],
                 preferred_element_type=f32)                   # (15*TB, 128)
    y1 = jnp.maximum(y1 + b1_ref[...], 0.0)
    # maxpool(relu(conv)) over window 2 == max(relu(even half), relu(odd half))
    a1 = jnp.maximum(y1[:, 0:64], y1[:, 64:128]).astype(bf16)  # (15*TB, 64) pos-major

    # ---- conv2 (Cin=64,K=6,s=1) + ReLU + MaxPool(2,2): one matmul ----------
    # im2col as K2=6 big contiguous slab copies (natural conv2 position order).
    for k in range(K2):
        p2_scr[:, 64 * k: 64 * (k + 1)] = a1[k * TB:(k + T2) * TB, :]
    y2 = jnp.dot(p2_scr[...], w2_ref[...],
                 preferred_element_type=f32)                   # (10*TB, 128)
    y2 = jnp.maximum(y2 + b2_ref[...], 0.0)
    # pool2: sequence step s = max(position 2s, position 2s+1) -> bf16 scratch
    for s in range(P2):
        xs_scr[s * TB:(s + 1) * TB, :] = jnp.maximum(
            y2[(2 * s) * TB:(2 * s + 1) * TB, :],
            y2[(2 * s + 1) * TB:(2 * s + 2) * TB, :]).astype(bf16)

    # ---- BiLSTM: all input projections (both dirs, all t) in ONE matmul ----
    g_in = jnp.dot(xs_scr[...], wih_ref[...],
                   preferred_element_type=f32)                 # (5*TB, 1024)
    whh_f = whhf_ref[...]
    whh_r = whhr_ref[...]
    bg_f = bgf_ref[...]
    bg_r = bgr_ref[...]

    def cell(g_pre, hb, c, whh, bg):
        g = g_pre + jnp.dot(hb, whh, preferred_element_type=f32) + bg
        i = jax.nn.sigmoid(g[:, 0:H])
        f = jax.nn.sigmoid(g[:, H:2 * H])
        gg = jnp.tanh(g[:, 2 * H:3 * H])
        o = jax.nn.sigmoid(g[:, 3 * H:4 * H])
        c_new = f * c + i * gg
        h_new = o * jnp.tanh(c_new)
        return h_new.astype(bf16), c_new          # h carried in bf16, c in f32

    h_f = jnp.zeros((TB, H), bf16)
    h_r = jnp.zeros((TB, H), bf16)
    c_f = jnp.zeros((TB, H), f32)
    c_r = jnp.zeros((TB, H), f32)
    for s in range(P2):                            # T=5, fully unrolled
        tf, tr = s, P2 - 1 - s
        h_f, c_f = cell(g_in[tf * TB:(tf + 1) * TB, 0:4 * H], h_f, c_f, whh_f, bg_f)
        feat_scr[:, 2 * H * tf: 2 * H * tf + H] = h_f
        h_r, c_r = cell(g_in[tr * TB:(tr + 1) * TB, 4 * H:8 * H], h_r, c_r, whh_r, bg_r)
        feat_scr[:, 2 * H * tr + H: 2 * H * tr + 2 * H] = h_r

    # ---- FC: single deferred K=1280 matmul, lane-dense (TB,128) store ------
    out_ref[...] = jnp.dot(feat_scr[...], fcw_ref[...],
                           preferred_element_type=f32) + fcb_ref[...]


# ----------------------------- wrapper / weight prep ------------------------

def prepare_params(p):
    """One-time weight re-layout (bf16 matmul operands, f32 biases)."""
    bf16, f32 = jnp.bfloat16, jnp.float32
    # conv1 weight, flattened row index = k*Cin + ci (matches flat input layout)
    w1flat = jnp.transpose(p['w1'], (2, 1, 0)).reshape(KC1, 64)          # (80, 64)
    w1p = jnp.zeros((128, 128), f32)
    w1p = w1p.at[0:KC1, 0:64].set(w1flat)                    # conv position 2p
    w1p = w1p.at[S1 * CIN:S1 * CIN + KC1, 64:128].set(w1flat)  # conv position 2p+1
    b1p = jnp.concatenate([p['b1'], p['b1']]).reshape(1, 128).astype(f32)
    # conv2 weight -> (K*Cin, Cout), row index = k*64 + c
    w2m = jnp.transpose(p['w2'], (2, 1, 0)).reshape(K2 * 64, 128).astype(bf16)
    # LSTM: concat fwd/rev input projections -> one (128, 1024) matmul
    wih = jnp.concatenate([p['w_ih_f'].T, p['w_ih_r'].T], axis=1).astype(bf16)
    whhf = p['w_hh_f'].T.astype(bf16)
    whhr = p['w_hh_r'].T.astype(bf16)
    bgf = (p['b_ih_f'] + p['b_hh_f']).reshape(1, 4 * H).astype(f32)
    bgr = (p['b_ih_r'] + p['b_hh_r']).reshape(1, 4 * H).astype(f32)
    # FC (1, 1280) -> (1280, 128), only column 0 is real (lane-dense output)
    fcw = jnp.zeros((2 * H * P2, 128), f32).at[:, 0].set(p['fc_w'][0]).astype(bf16)
    fcb = jnp.broadcast_to(p['fc_b'].reshape(1, 1), (1, 128)).astype(f32)
    return dict(w1=w1p.astype(bf16), b1=b1p,
                w2=w2m, b2=p['b2'].reshape(1, 128).astype(f32),
                wih=wih, whhf=whhf, whhr=whhr, bgf=bgf, bgr=bgr,
                fcw=fcw, fcb=fcb)


def _pick_tile(B, tile_b):
    # Aim for >=2 grid steps once B is big enough to split (v7x has 2 TCs),
    # keep TB a multiple of 16 (bf16 sublane packing), cap at tile_b.
    tb = min(tile_b, _round_up(max((B + 1) // 2, 1), 16))
    return max(16, tb)


def promoter_net_forward(x_ncl, prep, tile_b=128):
    B = x_ncl.shape[0]
    TB = _pick_tile(B, tile_b)
    Bp = _round_up(B, TB)
    # (B, 5, 103) -> (B, 103, 5) -> flat (B, 515), zero-padded to (Bp, 640) bf16
    x = jnp.transpose(x_ncl, (0, 2, 1)).reshape(B, XFLAT)
    x = jnp.pad(x, ((0, Bp - B), (0, XPAD - XFLAT))).astype(jnp.bfloat16)

    out = pl.pallas_call(
        fused_kernel,
        out_shape=jax.ShapeDtypeStruct((Bp, 128), jnp.float32),
        grid=(Bp // TB,),
        in_specs=[pl.BlockSpec((TB, XPAD), lambda i: (i, 0))]
                 + [_const_spec(prep[k]) for k in _PARAM_ORDER],
        out_specs=pl.BlockSpec((TB, 128), lambda i: (i, 0)),
        scratch_shapes=[pltpu.VMEM((P1 * TB, 128), jnp.bfloat16),      # conv1 im2col
                        pltpu.VMEM((T2 * TB, K2 * 64), jnp.bfloat16),  # conv2 im2col
                        pltpu.VMEM((P2 * TB, 128), jnp.bfloat16),      # LSTM input seq
                        pltpu.VMEM((TB, 2 * H * P2), jnp.bfloat16)],   # FC features
        compiler_params=pltpu.CompilerParams(
            dimension_semantics=("parallel",),
            vmem_limit_bytes=32 * 1024 * 1024),
    )(x, *[prep[k] for k in _PARAM_ORDER])
    return out[:B, 0]                              # torch.squeeze -> (B,)


# -------------------------- parameters (synthetic) --------------------------

def init_params(key):
    ks = jax.random.split(key, 14)
    s = 0.05
    n = lambda k, shp: jax.random.normal(k, shp, jnp.float32) * s
    return {
        'w1': n(ks[0], (64, 5, 16)),   'b1': n(ks[1], (64,)),
        'w2': n(ks[2], (128, 64, 6)),  'b2': n(ks[3], (128,)),
        'w_ih_f': n(ks[4], (4 * H, 128)), 'w_hh_f': n(ks[5], (4 * H, H)),
        'b_ih_f': n(ks[6], (4 * H,)),     'b_hh_f': n(ks[7], (4 * H,)),
        'w_ih_r': n(ks[8], (4 * H, 128)), 'w_hh_r': n(ks[9], (4 * H, H)),
        'b_ih_r': n(ks[10], (4 * H,)),    'b_hh_r': n(ks[11], (4 * H,)),
        'fc_w': n(ks[12], (1, 1280)),     'fc_b': n(ks[13], (1,)),
    }


# ---------------------- pure-JAX reference (for checking) -------------------

def _maxpool_ncl(y):
    B, C, L = y.shape
    Lp = L // 2
    return jnp.max(y[:, :, :2 * Lp].reshape(B, C, Lp, 2), axis=-1)


def _lstm_dir(x, w_ih, w_hh, b_ih, b_hh):
    B, T, _ = x.shape
    h = jnp.zeros((B, H), jnp.float32)
    c = jnp.zeros((B, H), jnp.float32)
    outs = []
    for t in range(T):
        g = x[:, t, :] @ w_ih.T + h @ w_hh.T + b_ih + b_hh
        i = jax.nn.sigmoid(g[:, :H]); f = jax.nn.sigmoid(g[:, H:2 * H])
        gg = jnp.tanh(g[:, 2 * H:3 * H]); o = jax.nn.sigmoid(g[:, 3 * H:])
        c = f * c + i * gg
        h = o * jnp.tanh(c)
        outs.append(h)
    return jnp.stack(outs, axis=1)


def ref_forward(x_ncl, p):
    dn = ('NCH', 'OIH', 'NCH')
    y = jax.lax.conv_general_dilated(x_ncl, p['w1'], (3,), 'VALID',
                                     dimension_numbers=dn) + p['b1'][None, :, None]
    y = _maxpool_ncl(jnp.maximum(y, 0.0))
    y = jax.lax.conv_general_dilated(y, p['w2'], (1,), 'VALID',
                                     dimension_numbers=dn) + p['b2'][None, :, None]
    y = _maxpool_ncl(jnp.maximum(y, 0.0))
    y = jnp.transpose(y, (0, 2, 1))                                   # (B, 5, 128)
    fwd = _lstm_dir(y, p['w_ih_f'], p['w_hh_f'], p['b_ih_f'], p['b_hh_f'])
    rev = _lstm_dir(y[:, ::-1, :], p['w_ih_r'], p['w_hh_r'],
                    p['b_ih_r'], p['b_hh_r'])[:, ::-1, :]
    out = jnp.concatenate([fwd, rev], axis=-1)
    flat = out.reshape(out.shape[0], -1)
    return (flat @ p['fc_w'].T)[:, 0] + p['fc_b'][0]


if __name__ == "__main__":
    key = jax.random.PRNGKey(0)
    pkey, xkey, xkey2 = jax.random.split(key, 3)
    params = init_params(pkey)
    prep = prepare_params(params)

    # Input length 103: 103 -conv1(k16,s3)-> 30 -pool-> 15 -conv2(k6,s1)-> 10
    # -pool-> 5  => LSTM seq len 5, flatten 5*256 = 1280 = fc.in_features.
    B, Cin, L = 2, 5, 103
    x = jax.random.normal(xkey, (B, Cin, L), jnp.float32)

    fwd_fn = jax.jit(promoter_net_forward)
    out = jax.block_until_ready(fwd_fn(x, prep))
    ref = jax.block_until_ready(ref_forward(x, params))
    assert out.shape == (B,), out.shape
    assert bool(jnp.all(jnp.isfinite(out)))
    # bf16 matmul operands (f32 accumulation) vs f32 reference -> loose tolerance.
    assert bool(jnp.allclose(out, ref, atol=2e-2, rtol=2e-2)), (out, ref)

    # Odd batch: exercises batch padding and a multi-step (parallel) grid.
    B2 = 37
    x2 = jax.random.normal(xkey2, (B2, Cin, L), jnp.float32)
    out2 = jax.block_until_ready(fwd_fn(x2, prep))
    ref2 = jax.block_until_ready(ref_forward(x2, params))
    assert out2.shape == (B2,), out2.shape
    assert bool(jnp.allclose(out2, ref2, atol=2e-2, rtol=2e-2)), (out2, ref2)

    print("KERNEL_OK")
</pallas_src>

<mosaic_0001>
module attributes {stable_mosaic.version = 11 : i64} {
  func.func @fused_kernel(%arg0: i32, %arg1: memref<16x640xbf16, #tpu.memory_space<vmem>>, %arg2: memref<128x128xbf16, #tpu.memory_space<vmem>>, %arg3: memref<1x128xf32, #tpu.memory_space<vmem>>, %arg4: memref<384x128xbf16, #tpu.memory_space<vmem>>, %arg5: memref<1x128xf32, #tpu.memory_space<vmem>>, %arg6: memref<128x1024xbf16, #tpu.memory_space<vmem>>, %arg7: memref<128x512xbf16, #tpu.memory_space<vmem>>, %arg8: memref<128x512xbf16, #tpu.memory_space<vmem>>, %arg9: memref<1x512xf32, #tpu.memory_space<vmem>>, %arg10: memref<1x512xf32, #tpu.memory_space<vmem>>, %arg11: memref<1280x128xbf16, #tpu.memory_space<vmem>>, %arg12: memref<1x128xf32, #tpu.memory_space<vmem>>, %arg13: memref<16x128xf32, #tpu.memory_space<vmem>>, %arg14: memref<240x128xbf16, #tpu.memory_space<vmem>>, %arg15: memref<160x384xbf16, #tpu.memory_space<vmem>>, %arg16: memref<80x128xbf16, #tpu.memory_space<vmem>>, %arg17: memref<16x1280xbf16, #tpu.memory_space<vmem>>) attributes {dimension_semantics = [#tpu.dimension_semantics<parallel>], iteration_bounds = array<i64: 1>, scalar_prefetch = 0 : i64, scratch_operands = 4 : i64, tpu.core_type = #tpu.core_type<tc>, window_params = [{transform_indices = @transform_0, window_bounds = array<i64: 16, 640>}, {pipeline_mode = #tpu.pipeline_mode<synchronous>, transform_indices = @transform_1, window_bounds = array<i64: 128, 128>}, {pipeline_mode = #tpu.pipeline_mode<synchronous>, transform_indices = @transform_2, window_bounds = array<i64: 1, 128>}, {pipeline_mode = #tpu.pipeline_mode<synchronous>, transform_indices = @transform_3, window_bounds = array<i64: 384, 128>}, {pipeline_mode = #tpu.pipeline_mode<synchronous>, transform_indices = @transform_4, window_bounds = array<i64: 1, 128>}, {pipeline_mode = #tpu.pipeline_mode<synchronous>, transform_indices = @transform_5, window_bounds = array<i64: 128, 1024>}, {pipeline_mode = #tpu.pipeline_mode<synchronous>, transform_indices = @transform_6, window_bounds = array<i64: 128, 512>}, {pipeline_mode = #tpu.pipeline_mode<synchronous>, transform_indices = @transform_7, window_bounds = array<i64: 128, 512>}, {pipeline_mode = #tpu.pipeline_mode<synchronous>, transform_indices = @transform_8, window_bounds = array<i64: 1, 512>}, {pipeline_mode = #tpu.pipeline_mode<synchronous>, transform_indices = @transform_9, window_bounds = array<i64: 1, 512>}, {pipeline_mode = #tpu.pipeline_mode<synchronous>, transform_indices = @transform_10, window_bounds = array<i64: 1280, 128>}, {pipeline_mode = #tpu.pipeline_mode<synchronous>, transform_indices = @transform_11, window_bounds = array<i64: 1, 128>}, {transform_indices = @transform_12, window_bounds = array<i64: 16, 128>}]} {
    %c0 = arith.constant 0 : index
    %c0_0 = arith.constant 0 : index
    %0 = vector.load %arg1[%c0, %c0_0] : memref<16x640xbf16, #tpu.memory_space<vmem>>, vector<16x640xbf16>
    %1 = vector.extract_strided_slice %0 {offsets = [0, 0], sizes = [16, 128], strides = [1, 1]} : vector<16x640xbf16> to vector<16x128xbf16>
    %c0_1 = arith.constant 0 : index
    %c0_2 = arith.constant 0 : index
    %2 = vector.load %arg14[%c0_1, %c0_2] : memref<240x128xbf16, #tpu.memory_space<vmem>>, vector<16x128xbf16>
    tpu.vector_store %arg14[%c0_1, %c0_2], %1 {strides = array<i32>} : memref<240x128xbf16, #tpu.memory_space<vmem>>, vector<16x128xbf16>,
    %3 = vector.extract_strided_slice %0 {offsets = [0, 30], sizes = [16, 128], strides = [1, 1]} : vector<16x640xbf16> to vector<16x128xbf16>
    %c16 = arith.constant 16 : index
    %c0_3 = arith.constant 0 : index
    %4 = vector.load %arg14[%c16, %c0_3] : memref<240x128xbf16, #tpu.memory_space<vmem>>, vector<16x128xbf16>
    tpu.vector_store %arg14[%c16, %c0_3], %3 {strides = array<i32>} : memref<240x128xbf16, #tpu.memory_space<vmem>>, vector<16x128xbf16>,
    %5 = vector.extract_strided_slice %0 {offsets = [0, 60], sizes = [16, 128], strides = [1, 1]} : vector<16x640xbf16> to vector<16x128xbf16>
    %c32 = arith.constant 32 : index
    %c0_4 = arith.constant 0 : index
    %6 = vector.load %arg14[%c32, %c0_4] : memref<240x128xbf16, #tpu.memory_space<vmem>>, vector<16x128xbf16>
    tpu.vector_store %arg14[%c32, %c0_4], %5 {strides = array<i32>} : memref<240x128xbf16, #tpu.memory_space<vmem>>, vector<16x128xbf16>,
    %7 = vector.extract_strided_slice %0 {offsets = [0, 90], sizes = [16, 128], strides = [1, 1]} : vector<16x640xbf16> to vector<16x128xbf16>
    %c48 = arith.constant 48 : index
    %c0_5 = arith.constant 0 : index
    %8 = vector.load %arg14[%c48, %c0_5] : memref<240x128xbf16, #tpu.memory_space<vmem>>, vector<16x128xbf16>
    tpu.vector_store %arg14[%c48, %c0_5], %7 {strides = array<i32>} : memref<240x128xbf16, #tpu.memory_space<vmem>>, vector<16x128xbf16>,
    %9 = vector.extract_strided_slice %0 {offsets = [0, 120], sizes = [16, 128], strides = [1, 1]} : vector<16x640xbf16> to vector<16x128xbf16>
    %c64 = arith.constant 64 : index
    %c0_6 = arith.constant 0 : index
    %10 = vector.load %arg14[%c64, %c0_6] : memref<240x128xbf16, #tpu.memory_space<vmem>>, vector<16x128xbf16>
    tpu.vector_store %arg14[%c64, %c0_6], %9 {strides = array<i32>} : memref<240x128xbf16, #tpu.memory_space<vmem>>, vector<16x128xbf16>,
    %11 = vector.extract_strided_slice %0 {offsets = [0, 150], sizes = [16, 128], strides = [1, 1]} : vector<16x640xbf16> to vector<16x128xbf16>
    %c80 = arith.constant 80 : index
    %c0_7 = arith.constant 0 : index
    %12 = vector.load %arg14[%c80, %c0_7] : memref<240x128xbf16, #tpu.memory_space<vmem>>, vector<16x128xbf16>
    tpu.vector_store %arg14[%c80, %c0_7], %11 {strides = array<i32>} : memref<240x128xbf16, #tpu.memory_space<vmem>>, vector<16x128xbf16>,
    %13 = vector.extract_strided_slice %0 {offsets = [0, 180], sizes = [16, 128], strides = [1, 1]} : vector<16x640xbf16> to vector<16x128xbf16>
    %c96 = arith.constant 96 : index
    %c0_8 = arith.constant 0 : index
    %14 = vector.load %arg14[%c96, %c0_8] : memref<240x128xbf16, #tpu.memory_space<vmem>>, vector<16x128xbf16>
    tpu.vector_store %arg14[%c96, %c0_8], %13 {strides = array<i32>} : memref<240x128xbf16, #tpu.memory_space<vmem>>, vector<16x128xbf16>,
    %15 = vector.extract_strided_slice %0 {offsets = [0, 210], sizes = [16, 128], strides = [1, 1]} : vector<16x640xbf16> to vector<16x128xbf16>
    %c112 = arith.constant 112 : index
    %c0_9 = arith.constant 0 : index
    %16 = vector.load %arg14[%c112, %c0_9] : memref<240x128xbf16, #tpu.memory_space<vmem>>, vector<16x128xbf16>
    tpu.vector_store %arg14[%c112, %c0_9], %15 {strides = array<i32>} : memref<240x128xbf16, #tpu.memory_space<vmem>>, vector<16x128xbf16>,
    %17 = vector.extract_strided_slice %0 {offsets = [0, 240], sizes = [16, 128], strides = [1, 1]} : vector<16x640xbf16> to vector<16x128xbf16>
    %c128 = arith.constant 128 : index
    %c0_10 = arith.constant 0 : index
    %18 = vector.load %arg14[%c128, %c0_10] : memref<240x128xbf16, #tpu.memory_space<vmem>>, vector<16x128xbf16>
    tpu.vector_store %arg14[%c128, %c0_10], %17 {strides = array<i32>} : memref<240x128xbf16, #tpu.memory_space<vmem>>, vector<16x128xbf16>,
    %19 = vector.extract_strided_slice %0 {offsets = [0, 270], sizes = [16, 128], strides = [1, 1]} : vector<16x640xbf16> to vector<16x128xbf16>
    %c144 = arith.constant 144 : index
    %c0_11 = arith.constant 0 : index
    %20 = vector.load %arg14[%c144, %c0_11] : memref<240x128xbf16, #tpu.memory_space<vmem>>, vector<16x128xbf16>
    tpu.vector_store %arg14[%c144, %c0_11], %19 {strides = array<i32>} : memref<240x128xbf16, #tpu.memory_space<vmem>>, vector<16x128xbf16>,
    %21 = vector.extract_strided_slice %0 {offsets = [0, 300], sizes = [16, 128], strides = [1, 1]} : vector<16x640xbf16> to vector<16x128xbf16>
    %c160 = arith.constant 160 : index
    %c0_12 = arith.constant 0 : index
    %22 = vector.load %arg14[%c160, %c0_12] : memref<240x128xbf16, #tpu.memory_space<vmem>>, vector<16x128xbf16>
    tpu.vector_store %arg14[%c160, %c0_12], %21 {strides = array<i32>} : memref<240x128xbf16, #tpu.memory_space<vmem>>, vector<16x128xbf16>,
    %23 = vector.extract_strided_slice %0 {offsets = [0, 330], sizes = [16, 128], strides = [1, 1]} : vector<16x640xbf16> to vector<16x128xbf16>
    %c176 = arith.constant 176 : index
    %c0_13 = arith.constant 0 : index
    %24 = vector.load %arg14[%c176, %c0_13] : memref<240x128xbf16, #tpu.memory_space<vmem>>, vector<16x128xbf16>
    tpu.vector_store %arg14[%c176, %c0_13], %23 {strides = array<i32>} : memref<240x128xbf16, #tpu.memory_space<vmem>>, vector<16x128xbf16>,
    %25 = vector.extract_strided_slice %0 {offsets = [0, 360], sizes = [16, 128], strides = [1, 1]} : vector<16x640xbf16> to vector<16x128xbf16>
    %c192 = arith.constant 192 : index
    %c0_14 = arith.constant 0 : index
    %26 = vector.load %arg14[%c192, %c0_14] : memref<240x128xbf16, #tpu.memory_space<vmem>>, vector<16x128xbf16>
    tpu.vector_store %arg14[%c192, %c0_14], %25 {strides = array<i32>} : memref<240x128xbf16, #tpu.memory_space<vmem>>, vector<16x128xbf16>,
    %27 = vector.extract_strided_slice %0 {offsets = [0, 390], sizes = [16, 128], strides = [1, 1]} : vector<16x640xbf16> to vector<16x128xbf16>
    %c208 = arith.constant 208 : index
    %c0_15 = arith.constant 0 : index
    %28 = vector.load %arg14[%c208, %c0_15] : memref<240x128xbf16, #tpu.memory_space<vmem>>, vector<16x128xbf16>
    tpu.vector_store %arg14[%c208, %c0_15], %27 {strides = array<i32>} : memref<240x128xbf16, #tpu.memory_space<vmem>>, vector<16x128xbf16>,
    %29 = vector.extract_strided_slice %0 {offsets = [0, 420], sizes = [16, 128], strides = [1, 1]} : vector<16x640xbf16> to vector<16x128xbf16>
    %c224 = arith.constant 224 : index
    %c0_16 = arith.constant 0 : index
    %30 = vector.load %arg14[%c224, %c0_16] : memref<240x128xbf16, #tpu.memory_space<vmem>>, vector<16x128xbf16>
    tpu.vector_store %arg14[%c224, %c0_16], %29 {strides = array<i32>} : memref<240x128xbf16, #tpu.memory_space<vmem>>, vector<16x128xbf16>,
    %c0_17 = arith.constant 0 : index
    %c0_18 = arith.constant 0 : index
    %31 = vector.load %arg14[%c0_17, %c0_18] : memref<240x128xbf16, #tpu.memory_space<vmem>>, vector<240x128xbf16>
    %c0_19 = arith.constant 0 : index
    %c0_20 = arith.constant 0 : index
    %32 = vector.load %arg2[%c0_19, %c0_20] : memref<128x128xbf16, #tpu.memory_space<vmem>>, vector<128x128xbf16>
    %cst = arith.constant dense<0.000000e+00> : vector<240x128xf32>
    %33 = tpu.matmul %31, %32, %cst {dimension_numbers = #tpu.dot_dimension_numbers<[1], [0], [0], [1], [0, 0, 1, 1], [], []>} : vector<240x128xbf16>, vector<128x128xbf16>, vector<240x128xf32> -> vector<240x128xf32>
    %c0_21 = arith.constant 0 : index
    %c0_22 = arith.constant 0 : index
    %34 = vector.load %arg3[%c0_21, %c0_22] : memref<1x128xf32, #tpu.memory_space<vmem>>, vector<1x128xf32>
    %35 = vector.broadcast %34 : vector<1x128xf32> to vector<240x128xf32>
    %36 = arith.addf %33, %35 : vector<240x128xf32>
    %cst_23 = arith.constant 0.000000e+00 : f32
    %37 = vector.broadcast %cst_23 : f32 to vector<240x128xf32>
    %38 = arith.maximumf %36, %37 : vector<240x128xf32>
    %39 = vector.extract_strided_slice %38 {offsets = [0, 0], sizes = [240, 64], strides = [1, 1]} : vector<240x128xf32> to vector<240x64xf32>
    %40 = vector.extract_strided_slice %38 {offsets = [0, 64], sizes = [240, 64], strides = [1, 1]} : vector<240x128xf32> to vector<240x64xf32>
    %41 = arith.maximumf %39, %40 : vector<240x64xf32>
    %42 = arith.truncf %41 : vector<240x64xf32> to vector<240x64xbf16>
    %43 = vector.extract_strided_slice %42 {offsets = [0, 0], sizes = [160, 64], strides = [1, 1]} : vector<240x64xbf16> to vector<160x64xbf16>
    %c0_24 = arith.constant 0 : index
    %c0_25 = arith.constant 0 : index
    %44 = vector.load %arg15[%c0_24, %c0_25] : memref<160x384xbf16, #tpu.memory_space<vmem>>, vector<160x64xbf16>
    tpu.vector_store %arg15[%c0_24, %c0_25], %43 {strides = array<i32>} : memref<160x384xbf16, #tpu.memory_space<vmem>>, vector<160x64xbf16>,
    %45 = vector.extract_strided_slice %42 {offsets = [16, 0], sizes = [160, 64], strides = [1, 1]} : vector<240x64xbf16> to vector<160x64xbf16>
    %c0_26 = arith.constant 0 : index
    %c64_27 = arith.constant 64 : index
    %46 = vector.load %arg15[%c0_26, %c64_27] : memref<160x384xbf16, #tpu.memory_space<vmem>>, vector<160x64xbf16>
    tpu.vector_store %arg15[%c0_26, %c64_27], %45 {strides = array<i32>} : memref<160x384xbf16, #tpu.memory_space<vmem>>, vector<160x64xbf16>,
    %47 = vector.extract_strided_slice %42 {offsets = [32, 0], sizes = [160, 64], strides = [1, 1]} : vector<240x64xbf16> to vector<160x64xbf16>
    %c0_28 = arith.constant 0 : index
    %c128_29 = arith.constant 128 : index
    %48 = vector.load %arg15[%c0_28, %c128_29] : memref<160x384xbf16, #tpu.memory_space<vmem>>, vector<160x64xbf16>
    tpu.vector_store %arg15[%c0_28, %c128_29], %47 {strides = array<i32>} : memref<160x384xbf16, #tpu.memory_space<vmem>>, vector<160x64xbf16>,
    %49 = vector.extract_strided_slice %42 {offsets = [48, 0], sizes = [160, 64], strides = [1, 1]} : vector<240x64xbf16> to vector<160x64xbf16>
    %c0_30 = arith.constant 0 : index
    %c192_31 = arith.constant 192 : index
    %50 = vector.load %arg15[%c0_30, %c192_31] : memref<160x384xbf16, #tpu.memory_space<vmem>>, vector<160x64xbf16>
    tpu.vector_store %arg15[%c0_30, %c192_31], %49 {strides = array<i32>} : memref<160x384xbf16, #tpu.memory_space<vmem>>, vector<160x64xbf16>,
    %51 = vector.extract_strided_slice %42 {offsets = [64, 0], sizes = [160, 64], strides = [1, 1]} : vector<240x64xbf16> to vector<160x64xbf16>
    %c0_32 = arith.constant 0 : index
    %c256 = arith.constant 256 : index
    %52 = vector.load %arg15[%c0_32, %c256] : memref<160x384xbf16, #tpu.memory_space<vmem>>, vector<160x64xbf16>
    tpu.vector_store %arg15[%c0_32, %c256], %51 {strides = array<i32>} : memref<160x384xbf16, #tpu.memory_space<vmem>>, vector<160x64xbf16>,
    %53 = vector.extract_strided_slice %42 {offsets = [80, 0], sizes = [160, 64], strides = [1, 1]} : vector<240x64xbf16> to vector<160x64xbf16>
    %c0_33 = arith.constant 0 : index
    %c320 = arith.constant 320 : index
    %54 = vector.load %arg15[%c0_33, %c320] : memref<160x384xbf16, #tpu.memory_space<vmem>>, vector<160x64xbf16>
    tpu.vector_store %arg15[%c0_33, %c320], %53 {strides = array<i32>} : memref<160x384xbf16, #tpu.memory_space<vmem>>, vector<160x64xbf16>,
    %c0_34 = arith.constant 0 : index
    %c0_35 = arith.constant 0 : index
    %55 = vector.load %arg15[%c0_34, %c0_35] : memref<160x384xbf16, #tpu.memory_space<vmem>>, vector<160x384xbf16>
    %c0_36 = arith.constant 0 : index
    %c0_37 = arith.constant 0 : index
    %56 = vector.load %arg4[%c0_36, %c0_37] : memref<384x128xbf16, #tpu.memory_space<vmem>>, vector<384x128xbf16>
    %cst_38 = arith.constant dense<0.000000e+00> : vector<160x128xf32>
    %57 = tpu.matmul %55, %56, %cst_38 {dimension_numbers = #tpu.dot_dimension_numbers<[1], [0], [0], [1], [0, 0, 1, 1], [], []>} : vector<160x384xbf16>, vector<384x128xbf16>, vector<160x128xf32> -> vector<160x128xf32>
    %c0_39 = arith.constant 0 : index
    %c0_40 = arith.constant 0 : index
    %58 = vector.load %arg5[%c0_39, %c0_40] : memref<1x128xf32, #tpu.memory_space<vmem>>, vector<1x128xf32>
    %59 = vector.broadcast %58 : vector<1x128xf32> to vector<160x128xf32>
    %60 = arith.addf %57, %59 : vector<160x128xf32>
    %cst_41 = arith.constant 0.000000e+00 : f32
    %61 = vector.broadcast %cst_41 : f32 to vector<160x128xf32>
    %62 = arith.maximumf %60, %61 : vector<160x128xf32>
    %63 = vector.extract_strided_slice %62 {offsets = [0, 0], sizes = [16, 128], strides = [1, 1]} : vector<160x128xf32> to vector<16x128xf32>
    %64 = vector.extract_strided_slice %62 {offsets = [16, 0], sizes = [16, 128], strides = [1, 1]} : vector<160x128xf32> to vector<16x128xf32>
    %65 = arith.maximumf %63, %64 : vector<16x128xf32>
    %66 = arith.truncf %65 : vector<16x128xf32> to vector<16x128xbf16>
    %c0_42 = arith.constant 0 : index
    %c0_43 = arith.constant 0 : index
    %67 = vector.load %arg16[%c0_42, %c0_43] : memref<80x128xbf16, #tpu.memory_space<vmem>>, vector<16x128xbf16>
    tpu.vector_store %arg16[%c0_42, %c0_43], %66 {strides = array<i32>} : memref<80x128xbf16, #tpu.memory_space<vmem>>, vector<16x128xbf16>,
    %68 = vector.extract_strided_slice %62 {offsets = [32, 0], sizes = [16, 128], strides = [1, 1]} : vector<160x128xf32> to vector<16x128xf32>
    %69 = vector.extract_strided_slice %62 {offsets = [48, 0], sizes = [16, 128], strides = [1, 1]} : vector<160x128xf32> to vector<16x128xf32>
    %70 = arith.maximumf %68, %69 : vector<16x128xf32>
    %71 = arith.truncf %70 : vector<16x128xf32> to vector<16x128xbf16>
    %c16_44 = arith.constant 16 : index
    %c0_45 = arith.constant 0 : index
    %72 = vector.load %arg16[%c16_44, %c0_45] : memref<80x128xbf16, #tpu.memory_space<vmem>>, vector<16x128xbf16>
    tpu.vector_store %arg16[%c16_44, %c0_45], %71 {strides = array<i32>} : memref<80x128xbf16, #tpu.memory_space<vmem>>, vector<16x128xbf16>,
    %73 = vector.extract_strided_slice %62 {offsets = [64, 0], sizes = [16, 128], strides = [1, 1]} : vector<160x128xf32> to vector<16x128xf32>
    %74 = vector.extract_strided_slice %62 {offsets = [80, 0], sizes = [16, 128], strides = [1, 1]} : vector<160x128xf32> to vector<16x128xf32>
    %75 = arith.maximumf %73, %74 : vector<16x128xf32>
    %76 = arith.truncf %75 : vector<16x128xf32> to vector<16x128xbf16>
    %c32_46 = arith.constant 32 : index
    %c0_47 = arith.constant 0 : index
    %77 = vector.load %arg16[%c32_46, %c0_47] : memref<80x128xbf16, #tpu.memory_space<vmem>>, vector<16x128xbf16>
    tpu.vector_store %arg16[%c32_46, %c0_47], %76 {strides = array<i32>} : memref<80x128xbf16, #tpu.memory_space<vmem>>, vector<16x128xbf16>,
    %78 = vector.extract_strided_slice %62 {offsets = [96, 0], sizes = [16, 128], strides = [1, 1]} : vector<160x128xf32> to vector<16x128xf32>
    %79 = vector.extract_strided_slice %62 {offsets = [112, 0], sizes = [16, 128], strides = [1, 1]} : vector<160x128xf32> to vector<16x128xf32>
    %80 = arith.maximumf %78, %79 : vector<16x128xf32>
    %81 = arith.truncf %80 : vector<16x128xf32> to vector<16x128xbf16>
    %c48_48 = arith.constant 48 : index
    %c0_49 = arith.constant 0 : index
    %82 = vector.load %arg16[%c48_48, %c0_49] : memref<80x128xbf16, #tpu.memory_space<vmem>>, vector<16x128xbf16>
    tpu.vector_store %arg16[%c48_48, %c0_49], %81 {strides = array<i32>} : memref<80x128xbf16, #tpu.memory_space<vmem>>, vector<16x128xbf16>,
    %83 = vector.extract_strided_slice %62 {offsets = [128, 0], sizes = [16, 128], strides = [1, 1]} : vector<160x128xf32> to vector<16x128xf32>
    %84 = vector.extract_strided_slice %62 {offsets = [144, 0], sizes = [16, 128], strides = [1, 1]} : vector<160x128xf32> to vector<16x128xf32>
    %85 = arith.maximumf %83, %84 : vector<16x128xf32>
    %86 = arith.truncf %85 : vector<16x128xf32> to vector<16x128xbf16>
    %c64_50 = arith.constant 64 : index
    %c0_51 = arith.constant 0 : index
    %87 = vector.load %arg16[%c64_50, %c0_51] : memref<80x128xbf16, #tpu.memory_space<vmem>>, vector<16x128xbf16>
    tpu.vector_store %arg16[%c64_50, %c0_51], %86 {strides = array<i32>} : memref<80x128xbf16, #tpu.memory_space<vmem>>, vector<16x128xbf16>,
    %c0_52 = arith.constant 0 : index
    %c0_53 = arith.constant 0 : index
    %88 = vector.load %arg16[%c0_52, %c0_53] : memref<80x128xbf16, #tpu.memory_space<vmem>>, vector<80x128xbf16>
    %c0_54 = arith.constant 0 : index
    %c0_55 = arith.constant 0 : index
    %89 = vector.load %arg6[%c0_54, %c0_55] : memref<128x1024xbf16, #tpu.memory_space<vmem>>, vector<128x1024xbf16>
    %cst_56 = arith.constant dense<0.000000e+00> : vector<80x1024xf32>
    %90 = tpu.matmul %88, %89, %cst_56 {dimension_numbers = #tpu.dot_dimension_numbers<[1], [0], [0], [1], [0, 0, 1, 1], [], []>} : vector<80x128xbf16>, vector<128x1024xbf16>, vector<80x1024xf32> -> vector<80x1024xf32>
    %c0_57 = arith.constant 0 : index
    %c0_58 = arith.constant 0 : index
    %91 = vector.load %arg7[%c0_57, %c0_58] : memref<128x512xbf16, #tpu.memory_space<vmem>>, vector<128x512xbf16>
    %c0_59 = arith.constant 0 : index
    %c0_60 = arith.constant 0 : index
    %92 = vector.load %arg8[%c0_59, %c0_60] : memref<128x512xbf16, #tpu.memory_space<vmem>>, vector<128x512xbf16>
    %c0_61 = arith.constant 0 : index
    %c0_62 = arith.constant 0 : index
    %93 = vector.load %arg9[%c0_61, %c0_62] : memref<1x512xf32, #tpu.memory_space<vmem>>, vector<1x512xf32>
    %c0_63 = arith.constant 0 : index
    %c0_64 = arith.constant 0 : index
    %94 = vector.load %arg10[%c0_63, %c0_64] : memref<1x512xf32, #tpu.memory_space<vmem>>, vector<1x512xf32>
    %cst_65 = arith.constant 0.000000e+00 : bf16
    %95 = vector.broadcast %cst_65 : bf16 to vector<16x128xbf16>
    %cst_66 = arith.constant 0.000000e+00 : bf16
    %96 = vector.broadcast %cst_66 : bf16 to vector<16x128xbf16>
    %cst_67 = arith.constant 0.000000e+00 : f32
    %97 = vector.broadcast %cst_67 : f32 to vector<16x128xf32>
    %cst_68 = arith.constant 0.000000e+00 : f32
    %98 = vector.broadcast %cst_68 : f32 to vector<16x128xf32>
    %99 = vector.extract_strided_slice %90 {offsets = [0, 0], sizes = [16, 512], strides = [1, 1]} : vector<80x1024xf32> to vector<16x512xf32>
    %cst_69 = arith.constant dense<0.000000e+00> : vector<16x512xf32>
    %100 = tpu.matmul %95, %91, %cst_69 {dimension_numbers = #tpu.dot_dimension_numbers<[1], [0], [0], [1], [0, 0, 1, 1], [], []>} : vector<16x128xbf16>, vector<128x512xbf16>, vector<16x512xf32> -> vector<16x512xf32>
    %101 = arith.addf %99, %100 : vector<16x512xf32>
    %102 = vector.broadcast %93 : vector<1x512xf32> to vector<16x512xf32>
    %103 = arith.addf %101, %102 : vector<16x512xf32>
    %104 = vector.extract_strided_slice %103 {offsets = [0, 0], sizes = [16, 128], strides = [1, 1]} : vector<16x512xf32> to vector<16x128xf32>
    %105 = arith.negf %104 : vector<16x128xf32>
    %106 = math.exp %105 : vector<16x128xf32>
    %cst_70 = arith.constant 1.000000e+00 : f32
    %107 = vector.broadcast %cst_70 : f32 to vector<16x128xf32>
    %108 = arith.addf %107, %106 : vector<16x128xf32>
    %109 = arith.divf %107, %108 : vector<16x128xf32>
    %110 = vector.extract_strided_slice %103 {offsets = [0, 128], sizes = [16, 128], strides = [1, 1]} : vector<16x512xf32> to vector<16x128xf32>
    %111 = arith.negf %110 : vector<16x128xf32>
    %112 = math.exp %111 : vector<16x128xf32>
    %cst_71 = arith.constant 1.000000e+00 : f32
    %113 = vector.broadcast %cst_71 : f32 to vector<16x128xf32>
    %114 = arith.addf %113, %112 : vector<16x128xf32>
    %115 = arith.divf %113, %114 : vector<16x128xf32>
    %116 = vector.extract_strided_slice %103 {offsets = [0, 256], sizes = [16, 128], strides = [1, 1]} : vector<16x512xf32> to vector<16x128xf32>
    %117 = math.tanh %116 : vector<16x128xf32>
    %118 = vector.extract_strided_slice %103 {offsets = [0, 384], sizes = [16, 128], strides = [1, 1]} : vector<16x512xf32> to vector<16x128xf32>
    %119 = arith.negf %118 : vector<16x128xf32>
    %120 = math.exp %119 : vector<16x128xf32>
    %cst_72 = arith.constant 1.000000e+00 : f32
    %121 = vector.broadcast %cst_72 : f32 to vector<16x128xf32>
    %122 = arith.addf %121, %120 : vector<16x128xf32>
    %123 = arith.divf %121, %122 : vector<16x128xf32>
    %124 = arith.mulf %115, %97 : vector<16x128xf32>
    %125 = arith.mulf %109, %117 : vector<16x128xf32>
    %126 = arith.addf %124, %125 : vector<16x128xf32>
    %127 = math.tanh %126 : vector<16x128xf32>
    %128 = arith.mulf %123, %127 : vector<16x128xf32>
    %129 = arith.truncf %128 : vector<16x128xf32> to vector<16x128xbf16>
    %c0_73 = arith.constant 0 : index
    %c0_74 = arith.constant 0 : index
    %130 = vector.load %arg17[%c0_73, %c0_74] : memref<16x1280xbf16, #tpu.memory_space<vmem>>, vector<16x128xbf16>
    tpu.vector_store %arg17[%c0_73, %c0_74], %129 {strides = array<i32>} : memref<16x1280xbf16, #tpu.memory_space<vmem>>, vector<16x128xbf16>,
    %131 = vector.extract_strided_slice %90 {offsets = [64, 512], sizes = [16, 512], strides = [1, 1]} : vector<80x1024xf32> to vector<16x512xf32>
    %cst_75 = arith.constant dense<0.000000e+00> : vector<16x512xf32>
    %132 = tpu.matmul %96, %92, %cst_75 {dimension_numbers = #tpu.dot_dimension_numbers<[1], [0], [0], [1], [0, 0, 1, 1], [], []>} : vector<16x128xbf16>, vector<128x512xbf16>, vector<16x512xf32> -> vector<16x512xf32>
    %133 = arith.addf %131, %132 : vector<16x512xf32>
    %134 = vector.broadcast %94 : vector<1x512xf32> to vector<16x512xf32>
    %135 = arith.addf %133, %134 : vector<16x512xf32>
    %136 = vector.extract_strided_slice %135 {offsets = [0, 0], sizes = [16, 128], strides = [1, 1]} : vector<16x512xf32> to vector<16x128xf32>
    %137 = arith.negf %136 : vector<16x128xf32>
    %138 = math.exp %137 : vector<16x128xf32>
    %cst_76 = arith.constant 1.000000e+00 : f32
    %139 = vector.broadcast %cst_76 : f32 to vector<16x128xf32>
    %140 = arith.addf %139, %138 : vector<16x128xf32>
    %141 = arith.divf %139, %140 : vector<16x128xf32>
    %142 = vector.extract_strided_slice %135 {offsets = [0, 128], sizes = [16, 128], strides = [1, 1]} : vector<16x512xf32> to vector<16x128xf32>
    %143 = arith.negf %142 : vector<16x128xf32>
    %144 = math.exp %143 : vector<16x128xf32>
    %cst_77 = arith.constant 1.000000e+00 : f32
    %145 = vector.broadcast %cst_77 : f32 to vector<16x128xf32>
    %146 = arith.addf %145, %144 : vector<16x128xf32>
    %147 = arith.divf %145, %146 : vector<16x128xf32>
    %148 = vector.extract_strided_slice %135 {offsets = [0, 256], sizes = [16, 128], strides = [1, 1]} : vector<16x512xf32> to vector<16x128xf32>
    %149 = math.tanh %148 : vector<16x128xf32>
    %150 = vector.extract_strided_slice %135 {offsets = [0, 384], sizes = [16, 128], strides = [1, 1]} : vector<16x512xf32> to vector<16x128xf32>
    %151 = arith.negf %150 : vector<16x128xf32>
    %152 = math.exp %151 : vector<16x128xf32>
    %cst_78 = arith.constant 1.000000e+00 : f32
    %153 = vector.broadcast %cst_78 : f32 to vector<16x128xf32>
    %154 = arith.addf %153, %152 : vector<16x128xf32>
    %155 = arith.divf %153, %154 : vector<16x128xf32>
    %156 = arith.mulf %147, %98 : vector<16x128xf32>
    %157 = arith.mulf %141, %149 : vector<16x128xf32>
    %158 = arith.addf %156, %157 : vector<16x128xf32>
    %159 = math.tanh %158 : vector<16x128xf32>
    %160 = arith.mulf %155, %159 : vector<16x128xf32>
    %161 = arith.truncf %160 : vector<16x128xf32> to vector<16x128xbf16>
    %c0_79 = arith.constant 0 : index
    %c1152 = arith.constant 1152 : index
    %162 = vector.load %arg17[%c0_79, %c1152] : memref<16x1280xbf16, #tpu.memory_space<vmem>>, vector<16x128xbf16>
    tpu.vector_store %arg17[%c0_79, %c1152], %161 {strides = array<i32>} : memref<16x1280xbf16, #tpu.memory_space<vmem>>, vector<16x128xbf16>,
    %163 = vector.extract_strided_slice %90 {offsets = [16, 0], sizes = [16, 512], strides = [1, 1]} : vector<80x1024xf32> to vector<16x512xf32>
    %cst_80 = arith.constant dense<0.000000e+00> : vector<16x512xf32>
    %164 = tpu.matmul %129, %91, %cst_80 {dimension_numbers = #tpu.dot_dimension_numbers<[1], [0], [0], [1], [0, 0, 1, 1], [], []>} : vector<16x128xbf16>, vector<128x512xbf16>, vector<16x512xf32> -> vector<16x512xf32>
    %165 = arith.addf %163, %164 : vector<16x512xf32>
    %166 = vector.broadcast %93 : vector<1x512xf32> to vector<16x512xf32>
    %167 = arith.addf %165, %166 : vector<16x512xf32>
    %168 = vector.extract_strided_slice %167 {offsets = [0, 0], sizes = [16, 128], strides = [1, 1]} : vector<16x512xf32> to vector<16x128xf32>
    %169 = arith.negf %168 : vector<16x128xf32>
    %170 = math.exp %169 : vector<16x128xf32>
    %cst_81 = arith.constant 1.000000e+00 : f32
    %171 = vector.broadcast %cst_81 : f32 to vector<16x128xf32>
    %172 = arith.addf %171, %170 : vector<16x128xf32>
    %173 = arith.divf %171, %172 : vector<16x128xf32>
    %174 = vector.extract_strided_slice %167 {offsets = [0, 128], sizes = [16, 128], strides = [1, 1]} : vector<16x512xf32> to vector<16x128xf32>
    %175 = arith.negf %174 : vector<16x128xf32>
    %176 = math.exp %175 : vector<16x128xf32>
    %cst_82 = arith.constant 1.000000e+00 : f32
    %177 = vector.broadcast %cst_82 : f32 to vector<16x128xf32>
    %178 = arith.addf %177, %176 : vector<16x128xf32>
    %179 = arith.divf %177, %178 : vector<16x128xf32>
    %180 = vector.extract_strided_slice %167 {offsets = [0, 256], sizes = [16, 128], strides = [1, 1]} : vector<16x512xf32> to vector<16x128xf32>
    %181 = math.tanh %180 : vector<16x128xf32>
    %182 = vector.extract_strided_slice %167 {offsets = [0, 384], sizes = [16, 128], strides = [1, 1]} : vector<16x512xf32> to vector<16x128xf32>
    %183 = arith.negf %182 : vector<16x128xf32>
    %184 = math.exp %183 : vector<16x128xf32>
    %cst_83 = arith.constant 1.000000e+00 : f32
    %185 = vector.broadcast %cst_83 : f32 to vector<16x128xf32>
    %186 = arith.addf %185, %184 : vector<16x128xf32>
    %187 = arith.divf %185, %186 : vector<16x128xf32>
    %188 = arith.mulf %179, %126 : vector<16x128xf32>
    %189 = arith.mulf %173, %181 : vector<16x128xf32>
    %190 = arith.addf %188, %189 : vector<16x128xf32>
    %191 = math.tanh %190 : vector<16x128xf32>
    %192 = arith.mulf %187, %191 : vector<16x128xf32>
    %193 = arith.truncf %192 : vector<16x128xf32> to vector<16x128xbf16>
    %c0_84 = arith.constant 0 : index
    %c256_85 = arith.constant 256 : index
    %194 = vector.load %arg17[%c0_84, %c256_85] : memref<16x1280xbf16, #tpu.memory_space<vmem>>, vector<16x128xbf16>
    tpu.vector_store %arg17[%c0_84, %c256_85], %193 {strides = array<i32>} : memref<16x1280xbf16, #tpu.memory_space<vmem>>, vector<16x128xbf16>,
    %195 = vector.extract_strided_slice %90 {offsets = [48, 512], sizes = [16, 512], strides = [1, 1]} : vector<80x1024xf32> to vector<16x512xf32>
    %cst_86 = arith.constant dense<0.000000e+00> : vector<16x512xf32>
    %196 = tpu.matmul %161, %92, %cst_86 {dimension_numbers = #tpu.dot_dimension_numbers<[1], [0], [0], [1], [0, 0, 1, 1], [], []>} : vector<16x128xbf16>, vector<128x512xbf16>, vector<16x512xf32> -> vector<16x512xf32>
    %197 = arith.addf %195, %196 : vector<16x512xf32>
    %198 = vector.broadcast %94 : vector<1x512xf32> to vector<16x512xf32>
    %199 = arith.addf %197, %198 : vector<16x512xf32>
    %200 = vector.extract_strided_slice %199 {offsets = [0, 0], sizes = [16, 128], strides = [1, 1]} : vector<16x512xf32> to vector<16x128xf32>
    %201 = arith.negf %200 : vector<16x128xf32>
    %202 = math.exp %201 : vector<16x128xf32>
    %cst_87 = arith.constant 1.000000e+00 : f32
    %203 = vector.broadcast %cst_87 : f32 to vector<16x128xf32>
    %204 = arith.addf %203, %202 : vector<16x128xf32>
    %205 = arith.divf %203, %204 : vector<16x128xf32>
    %206 = vector.extract_strided_slice %199 {offsets = [0, 128], sizes = [16, 128], strides = [1, 1]} : vector<16x512xf32> to vector<16x128xf32>
    %207 = arith.negf %206 : vector<16x128xf32>
    %208 = math.exp %207 : vector<16x128xf32>
    %cst_88 = arith.constant 1.000000e+00 : f32
    %209 = vector.broadcast %cst_88 : f32 to vector<16x128xf32>
    %210 = arith.addf %209, %208 : vector<16x128xf32>
    %211 = arith.divf %209, %210 : vector<16x128xf32>
    %212 = vector.extract_strided_slice %199 {offsets = [0, 256], sizes = [16, 128], strides = [1, 1]} : vector<16x512xf32> to vector<16x128xf32>
    %213 = math.tanh %212 : vector<16x128xf32>
    %214 = vector.extract_strided_slice %199 {offsets = [0, 384], sizes = [16, 128], strides = [1, 1]} : vector<16x512xf32> to vector<16x128xf32>
    %215 = arith.negf %214 : vector<16x128xf32>
    %216 = math.exp %215 : vector<16x128xf32>
    %cst_89 = arith.constant 1.000000e+00 : f32
    %217 = vector.broadcast %cst_89 : f32 to vector<16x128xf32>
    %218 = arith.addf %217, %216 : vector<16x128xf32>
    %219 = arith.divf %217, %218 : vector<16x128xf32>
    %220 = arith.mulf %211, %158 : vector<16x128xf32>
    %221 = arith.mulf %205, %213 : vector<16x128xf32>
    %222 = arith.addf %220, %221 : vector<16x128xf32>
    %223 = math.tanh %222 : vector<16x128xf32>
    %224 = arith.mulf %219, %223 : vector<16x128xf32>
    %225 = arith.truncf %224 : vector<16x128xf32> to vector<16x128xbf16>
    %c0_90 = arith.constant 0 : index
    %c896 = arith.constant 896 : index
    %226 = vector.load %arg17[%c0_90, %c896] : memref<16x1280xbf16, #tpu.memory_space<vmem>>, vector<16x128xbf16>
    tpu.vector_store %arg17[%c0_90, %c896], %225 {strides = array<i32>} : memref<16x1280xbf16, #tpu.memory_space<vmem>>, vector<16x128xbf16>,
    %227 = vector.extract_strided_slice %90 {offsets = [32, 0], sizes = [16, 512], strides = [1, 1]} : vector<80x1024xf32> to vector<16x512xf32>
    %cst_91 = arith.constant dense<0.000000e+00> : vector<16x512xf32>
    %228 = tpu.matmul %193, %91, %cst_91 {dimension_numbers = #tpu.dot_dimension_numbers<[1], [0], [0], [1], [0, 0, 1, 1], [], []>} : vector<16x128xbf16>, vector<128x512xbf16>, vector<16x512xf32> -> vector<16x512xf32>
    %229 = arith.addf %227, %228 : vector<16x512xf32>
    %230 = vector.broadcast %93 : vector<1x512xf32> to vector<16x512xf32>
    %231 = arith.addf %229, %230 : vector<16x512xf32>
    %232 = vector.extract_strided_slice %231 {offsets = [0, 0], sizes = [16, 128], strides = [1, 1]} : vector<16x512xf32> to vector<16x128xf32>
    %233 = arith.negf %232 : vector<16x128xf32>
    %234 = math.exp %233 : vector<16x128xf32>
    %cst_92 = arith.constant 1.000000e+00 : f32
    %235 = vector.broadcast %cst_92 : f32 to vector<16x128xf32>
    %236 = arith.addf %235, %234 : vector<16x128xf32>
    %237 = arith.divf %235, %236 : vector<16x128xf32>
    %238 = vector.extract_strided_slice %231 {offsets = [0, 128], sizes = [16, 128], strides = [1, 1]} : vector<16x512xf32> to vector<16x128xf32>
    %239 = arith.negf %238 : vector<16x128xf32>
    %240 = math.exp %239 : vector<16x128xf32>
    %cst_93 = arith.constant 1.000000e+00 : f32
    %241 = vector.broadcast %cst_93 : f32 to vector<16x128xf32>
    %242 = arith.addf %241, %240 : vector<16x128xf32>
    %243 = arith.divf %241, %242 : vector<16x128xf32>
    %244 = vector.extract_strided_slice %231 {offsets = [0, 256], sizes = [16, 128], strides = [1, 1]} : vector<16x512xf32> to vector<16x128xf32>
    %245 = math.tanh %244 : vector<16x128xf32>
    %246 = vector.extract_strided_slice %231 {offsets = [0, 384], sizes = [16, 128], strides = [1, 1]} : vector<16x512xf32> to vector<16x128xf32>
    %247 = arith.negf %246 : vector<16x128xf32>
    %248 = math.exp %247 : vector<16x128xf32>
    %cst_94 = arith.constant 1.000000e+00 : f32
    %249 = vector.broadcast %cst_94 : f32 to vector<16x128xf32>
    %250 = arith.addf %249, %248 : vector<16x128xf32>
    %251 = arith.divf %249, %250 : vector<16x128xf32>
    %252 = arith.mulf %243, %190 : vector<16x128xf32>
    %253 = arith.mulf %237, %245 : vector<16x128xf32>
    %254 = arith.addf %252, %253 : vector<16x128xf32>
    %255 = math.tanh %254 : vector<16x128xf32>
    %256 = arith.mulf %251, %255 : vector<16x128xf32>
    %257 = arith.truncf %256 : vector<16x128xf32> to vector<16x128xbf16>
    %c0_95 = arith.constant 0 : index
    %c512 = arith.constant 512 : index
    %258 = vector.load %arg17[%c0_95, %c512] : memref<16x1280xbf16, #tpu.memory_space<vmem>>, vector<16x128xbf16>
    tpu.vector_store %arg17[%c0_95, %c512], %257 {strides = array<i32>} : memref<16x1280xbf16, #tpu.memory_space<vmem>>, vector<16x128xbf16>,
    %259 = vector.extract_strided_slice %90 {offsets = [32, 512], sizes = [16, 512], strides = [1, 1]} : vector<80x1024xf32> to vector<16x512xf32>
    %cst_96 = arith.constant dense<0.000000e+00> : vector<16x512xf32>
    %260 = tpu.matmul %225, %92, %cst_96 {dimension_numbers = #tpu.dot_dimension_numbers<[1], [0], [0], [1], [0, 0, 1, 1], [], []>} : vector<16x128xbf16>, vector<128x512xbf16>, vector<16x512xf32> -> vector<16x512xf32>
    %261 = arith.addf %259, %260 : vector<16x512xf32>
    %262 = vector.broadcast %94 : vector<1x512xf32> to vector<16x512xf32>
    %263 = arith.addf %261, %262 : vector<16x512xf32>
    %264 = vector.extract_strided_slice %263 {offsets = [0, 0], sizes = [16, 128], strides = [1, 1]} : vector<16x512xf32> to vector<16x128xf32>
    %265 = arith.negf %264 : vector<16x128xf32>
    %266 = math.exp %265 : vector<16x128xf32>
    %cst_97 = arith.constant 1.000000e+00 : f32
    %267 = vector.broadcast %cst_97 : f32 to vector<16x128xf32>
    %268 = arith.addf %267, %266 : vector<16x128xf32>
    %269 = arith.divf %267, %268 : vector<16x128xf32>
    %270 = vector.extract_strided_slice %263 {offsets = [0, 128], sizes = [16, 128], strides = [1, 1]} : vector<16x512xf32> to vector<16x128xf32>
    %271 = arith.negf %270 : vector<16x128xf32>
    %272 = math.exp %271 : vector<16x128xf32>
    %cst_98 = arith.constant 1.000000e+00 : f32
    %273 = vector.broadcast %cst_98 : f32 to vector<16x128xf32>
    %274 = arith.addf %273, %272 : vector<16x128xf32>
    %275 = arith.divf %273, %274 : vector<16x128xf32>
    %276 = vector.extract_strided_slice %263 {offsets = [0, 256], sizes = [16, 128], strides = [1, 1]} : vector<16x512xf32> to vector<16x128xf32>
    %277 = math.tanh %276 : vector<16x128xf32>
    %278 = vector.extract_strided_slice %263 {offsets = [0, 384], sizes = [16, 128], strides = [1, 1]} : vector<16x512xf32> to vector<16x128xf32>
    %279 = arith.negf %278 : vector<16x128xf32>
    %280 = math.exp %279 : vector<16x128xf32>
    %cst_99 = arith.constant 1.000000e+00 : f32
    %281 = vector.broadcast %cst_99 : f32 to vector<16x128xf32>
    %282 = arith.addf %281, %280 : vector<16x128xf32>
    %283 = arith.divf %281, %282 : vector<16x128xf32>
    %284 = arith.mulf %275, %222 : vector<16x128xf32>
    %285 = arith.mulf %269, %277 : vector<16x128xf32>
    %286 = arith.addf %284, %285 : vector<16x128xf32>
    %287 = math.tanh %286 : vector<16x128xf32>
    %288 = arith.mulf %283, %287 : vector<16x128xf32>
    %289 = arith.truncf %288 : vector<16x128xf32> to vector<16x128xbf16>
    %c0_100 = arith.constant 0 : index
    %c640 = arith.constant 640 : index
    %290 = vector.load %arg17[%c0_100, %c640] : memref<16x1280xbf16, #tpu.memory_space<vmem>>, vector<16x128xbf16>
    tpu.vector_store %arg17[%c0_100, %c640], %289 {strides = array<i32>} : memref<16x1280xbf16, #tpu.memory_space<vmem>>, vector<16x128xbf16>,
    %291 = vector.extract_strided_slice %90 {offsets = [48, 0], sizes = [16, 512], strides = [1, 1]} : vector<80x1024xf32> to vector<16x512xf32>
    %cst_101 = arith.constant dense<0.000000e+00> : vector<16x512xf32>
    %292 = tpu.matmul %257, %91, %cst_101 {dimension_numbers = #tpu.dot_dimension_numbers<[1], [0], [0], [1], [0, 0, 1, 1], [], []>} : vector<16x128xbf16>, vector<128x512xbf16>, vector<16x512xf32> -> vector<16x512xf32>
    %293 = arith.addf %291, %292 : vector<16x512xf32>
    %294 = vector.broadcast %93 : vector<1x512xf32> to vector<16x512xf32>
    %295 = arith.addf %293, %294 : vector<16x512xf32>
    %296 = vector.extract_strided_slice %295 {offsets = [0, 0], sizes = [16, 128], strides = [1, 1]} : vector<16x512xf32> to vector<16x128xf32>
    %297 = arith.negf %296 : vector<16x128xf32>
    %298 = math.exp %297 : vector<16x128xf32>
    %cst_102 = arith.constant 1.000000e+00 : f32
    %299 = vector.broadcast %cst_102 : f32 to vector<16x128xf32>
    %300 = arith.addf %299, %298 : vector<16x128xf32>
    %301 = arith.divf %299, %300 : vector<16x128xf32>
    %302 = vector.extract_strided_slice %295 {offsets = [0, 128], sizes = [16, 128], strides = [1, 1]} : vector<16x512xf32> to vector<16x128xf32>
    %303 = arith.negf %302 : vector<16x128xf32>
    %304 = math.exp %303 : vector<16x128xf32>
    %cst_103 = arith.constant 1.000000e+00 : f32
    %305 = vector.broadcast %cst_103 : f32 to vector<16x128xf32>
    %306 = arith.addf %305, %304 : vector<16x128xf32>
    %307 = arith.divf %305, %306 : vector<16x128xf32>
    %308 = vector.extract_strided_slice %295 {offsets = [0, 256], sizes = [16, 128], strides = [1, 1]} : vector<16x512xf32> to vector<16x128xf32>
    %309 = math.tanh %308 : vector<16x128xf32>
    %310 = vector.extract_strided_slice %295 {offsets = [0, 384], sizes = [16, 128], strides = [1, 1]} : vector<16x512xf32> to vector<16x128xf32>
    %311 = arith.negf %310 : vector<16x128xf32>
    %312 = math.exp %311 : vector<16x128xf32>
    %cst_104 = arith.constant 1.000000e+00 : f32
    %313 = vector.broadcast %cst_104 : f32 to vector<16x128xf32>
    %314 = arith.addf %313, %312 : vector<16x128xf32>
    %315 = arith.divf %313, %314 : vector<16x128xf32>
    %316 = arith.mulf %307, %254 : vector<16x128xf32>
    %317 = arith.mulf %301, %309 : vector<16x128xf32>
    %318 = arith.addf %316, %317 : vector<16x128xf32>
    %319 = math.tanh %318 : vector<16x128xf32>
    %320 = arith.mulf %315, %319 : vector<16x128xf32>
    %321 = arith.truncf %320 : vector<16x128xf32> to vector<16x128xbf16>
    %c0_105 = arith.constant 0 : index
    %c768 = arith.constant 768 : index
    %322 = vector.load %arg17[%c0_105, %c768] : memref<16x1280xbf16, #tpu.memory_space<vmem>>, vector<16x128xbf16>
    tpu.vector_store %arg17[%c0_105, %c768], %321 {strides = array<i32>} : memref<16x1280xbf16, #tpu.memory_space<vmem>>, vector<16x128xbf16>,
    %323 = vector.extract_strided_slice %90 {offsets = [16, 512], sizes = [16, 512], strides = [1, 1]} : vector<80x1024xf32> to vector<16x512xf32>
    %cst_106 = arith.constant dense<0.000000e+00> : vector<16x512xf32>
    %324 = tpu.matmul %289, %92, %cst_106 {dimension_numbers = #tpu.dot_dimension_numbers<[1], [0], [0], [1], [0, 0, 1, 1], [], []>} : vector<16x128xbf16>, vector<128x512xbf16>, vector<16x512xf32> -> vector<16x512xf32>
    %325 = arith.addf %323, %324 : vector<16x512xf32>
    %326 = vector.broadcast %94 : vector<1x512xf32> to vector<16x512xf32>
    %327 = arith.addf %325, %326 : vector<16x512xf32>
    %328 = vector.extract_strided_slice %327 {offsets = [0, 0], sizes = [16, 128], strides = [1, 1]} : vector<16x512xf32> to vector<16x128xf32>
    %329 = arith.negf %328 : vector<16x128xf32>
    %330 = math.exp %329 : vector<16x128xf32>
    %cst_107 = arith.constant 1.000000e+00 : f32
    %331 = vector.broadcast %cst_107 : f32 to vector<16x128xf32>
    %332 = arith.addf %331, %330 : vector<16x128xf32>
    %333 = arith.divf %331, %332 : vector<16x128xf32>
    %334 = vector.extract_strided_slice %327 {offsets = [0, 128], sizes = [16, 128], strides = [1, 1]} : vector<16x512xf32> to vector<16x128xf32>
    %335 = arith.negf %334 : vector<16x128xf32>
    %336 = math.exp %335 : vector<16x128xf32>
    %cst_108 = arith.constant 1.000000e+00 : f32
    %337 = vector.broadcast %cst_108 : f32 to vector<16x128xf32>
    %338 = arith.addf %337, %336 : vector<16x128xf32>
    %339 = arith.divf %337, %338 : vector<16x128xf32>
    %340 = vector.extract_strided_slice %327 {offsets = [0, 256], sizes = [16, 128], strides = [1, 1]} : vector<16x512xf32> to vector<16x128xf32>
    %341 = math.tanh %340 : vector<16x128xf32>
    %342 = vector.extract_strided_slice %327 {offsets = [0, 384], sizes = [16, 128], strides = [1, 1]} : vector<16x512xf32> to vector<16x128xf32>
    %343 = arith.negf %342 : vector<16x128xf32>
    %344 = math.exp %343 : vector<16x128xf32>
    %cst_109 = arith.constant 1.000000e+00 : f32
    %345 = vector.broadcast %cst_109 : f32 to vector<16x128xf32>
    %346 = arith.addf %345, %344 : vector<16x128xf32>
    %347 = arith.divf %345, %346 : vector<16x128xf32>
    %348 = arith.mulf %339, %286 : vector<16x128xf32>
    %349 = arith.mulf %333, %341 : vector<16x128xf32>
    %350 = arith.addf %348, %349 : vector<16x128xf32>
    %351 = math.tanh %350 : vector<16x128xf32>
    %352 = arith.mulf %347, %351 : vector<16x128xf32>
    %353 = arith.truncf %352 : vector<16x128xf32> to vector<16x128xbf16>
    %c0_110 = arith.constant 0 : index
    %c384 = arith.constant 384 : index
    %354 = vector.load %arg17[%c0_110, %c384] : memref<16x1280xbf16, #tpu.memory_space<vmem>>, vector<16x128xbf16>
    tpu.vector_store %arg17[%c0_110, %c384], %353 {strides = array<i32>} : memref<16x1280xbf16, #tpu.memory_space<vmem>>, vector<16x128xbf16>,
    %355 = vector.extract_strided_slice %90 {offsets = [64, 0], sizes = [16, 512], strides = [1, 1]} : vector<80x1024xf32> to vector<16x512xf32>
    %cst_111 = arith.constant dense<0.000000e+00> : vector<16x512xf32>
    %356 = tpu.matmul %321, %91, %cst_111 {dimension_numbers = #tpu.dot_dimension_numbers<[1], [0], [0], [1], [0, 0, 1, 1], [], []>} : vector<16x128xbf16>, vector<128x512xbf16>, vector<16x512xf32> -> vector<16x512xf32>
    %357 = arith.addf %355, %356 : vector<16x512xf32>
    %358 = vector.broadcast %93 : vector<1x512xf32> to vector<16x512xf32>
    %359 = arith.addf %357, %358 : vector<16x512xf32>
    %360 = vector.extract_strided_slice %359 {offsets = [0, 0], sizes = [16, 128], strides = [1, 1]} : vector<16x512xf32> to vector<16x128xf32>
    %361 = arith.negf %360 : vector<16x128xf32>
    %362 = math.exp %361 : vector<16x128xf32>
    %cst_112 = arith.constant 1.000000e+00 : f32
    %363 = vector.broadcast %cst_112 : f32 to vector<16x128xf32>
    %364 = arith.addf %363, %362 : vector<16x128xf32>
    %365 = arith.divf %363, %364 : vector<16x128xf32>
    %366 = vector.extract_strided_slice %359 {offsets = [0, 128], sizes = [16, 128], strides = [1, 1]} : vector<16x512xf32> to vector<16x128xf32>
    %367 = arith.negf %366 : vector<16x128xf32>
    %368 = math.exp %367 : vector<16x128xf32>
    %cst_113 = arith.constant 1.000000e+00 : f32
    %369 = vector.broadcast %cst_113 : f32 to vector<16x128xf32>
    %370 = arith.addf %369, %368 : vector<16x128xf32>
    %371 = arith.divf %369, %370 : vector<16x128xf32>
    %372 = vector.extract_strided_slice %359 {offsets = [0, 256], sizes = [16, 128], strides = [1, 1]} : vector<16x512xf32> to vector<16x128xf32>
    %373 = math.tanh %372 : vector<16x128xf32>
    %374 = vector.extract_strided_slice %359 {offsets = [0, 384], sizes = [16, 128], strides = [1, 1]} : vector<16x512xf32> to vector<16x128xf32>
    %375 = arith.negf %374 : vector<16x128xf32>
    %376 = math.exp %375 : vector<16x128xf32>
    %cst_114 = arith.constant 1.000000e+00 : f32
    %377 = vector.broadcast %cst_114 : f32 to vector<16x128xf32>
    %378 = arith.addf %377, %376 : vector<16x128xf32>
    %379 = arith.divf %377, %378 : vector<16x128xf32>
    %380 = arith.mulf %371, %318 : vector<16x128xf32>
    %381 = arith.mulf %365, %373 : vector<16x128xf32>
    %382 = arith.addf %380, %381 : vector<16x128xf32>
    %383 = math.tanh %382 : vector<16x128xf32>
    %384 = arith.mulf %379, %383 : vector<16x128xf32>
    %385 = arith.truncf %384 : vector<16x128xf32> to vector<16x128xbf16>
    %c0_115 = arith.constant 0 : index
    %c1024 = arith.constant 1024 : index
    %386 = vector.load %arg17[%c0_115, %c1024] : memref<16x1280xbf16, #tpu.memory_space<vmem>>, vector<16x128xbf16>
    tpu.vector_store %arg17[%c0_115, %c1024], %385 {strides = array<i32>} : memref<16x1280xbf16, #tpu.memory_space<vmem>>, vector<16x128xbf16>,
    %387 = vector.extract_strided_slice %90 {offsets = [0, 512], sizes = [16, 512], strides = [1, 1]} : vector<80x1024xf32> to vector<16x512xf32>
    %cst_116 = arith.constant dense<0.000000e+00> : vector<16x512xf32>
    %388 = tpu.matmul %353, %92, %cst_116 {dimension_numbers = #tpu.dot_dimension_numbers<[1], [0], [0], [1], [0, 0, 1, 1], [], []>} : vector<16x128xbf16>, vector<128x512xbf16>, vector<16x512xf32> -> vector<16x512xf32>
    %389 = arith.addf %387, %388 : vector<16x512xf32>
    %390 = vector.broadcast %94 : vector<1x512xf32> to vector<16x512xf32>
    %391 = arith.addf %389, %390 : vector<16x512xf32>
    %392 = vector.extract_strided_slice %391 {offsets = [0, 0], sizes = [16, 128], strides = [1, 1]} : vector<16x512xf32> to vector<16x128xf32>
    %393 = arith.negf %392 : vector<16x128xf32>
    %394 = math.exp %393 : vector<16x128xf32>
    %cst_117 = arith.constant 1.000000e+00 : f32
    %395 = vector.broadcast %cst_117 : f32 to vector<16x128xf32>
    %396 = arith.addf %395, %394 : vector<16x128xf32>
    %397 = arith.divf %395, %396 : vector<16x128xf32>
    %398 = vector.extract_strided_slice %391 {offsets = [0, 128], sizes = [16, 128], strides = [1, 1]} : vector<16x512xf32> to vector<16x128xf32>
    %399 = arith.negf %398 : vector<16x128xf32>
    %400 = math.exp %399 : vector<16x128xf32>
    %cst_118 = arith.constant 1.000000e+00 : f32
    %401 = vector.broadcast %cst_118 : f32 to vector<16x128xf32>
    %402 = arith.addf %401, %400 : vector<16x128xf32>
    %403 = arith.divf %401, %402 : vector<16x128xf32>
    %404 = vector.extract_strided_slice %391 {offsets = [0, 256], sizes = [16, 128], strides = [1, 1]} : vector<16x512xf32> to vector<16x128xf32>
    %405 = math.tanh %404 : vector<16x128xf32>
    %406 = vector.extract_strided_slice %391 {offsets = [0, 384], sizes = [16, 128], strides = [1, 1]} : vector<16x512xf32> to vector<16x128xf32>
    %407 = arith.negf %406 : vector<16x128xf32>
    %408 = math.exp %407 : vector<16x128xf32>
    %cst_119 = arith.constant 1.000000e+00 : f32
    %409 = vector.broadcast %cst_119 : f32 to vector<16x128xf32>
    %410 = arith.addf %409, %408 : vector<16x128xf32>
    %411 = arith.divf %409, %410 : vector<16x128xf32>
    %412 = arith.mulf %403, %350 : vector<16x128xf32>
    %413 = arith.mulf %397, %405 : vector<16x128xf32>
    %414 = arith.addf %412, %413 : vector<16x128xf32>
    %415 = math.tanh %414 : vector<16x128xf32>
    %416 = arith.mulf %411, %415 : vector<16x128xf32>
    %417 = arith.truncf %416 : vector<16x128xf32> to vector<16x128xbf16>
    %c0_120 = arith.constant 0 : index
    %c128_121 = arith.constant 128 : index
    %418 = vector.load %arg17[%c0_120, %c128_121] : memref<16x1280xbf16, #tpu.memory_space<vmem>>, vector<16x128xbf16>
    tpu.vector_store %arg17[%c0_120, %c128_121], %417 {strides = array<i32>} : memref<16x1280xbf16, #tpu.memory_space<vmem>>, vector<16x128xbf16>,
    %c0_122 = arith.constant 0 : index
    %c0_123 = arith.constant 0 : index
    %419 = vector.load %arg17[%c0_122, %c0_123] : memref<16x1280xbf16, #tpu.memory_space<vmem>>, vector<16x1280xbf16>
    %c0_124 = arith.constant 0 : index
    %c0_125 = arith.constant 0 : index
    %420 = vector.load %arg11[%c0_124, %c0_125] : memref<1280x128xbf16, #tpu.memory_space<vmem>>, vector<1280x128xbf16>
    %cst_126 = arith.constant dense<0.000000e+00> : vector<16x128xf32>
    %421 = tpu.matmul %419, %420, %cst_126 {dimension_numbers = #tpu.dot_dimension_numbers<[1], [0], [0], [1], [0, 0, 1, 1], [], []>} : vector<16x1280xbf16>, vector<1280x128xbf16>, vector<16x128xf32> -> vector<16x128xf32>
    %c0_127 = arith.constant 0 : index
    %c0_128 = arith.constant 0 : index
    %422 = vector.load %arg12[%c0_127, %c0_128] : memref<1x128xf32, #tpu.memory_space<vmem>>, vector<1x128xf32>
    %423 = vector.broadcast %422 : vector<1x128xf32> to vector<16x128xf32>
    %424 = arith.addf %421, %423 : vector<16x128xf32>
    %c0_129 = arith.constant 0 : index
    %c0_130 = arith.constant 0 : index
    %425 = vector.load %arg13[%c0_129, %c0_130] : memref<16x128xf32, #tpu.memory_space<vmem>>, vector<16x128xf32>
    tpu.vector_store %arg13[%c0_129, %c0_130], %424 {strides = array<i32>} : memref<16x128xf32, #tpu.memory_space<vmem>>, vector<16x128xf32>,
    return
  }
  func.func @transform_0(%arg0: i32) -> (i32, i32) {
    %c0_i32 = arith.constant 0 : i32
    %c0_i32_0 = arith.constant 0 : i32
    return %arg0, %c0_i32 : i32, i32
  }
  func.func @transform_1(%arg0: i32) -> (i32, i32) {
    %c0_i32 = arith.constant 0 : i32
    %c0_i32_0 = arith.constant 0 : i32
    %c0_i32_1 = arith.constant 0 : i32
    return %c0_i32, %c0_i32_0 : i32, i32
  }
  func.func @transform_2(%arg0: i32) -> (i32, i32) {
    %c0_i32 = arith.constant 0 : i32
    %c0_i32_0 = arith.constant 0 : i32
    %c0_i32_1 = arith.constant 0 : i32
    return %c0_i32, %c0_i32_0 : i32, i32
  }
  func.func @transform_3(%arg0: i32) -> (i32, i32) {
    %c0_i32 = arith.constant 0 : i32
    %c0_i32_0 = arith.constant 0 : i32
    %c0_i32_1 = arith.constant 0 : i32
    return %c0_i32, %c0_i32_0 : i32, i32
  }
  func.func @transform_4(%arg0: i32) -> (i32, i32) {
    %c0_i32 = arith.constant 0 : i32
    %c0_i32_0 = arith.constant 0 : i32
    %c0_i32_1 = arith.constant 0 : i32
    return %c0_i32, %c0_i32_0 : i32, i32
  }
  func.func @transform_5(%arg0: i32) -> (i32, i32) {
    %c0_i32 = arith.constant 0 : i32
    %c0_i32_0 = arith.constant 0 : i32
    %c0_i32_1 = arith.constant 0 : i32
    return %c0_i32, %c0_i32_0 : i32, i32
  }
  func.func @transform_6(%arg0: i32) -> (i32, i32) {
    %c0_i32 = arith.constant 0 : i32
    %c0_i32_0 = arith.constant 0 : i32
    %c0_i32_1 = arith.constant 0 : i32
    return %c0_i32, %c0_i32_0 : i32, i32
  }
  func.func @transform_7(%arg0: i32) -> (i32, i32) {
    %c0_i32 = arith.constant 0 : i32
    %c0_i32_0 = arith.constant 0 : i32
    %c0_i32_1 = arith.constant 0 : i32
    return %c0_i32, %c0_i32_0 : i32, i32
  }
  func.func @transform_8(%arg0: i32) -> (i32, i32) {
    %c0_i32 = arith.constant 0 : i32
    %c0_i32_0 = arith.constant 0 : i32
    %c0_i32_1 = arith.constant 0 : i32
    return %c0_i32, %c0_i32_0 : i32, i32
  }
  func.func @transform_9(%arg0: i32) -> (i32, i32) {
    %c0_i32 = arith.constant 0 : i32
    %c0_i32_0 = arith.constant 0 : i32
    %c0_i32_1 = arith.constant 0 : i32
    return %c0_i32, %c0_i32_0 : i32, i32
  }
  func.func @transform_10(%arg0: i32) -> (i32, i32) {
    %c0_i32 = arith.constant 0 : i32
    %c0_i32_0 = arith.constant 0 : i32
    %c0_i32_1 = arith.constant 0 : i32
    return %c0_i32, %c0_i32_0 : i32, i32
  }
  func.func @transform_11(%arg0: i32) -> (i32, i32) {
    %c0_i32 = arith.constant 0 : i32
    %c0_i32_0 = arith.constant 0 : i32
    %c0_i32_1 = arith.constant 0 : i32
    return %c0_i32, %c0_i32_0 : i32, i32
  }
  func.func @transform_12(%arg0: i32) -> (i32, i32) {
    %c0_i32 = arith.constant 0 : i32
    %c0_i32_0 = arith.constant 0 : i32
    return %arg0, %c0_i32 : i32, i32
  }
}

</mosaic_0001>

<bundles_post_ra>
// kernel: promoter_net_forward.1
= control target key start
LH: loop header
LB: loop body
LE: loop exit
PB: predicated region body
PF: predicated region fallthrough
CT: control target
= control target key end

     0   :  { %17 = vsyncpa [#allocation7], 0  ;;  %s8165_s0 = inlined_call_operand.vmem [shape: bf16[16,640], index: 0, kind: input, shape index: {}]   ;;  %s8166_s1 = inlined_call_operand.hbm [shape: bf16[128,128], index: 1, kind: input, shape index: {}]   ;;  %s8167_s2 = inlined_call_operand.vmem [shape: f32[1,128], index: 2, kind: input, shape index: {}]   ;;  %s8168_s3 = inlined_call_operand.hbm [shape: bf16[384,128], index: 3, kind: input, shape index: {}]   ;;  %s8169_s4 = inlined_call_operand.vmem [shape: f32[1,128], index: 4, kind: input, shape index: {}]   ;;  %s8170_s5 = inlined_call_operand.hbm [shape: bf16[128,1024], index: 5, kind: input, shape index: {}]   ;;  %s8171_s6 = inlined_call_operand.vmem [shape: bf16[128,512], index: 6, kind: input, shape index: {}]   ;;  %s8172_s7 = inlined_call_operand.hbm [shape: bf16[128,512], index: 7, kind: input, shape index: {}]   ;;  %s8173_s8 = inlined_call_operand.vmem [shape: f32[1,512], index: 8, kind: input, shape index: {}]   ;;  %s8174_s9 = inlined_call_operand.vmem [shape: f32[1,512], index: 9, kind: input, shape index: {}]   ;;  %s8175_s10 = inlined_call_operand.hbm [shape: bf16[1280,128], index: 10, kind: input, shape index: {}]   ;;  %s8176_s11 = inlined_call_operand.vmem [shape: f32[1,128], index: 11, kind: input, shape index: {}]   ;;  %s8177_s12 = inlined_call_operand.vmem [shape: f32[16,128], index: 12, kind: output, shape index: {}]  }
   0x1   :  { %18 = vsyncpa [#allocation9], 0 }
   0x2   :  { %19 = vsyncpa [#allocation12], 0  ;;  %s6382_s21 = smov [#allocation8]   ;;  %s6383_s23 = smov [#allocation11]  }
   0x3   :  { %s41_s22 = sshll.u32 %s6382_s21, 4  ;;  %s69_s24 = sshll.u32 %s6383_s23, 4  ;;  %s42_s22 = int_to_ptr.vmem [resolvable:$true] %s41_s22  ;;  %s6474_s24 = int_to_ptr.vmem [resolvable:$true] %s69_s24 }
   0x4   :  { %s6266_s27 = scalar_lea.hbm %s8168_s3, 3072 }
   0x5   :  { %p6267_p0 = scmp.ne.s32.totalorder %s8168_s3, %s6266_s27  ;;  %p6270_p1 = scmp.lt.u32.totalorder %s6266_s27, %s8168_s3 }
   0x7   :  { %p6272_p2 = pnand %p6270_p1, %p6267_p0 }
   0x9   :  { %6275 = shalt.err (!%p6272_p2)
}
   0xa   :  { %s6276_s14 = scalar_lea.vmem %s42_s22, 3072  ;;  %p6281_p4 = scmp.lt.s32.totalorder %s42_s22, %s42_s22 }
   0xb   :  { %p6277_p3 = scmp.ne.s32.totalorder %s42_s22, %s6276_s14  ;;  %p6282_p5 = scmp.lt.s32.totalorder %s6276_s14, %s6276_s14 }
   0xd   :  { %p6283_p6 = por %p6282_p5, %p6281_p4 }
   0xf   :  { %p6284_p7 = pnand %p6283_p6, %p6277_p3 }
  0x11   :  { %6287 = shalt.err (!%p6284_p7)
}
  0x12   :  { %s6384_s15 = smov 64   ;;  %s6385_s16 = smov 4  }
  0x13   :  { %47 = dma.hbm_to_vmem [thread:$0]  %s8168_s3, 3072, %s42_s22, [#allocation9], %s6384_s15, %s6384_s15, %s6385_s16  }
  0x14   :  { %s6288_s21 = scalar_lea.hbm %s8172_s7, 4096 }
  0x15   :  { %p6289_p8 = scmp.ne.s32.totalorder %s8172_s7, %s6288_s21  ;;  %p6292_p9 = scmp.lt.u32.totalorder %s6288_s21, %s8172_s7 }
  0x17   :  { %p6294_p10 = pnand %p6292_p9, %p6289_p8 }
  0x19   :  { %6297 = shalt.err (!%p6294_p10)
}
  0x1a   :  { %s6298_s28 = scalar_lea.vmem %s6474_s24, 4096  ;;  %p6303_p12 = scmp.lt.s32.totalorder %s6474_s24, %s6474_s24 }
  0x1b   :  { %p6299_p11 = scmp.ne.s32.totalorder %s6474_s24, %s6298_s28  ;;  %p6304_p13 = scmp.lt.s32.totalorder %s6298_s28, %s6298_s28 }
  0x1d   :  { %p6305_p0 = por %p6304_p13, %p6303_p12 }
  0x1f   :  { %p6306_p1 = pnand %p6305_p0, %p6299_p11 }
  0x21   :  { %6309 = shalt.err (!%p6306_p1)
}
  0x22   :  { %s6386_s3 = smov 256   ;;  %s6387_s22 = smov 16  }
  0x23   :  { %75 = dma.hbm_to_vmem [thread:$0]  %s8172_s7, 4096, %s6474_s24, [#allocation12], %s6386_s3, %s6386_s3, %s6387_s22  }
  0x24   :  { %s6388_s13 = smov [#allocation6]   ;;  %s6389_s17 = smov [#allocation10]  }
  0x25   :  { %s27_s14 = sshll.u32 %s6388_s13, 4  ;;  %s55_s18 = sshll.u32 %s6389_s17, 4  ;;  %s28_s14 = int_to_ptr.vmem [resolvable:$true] %s27_s14  ;;  %s6509_s18 = int_to_ptr.vmem [resolvable:$true] %s55_s18 }
  0x26   :  { %s6310_s21 = scalar_lea.hbm %s8166_s1, 1024 }
  0x27   :  { %p6311_p2 = scmp.ne.s32.totalorder %s8166_s1, %s6310_s21  ;;  %p6314_p3 = scmp.lt.u32.totalorder %s6310_s21, %s8166_s1 }
  0x29   :  { %p6316_p4 = pnand %p6314_p3, %p6311_p2 }
  0x2b   :  { %6319 = shalt.err (!%p6316_p4)
}
  0x2c   :  { %s6320_s7 = scalar_lea.vmem %s28_s14, 1024  ;;  %p6325_p6 = scmp.lt.s32.totalorder %s28_s14, %s28_s14 }
  0x2d   :  { %p6321_p5 = scmp.ne.s32.totalorder %s28_s14, %s6320_s7  ;;  %p6326_p7 = scmp.lt.s32.totalorder %s6320_s7, %s6320_s7 }
  0x2f   :  { %p6327_p8 = por %p6326_p7, %p6325_p6 }
  0x31   :  { %p6328_p9 = pnand %p6327_p8, %p6321_p5 }
  0x33   :  { %6331 = shalt.err (!%p6328_p9)
}
  0x34   :  { %33 = dma.hbm_to_vmem [thread:$0]  %s8166_s1, 1024, %s28_s14, [#allocation7], %s6384_s15, %s6384_s15, %s6385_s16  }
  0x35   :  { %s6332_s30 = scalar_lea.hbm %s8170_s5, 8192 }
  0x36   :  { %p6333_p10 = scmp.ne.s32.totalorder %s8170_s5, %s6332_s30  ;;  %p6336_p11 = scmp.lt.u32.totalorder %s6332_s30, %s8170_s5 }
  0x38   :  { %p6338_p12 = pnand %p6336_p11, %p6333_p10 }
  0x3a   :  { %6341 = shalt.err (!%p6338_p12)
}
  0x3b   :  { %s6342_s21 = scalar_lea.vmem %s6509_s18, 8192  ;;  %p6347_p0 = scmp.lt.s32.totalorder %s6509_s18, %s6509_s18 }
  0x3c   :  { %p6343_p13 = scmp.ne.s32.totalorder %s6509_s18, %s6342_s21  ;;  %p6348_p1 = scmp.lt.s32.totalorder %s6342_s21, %s6342_s21 }
  0x3e   :  { %p6349_p2 = por %p6348_p1, %p6347_p0 }
  0x40   :  { %p6350_p3 = pnand %p6349_p2, %p6343_p13 }
  0x42   :  { %6353 = shalt.err (!%p6350_p3)
}
  0x43   :  { %s6390_s1 = smov 512   ;;  %s6391_s14 = smov 32  }
  0x44   :  { %61 = dma.hbm_to_vmem [thread:$0]  %s8170_s5, 8192, %s6509_s18, [#allocation9], %s6390_s1, %s6390_s1, %s6391_s14  }
  0x45   :  { %s6392_s26 = smov [#allocation13]   ;;  %s6354_s28 = scalar_lea.hbm %s8175_s10, 10240 }
  0x46   :  { %s85_s27 = sshll.u32 %s6392_s26, 4  ;;  %p6355_p4 = scmp.ne.s32.totalorder %s8175_s10, %s6354_s28  ;;  %s86_s27 = int_to_ptr.vmem [resolvable:$true] %s85_s27 }
  0x47   :  { %p6358_p5 = scmp.lt.u32.totalorder %s6354_s28, %s8175_s10 }
  0x49   :  { %p6360_p6 = pnand %p6358_p5, %p6355_p4 }
  0x4b   :  { %6363 = shalt.err (!%p6360_p6)
}
  0x4c   :  { %s6364_s17 = scalar_lea.vmem %s86_s27, 10240  ;;  %p6369_p8 = scmp.lt.s32.totalorder %s86_s27, %s86_s27 }
  0x4d   :  { %p6365_p7 = scmp.ne.s32.totalorder %s86_s27, %s6364_s17  ;;  %p6370_p9 = scmp.lt.s32.totalorder %s6364_s17, %s6364_s17 }
  0x4f   :  { %p6371_p10 = por %p6370_p9, %p6369_p8 }
  0x51   :  { %p6372_p11 = pnand %p6371_p10, %p6365_p7 }
  0x53   :  { %6375 = shalt.err (!%p6372_p11)
}
  0x54   :  { %91 = dma.hbm_to_vmem [thread:$0]  %s8175_s10, 10240, %s86_s27, [#allocation12], %s6384_s15, %s6384_s15, %s6385_s16  }
  0x55   :  { %6376 = dma.done.wait [#allocation7], 1024  }
  0x56   :  { %6377 = vsyncadd [#allocation7], 4294966272 }
  0x57   :  { %6378 = dma.done.wait [#allocation9], 11264  }
  0x58   :  { %6379 = vsyncadd [#allocation9], 4294956032 }
  0x59   :  { %6380 = dma.done.wait [#allocation12], 14336  }
  0x5a   :  { %6381 = vsyncadd [#allocation12], 4294952960  ;;  %v6393_v0 = vmov 0.0   ;;  %vm6394_vm0 = vmmov 0   ;;  %v5667_v1 = vld [vmem:[%s8165_s0] ss:$20 sps:$4 sm:$0xff]  }
  0x5b   :  { %5373 = vmatprep.subr.bf16.mxu0 %v6393_v0  ;;  %5389 = vmatprep.mubr.msk.bf16.mxu0 %vm6394_vm0, %v6393_v0  ;;  %v5669_v2 = vld [vmem:[%s8165_s0 + $0x4] ss:$20 sps:$4 sm:$0xff]   ;;  %s6395_s10 = smov 98   ;;  %s6396_s16 = smov 68   ;;  %v5673_v3 = vld [vmem:[#allocation6] sm:$0xff]   ;;  %v5676_v6 = vld [vmem:[#allocation6 + $0x18] sm:$0xff]  }
  0x5c   :  { %126 = vrot.lane.b32.xlu0 %v5667_v1, %s6395_s10  ;;  %134 = vrot.lane.b32.xlu1 %v5667_v1, %s6396_s16  ;;  %v5674_v4 = vld [vmem:[#allocation6 + $0x8] sm:$0xff]   ;;  %v5675_v5 = vld [vmem:[#allocation6 + $0x10] sm:$0xff]   ;;  %s6397_s14 = smov 38   ;;  %s6398_s26 = smov 8   ;;  %v5677_v8 = vld [vmem:[#allocation6 + $0x20] sm:$0xff]   ;;  %vm130_vm1 = vcmask 801792  }
  0x5d   :  { %5374 = vmatpush3.bf16.msra.mxu0 %v5673_v3  ;;  %v5670_v7 = vld [vmem:[%s8165_s0 + $0x8] ss:$20 sps:$4 sm:$0xff]   ;;  %s6399_s27 = smov 106   ;;  %s6400_s7 = smov 76   ;;  %v5679_v10 = vld [vmem:[#allocation6 + $0x30] sm:$0xff]   ;;  %vm138_vm2 = vcmask 556032  }
  0x5e   :  { %5375 = vmatprep.subr.bf16.mxu0 %v6393_v0  ;;  %v5678_v9 = vld [vmem:[#allocation6 + $0x28] sm:$0xff]   ;;  %s6401_s24 = smov 46   ;;  %v5680_v11 = vld [vmem:[#allocation6 + $0x38] sm:$0xff]   ;;  %s6402_s29 = smov 114   ;;  %v5681_v13 = vld [vmem:[%s8165_s0 + $0x10] ss:$20 sps:$4 sm:$0xff]  }
  0x5f   :  { %v5672_v12 = vld [vmem:[%s8165_s0 + $0xc] ss:$20 sps:$4 sm:$0xff]   ;;  %s6403_s30 = smov 84   ;;  %s6404_s13 = smov 54   ;;  %vm146_vm3 = vcmask 310272   ;;  %vm154_vm4 = vcmask 64512  }
  0x60   :  { %128 = vrot.lane.b32.xlu0 %v5669_v2, %s6395_s10  ;;  %136 = vrot.lane.b32.xlu1 %v5669_v2, %s6396_s16  ;;  %s6405_s17 = smov 24   ;;  %s6406_s18 = smov 122   ;;  %vm167_vm5 = vcmask 867328   ;;  %vm175_vm6 = vcmask 621568   ;;  %vm183_vm7 = vcmask 375808   ;;  %vm191_vm8 = vcmask 130048  }
  0x61   :  { %5376 = vmatpush3.bf16.msra.mxu0 %v5674_v4  ;;  %s6407_s19 = smov 92   ;;  %vm202_vm9 = vcmask 932864   ;;  %vm210_vm10 = vcmask 687104   ;;  %vm218_vm11 = vcmask 441344   ;;  %vm226_vm12 = vcmask 195584  }
  0x62   :  { %5377 = vmatprep.subr.bf16.mxu0 %v6393_v0  ;;  %vm239_vm13 = vcmask 998400   ;;  %vm247_vm14 = vcmask 752640   ;;  %v6620_v60 = vld [vmem:[%s8167_s2] ss:$0 sm:$0xff]  ;;  %vm685_vm15 = vcmask 523264  }
  0x64   :  { %144 = vrot.lane.b32.xlu1 %v5669_v2, %s6397_s14  ;;  %142 = vrot.lane.b32.xlu0 %v5667_v1, %s6397_s14 }
  0x65   :  { %5378 = vmatpush3.bf16.msra.mxu0 %v5675_v5 }
  0x66   :  { %5379 = vmatprep.subr.bf16.mxu0 %v6393_v0 }
  0x68   :  { %152 = vrot.lane.b32.xlu1 %v5669_v2, %s6398_s26  ;;  %150 = vrot.lane.b32.xlu0 %v5667_v1, %s6398_s26 }
  0x69   :  { %5380 = vmatpush3.bf16.msra.mxu0 %v5676_v6 }
  0x6a   :  { %5381 = vmatprep.subr.bf16.mxu0 %v6393_v0 }
  0x6c   :  { %165 = vrot.lane.b32.xlu1 %v5670_v7, %s6399_s27  ;;  %163 = vrot.lane.b32.xlu0 %v5669_v2, %s6399_s27 }
  0x6d   :  { %5382 = vmatpush3.bf16.msra.mxu0 %v5677_v8 }
  0x6e   :  { %5383 = vmatprep.subr.bf16.mxu0 %v6393_v0 }
  0x70   :  { %173 = vrot.lane.b32.xlu1 %v5670_v7, %s6400_s7  ;;  %171 = vrot.lane.b32.xlu0 %v5669_v2, %s6400_s7 }
  0x71   :  { %5384 = vmatpush3.bf16.msra.mxu0 %v5678_v9 }
  0x72   :  { %5385 = vmatprep.subr.bf16.mxu0 %v6393_v0 }
  0x74   :  { %181 = vrot.lane.b32.xlu1 %v5670_v7, %s6401_s24  ;;  %179 = vrot.lane.b32.xlu0 %v5669_v2, %s6401_s24 }
  0x75   :  { %5386 = vmatpush3.bf16.msra.mxu0 %v5679_v10 }
  0x76   :  { %5387 = vmatprep.subr.bf16.mxu0 %v6393_v0 }
  0x78   :  { %189 = vrot.lane.b32.xlu1 %v5670_v7, %s6387_s22  ;;  %187 = vrot.lane.b32.xlu0 %v5669_v2, %s6387_s22 }
  0x79   :  { %5388 = vmatpush3.bf16.msra.mxu0 %v5680_v11 }
  0x7c   :  { %200 = vrot.lane.b32.xlu1 %v5672_v12, %s6402_s29  ;;  %198 = vrot.lane.b32.xlu0 %v5670_v7, %s6402_s29 }
  0x7d   :  { %5390 = vmatmul.mubr.bf16.vlgmr.msra.gmra.mrb[0].mxu0 %v5667_v1 }
  0x7e   :  { %5393 = vmatprep.mubr.msk.bf16.mxu0 %vm6394_vm0, %v6393_v0 }
  0x80   :  { %208 = vrot.lane.b32.xlu1 %v5672_v12, %s6403_s30  ;;  %206 = vrot.lane.b32.xlu0 %v5670_v7, %s6403_s30 }
  0x84   :  { %216 = vrot.lane.b32.xlu1 %v5672_v12, %s6404_s13  ;;  %214 = vrot.lane.b32.xlu0 %v5670_v7, %s6404_s13 }
  0x88   :  { %224 = vrot.lane.b32.xlu1 %v5672_v12, %s6405_s17  ;;  %222 = vrot.lane.b32.xlu0 %v5670_v7, %s6405_s17 }
  0x8c   :  { %235 = vrot.lane.b32.xlu0 %v5672_v12, %s6406_s18  ;;  %237 = vrot.lane.b32.xlu1 %v5681_v13, %s6406_s18 }
  0x90   :  { %245 = vrot.lane.b32.xlu1 %v5681_v13, %s6407_s19  ;;  %243 = vrot.lane.b32.xlu0 %v5672_v12, %s6407_s19 }
  0xce   :  { %v127_v14 = vpop.permute.xlu0 %126  ;;  %v135_v15 = vpop.permute.xlu1 %134 }
  0xd2   :  { %v129_v16 = vpop.permute.xlu0 %128  ;;  %v137_v18 = vpop.permute.xlu1 %136 }
  0xd3   :  { %v131_v17 = vsel %vm130_vm1, %v127_v14, %v129_v16  ;;  %v139_v19 = vsel %vm138_vm2, %v135_v15, %v137_v18 }
  0xd4   :  { %5394 = vmatmul.mubr.bf16.gmra.mrb[4].mxu0 %v131_v17 }
  0xd5   :  { %5397 = vmatprep.mubr.msk.bf16.mxu0 %vm6394_vm0, %v6393_v0 }
  0xd6   :  { %v145_v20 = vpop.permute.xlu1 %144  ;;  %v143_v21 = vpop.permute.xlu0 %142 }
  0xd7   :  { %v147_v22 = vsel %vm146_vm3, %v143_v21, %v145_v20 }
  0xda   :  { %v153_v23 = vpop.permute.xlu1 %152  ;;  %v151_v24 = vpop.permute.xlu0 %150 }
  0xdb   :  { %v155_v25 = vsel %vm154_vm4, %v151_v24, %v153_v23 }
  0xdc   :  { %5398 = vmatmul.mubr.bf16.gmra.mrb[8].mxu0 %v139_v19 }
  0xdd   :  { %5401 = vmatprep.mubr.msk.bf16.mxu0 %vm6394_vm0, %v6393_v0 }
  0xde   :  { %v166_v26 = vpop.permute.xlu1 %165  ;;  %v164_v27 = vpop.permute.xlu0 %163 }
  0xdf   :  { %v168_v28 = vsel %vm167_vm5, %v164_v27, %v166_v26 }
  0xe2   :  { %v174_v29 = vpop.permute.xlu1 %173  ;;  %v172_v30 = vpop.permute.xlu0 %171 }
  0xe3   :  { %v176_v31 = vsel %vm175_vm6, %v172_v30, %v174_v29 }
  0xe4   :  { %5402 = vmatmul.mubr.bf16.gmra.mrb[12].mxu0 %v147_v22 }
  0xe5   :  { %5405 = vmatprep.mubr.msk.bf16.mxu0 %vm6394_vm0, %v6393_v0 }
  0xe6   :  { %v182_v32 = vpop.permute.xlu1 %181  ;;  %v180_v33 = vpop.permute.xlu0 %179 }
  0xe7   :  { %v184_v34 = vsel %vm183_vm7, %v180_v33, %v182_v32 }
  0xea   :  { %v190_v35 = vpop.permute.xlu1 %189  ;;  %v188_v36 = vpop.permute.xlu0 %187 }
  0xeb   :  { %v192_v37 = vsel %vm191_vm8, %v188_v36, %v190_v35 }
  0xec   :  { %5406 = vmatmul.mubr.bf16.gmra.mrb[16].mxu0 %v155_v25 }
  0xed   :  { %5409 = vmatprep.mubr.msk.bf16.mxu0 %vm6394_vm0, %v6393_v0 }
  0xee   :  { %v201_v38 = vpop.permute.xlu1 %200  ;;  %v199_v39 = vpop.permute.xlu0 %198 }
  0xef   :  { %v203_v40 = vsel %vm202_vm9, %v199_v39, %v201_v38 }
  0xf2   :  { %v209_v41 = vpop.permute.xlu1 %208  ;;  %v207_v42 = vpop.permute.xlu0 %206 }
  0xf3   :  { %v211_v43 = vsel %vm210_vm10, %v207_v42, %v209_v41 }
  0xf4   :  { %5410 = vmatmul.mubr.bf16.gmra.mrb[20].mxu0 %v168_v28 }
  0xf5   :  { %5413 = vmatprep.mubr.msk.bf16.mxu0 %vm6394_vm0, %v6393_v0 }
  0xf6   :  { %v217_v44 = vpop.permute.xlu1 %216  ;;  %v215_v45 = vpop.permute.xlu0 %214 }
  0xf7   :  { %v219_v46 = vsel %vm218_vm11, %v215_v45, %v217_v44 }
  0xfa   :  { %v225_v47 = vpop.permute.xlu1 %224  ;;  %v223_v48 = vpop.permute.xlu0 %222 }
  0xfb   :  { %v227_v49 = vsel %vm226_vm12, %v223_v48, %v225_v47 }
  0xfc   :  { %5414 = vmatmul.mubr.bf16.gmra.mrb[24].mxu0 %v176_v31 }
  0xfd   :  { %5417 = vmatprep.mubr.msk.bf16.mxu0 %vm6394_vm0, %v6393_v0 }
  0xfe   :  { %v238_v50 = vpop.permute.xlu1 %237  ;;  %v236_v51 = vpop.permute.xlu0 %235 }
  0xff   :  { %v240_v52 = vsel %vm239_vm13, %v236_v51, %v238_v50 }
 0x102   :  { %v246_v53 = vpop.permute.xlu1 %245  ;;  %v244_v54 = vpop.permute.xlu0 %243 }
 0x103   :  { %v248_v55 = vsel %vm247_vm14, %v244_v54, %v246_v53 }
 0x104   :  { %5418 = vmatmul.mubr.bf16.gmra.mrb[28].mxu0 %v184_v34 }
 0x105   :  { %5421 = vmatprep.mubr.msk.bf16.mxu0 %vm6394_vm0, %v6393_v0 }
 0x10c   :  { %5422 = vmatmul.mubr.bf16.gmra.mrb[32].mxu0 %v192_v37 }
 0x10d   :  { %5425 = vmatprep.mubr.msk.bf16.mxu0 %vm6394_vm0, %v6393_v0 }
 0x114   :  { %5426 = vmatmul.mubr.bf16.gmra.mrb[36].mxu0 %v203_v40 }
 0x115   :  { %5429 = vmatprep.mubr.msk.bf16.mxu0 %vm6394_vm0, %v6393_v0 }
 0x11c   :  { %5430 = vmatmul.mubr.bf16.gmra.mrb[40].mxu0 %v211_v43 }
 0x11d   :  { %5433 = vmatprep.mubr.msk.bf16.mxu0 %vm6394_vm0, %v6393_v0 }
 0x124   :  { %5434 = vmatmul.mubr.bf16.gmra.mrb[44].mxu0 %v219_v46 }
 0x125   :  { %5437 = vmatprep.mubr.msk.bf16.mxu0 %vm6394_vm0, %v6393_v0 }
 0x12c   :  { %5438 = vmatmul.mubr.bf16.gmra.mrb[48].mxu0 %v227_v49 }
 0x12d   :  { %5441 = vmatprep.mubr.msk.bf16.mxu0 %vm6394_vm0, %v6393_v0 }
 0x134   :  { %5442 = vmatmul.mubr.bf16.gmra.mrb[52].mxu0 %v240_v52 }
 0x135   :  { %5445 = vmatprep.mubr.msk.bf16.mxu0 %vm6394_vm0, %v6393_v0  ;;  %vm736_vm0 = vcmask 1048064  }
 0x13c   :  { %5446 = vmatmul.mubr.bf16.gmra.mrb[56].mxu0 %v248_v55 }
 0x150   :  { %v6613_v56 = vpop.f32.mrb[0].mxu0 }
 0x151   :  { %v5391_v57 = vpop.f32.mrb[1].mxu0 }
 0x152   :  { %v6615_v58 = vpop.f32.mrb[2].mxu0 }
 0x153   :  { %v5392_v59 = vpop.f32.mrb[3].mxu0 }
 0x1a7   :  { %v379_v61 = vpop.f32.mrb[4].mxu0 }
 0x1a8   :  { %v6623_v62 = vadd.f32 %v6620_v60, %v379_v61  ;;  %v5395_v63 = vpop.f32.mrb[5].mxu0 }
 0x1a9   :  { %v382_v0 = vpop.f32.mrb[6].mxu0 }
 0x1aa   :  { %v6626_v1 = vadd.f32 %v6620_v60, %v382_v0  ;;  %v5396_v2 = vpop.f32.mrb[7].mxu0  ;;  %v492_v3 = vmax.f32 %v6623_v62, 0.0 }
 0x1ac   :  { %v493_v4 = vmax.f32 %v6626_v1, 0.0 }
 0x1ae   :  { %v5597_v5 = vpack.i.bf16 %v493_v4, %v492_v3 }
 0x1af   :  { %v387_v6 = vpop.f32.mrb[8].mxu0 }
 0x1b0   :  { %v6635_v7 = vadd.f32 %v6620_v60, %v387_v6  ;;  %5598 = vrot.lane.b32.xlu1 %v5597_v5, %s6384_s15  ;;  %v5399_v8 = vpop.f32.mrb[9].mxu0 }
 0x1b1   :  { %v390_v9 = vpop.f32.mrb[10].mxu0 }
 0x1b2   :  { %v6639_v10 = vadd.f32 %v6620_v60, %v390_v9  ;;  %v5400_v11 = vpop.f32.mrb[11].mxu0  ;;  %v494_v12 = vmax.f32 %v6635_v7, 0.0 }
 0x1b4   :  { %v495_v13 = vmax.f32 %v6639_v10, 0.0 }
 0x1b6   :  { %v5607_v14 = vpack.i.bf16 %v495_v13, %v494_v12 }
 0x1b7   :  { %v395_v15 = vpop.f32.mrb[12].mxu0 }
 0x1b8   :  { %v6648_v16 = vadd.f32 %v6620_v60, %v395_v15  ;;  %5608 = vrot.lane.b32.xlu1 %v5607_v14, %s6384_s15  ;;  %v5403_v17 = vpop.f32.mrb[13].mxu0 }
 0x1b9   :  { %v398_v18 = vpop.f32.mrb[14].mxu0 }
 0x1ba   :  { %v6652_v19 = vadd.f32 %v6620_v60, %v398_v18  ;;  %v5404_v20 = vpop.f32.mrb[15].mxu0  ;;  %v496_v21 = vmax.f32 %v6648_v16, 0.0 }
 0x1bc   :  { %v497_v22 = vmax.f32 %v6652_v19, 0.0 }
 0x1be   :  { %v5592_v23 = vpack.i.bf16 %v497_v22, %v496_v21 }
 0x1bf   :  { %v403_v24 = vpop.f32.mrb[16].mxu0 }
 0x1c0   :  { %v6661_v25 = vadd.f32 %v6620_v60, %v403_v24  ;;  %5593 = vrot.lane.b32.xlu0 %v5592_v23, %s6384_s15  ;;  %v5407_v26 = vpop.f32.mrb[17].mxu0  ;;  %v6731_v24 = vadd.f32 %v6620_v60, %v6613_v56 }
 0x1c1   :  { %v406_v27 = vpop.f32.mrb[18].mxu0  ;;  %v6735_v26 = vadd.f32 %v6620_v60, %v6615_v58 }
 0x1c2   :  { %v6665_v28 = vadd.f32 %v6620_v60, %v406_v27  ;;  %v5408_v29 = vpop.f32.mrb[19].mxu0  ;;  %v498_v30 = vmax.f32 %v6661_v25, 0.0 }
 0x1c4   :  { %v499_v31 = vmax.f32 %v6665_v28, 0.0 }
 0x1c6   :  { %v5602_v32 = vpack.i.bf16 %v499_v31, %v498_v30 }
 0x1c7   :  { %v411_v33 = vpop.f32.mrb[20].mxu0 }
 0x1c8   :  { %v6674_v34 = vadd.f32 %v6620_v60, %v411_v33  ;;  %5603 = vrot.lane.b32.xlu0 %v5602_v32, %s6384_s15  ;;  %v5411_v35 = vpop.f32.mrb[21].mxu0 }
 0x1c9   :  { %v414_v36 = vpop.f32.mrb[22].mxu0  ;;  %v490_v35 = vmax.f32 %v6731_v24, 0.0 }
 0x1ca   :  { %v500_v37 = vmax.f32 %v6674_v34, 0.0  ;;  %v6679_v38 = vadd.f32 %v6620_v60, %v414_v36  ;;  %v5412_v39 = vpop.f32.mrb[23].mxu0  ;;  %v491_v36 = vmax.f32 %v6735_v26, 0.0 }
 0x1cc   :  { %v501_v40 = vmax.f32 %v6679_v38, 0.0 }
 0x1ce   :  { %v5612_v41 = vpack.i.bf16 %v501_v40, %v500_v37 }
 0x1cf   :  { %v419_v42 = vpop.f32.mrb[24].mxu0 }
 0x1d0   :  { %v6687_v43 = vadd.f32 %v6620_v60, %v419_v42  ;;  %5613 = vrot.lane.b32.xlu0 %v5612_v41, %s6384_s15  ;;  %v5415_v44 = vpop.f32.mrb[25].mxu0 }
 0x1d1   :  { %v422_v45 = vpop.f32.mrb[26].mxu0  ;;  %v5682_v44 = vld [vmem:[#allocation8 + $0x40] sm:$0xff]  }
 0x1d2   :  { %v502_v46 = vmax.f32 %v6687_v43, 0.0  ;;  %v6692_v47 = vadd.f32 %v6620_v60, %v422_v45  ;;  %v5416_v48 = vpop.f32.mrb[27].mxu0  ;;  %v5683_v45 = vld [vmem:[#allocation8] sm:$0xff]   ;;  %5169 = vmatprep.subr.bf16.mxu1 %v5682_v44 }
 0x1d3   :  { %v5684_v48 = vld [vmem:[#allocation8 + $0x48] sm:$0xff]   ;;  %5170 = vmatpush3.bf16.msra.mxu1 %v5683_v45 }
 0x1d4   :  { %v503_v49 = vmax.f32 %v6692_v47, 0.0  ;;  %5171 = vmatprep.subr.bf16.mxu1 %v5684_v48 }
 0x1d6   :  { %v5617_v50 = vpack.i.bf16 %v503_v49, %v502_v46 }
 0x1d7   :  { %v427_v51 = vpop.f32.mrb[28].mxu0 }
 0x1d8   :  { %v6700_v52 = vadd.f32 %v6620_v60, %v427_v51  ;;  %5618 = vrot.lane.b32.xlu1 %v5617_v50, %s6384_s15  ;;  %v5419_v53 = vpop.f32.mrb[29].mxu0 }
 0x1d9   :  { %v430_v54 = vpop.f32.mrb[30].mxu0  ;;  %v5637_v53 = vpack.i.bf16 %v491_v36, %v490_v35 }
 0x1da   :  { %v504_v55 = vmax.f32 %v6700_v52, 0.0  ;;  %v6705_v57 = vadd.f32 %v6620_v60, %v430_v54  ;;  %v5420_v59 = vpop.f32.mrb[31].mxu0 }
 0x1dc   :  { %v505_v61 = vmax.f32 %v6705_v57, 0.0 }
 0x1de   :  { %v5622_v63 = vpack.i.bf16 %v505_v61, %v504_v55 }
 0x1df   :  { %v435_v0 = vpop.f32.mrb[32].mxu0 }
 0x1e0   :  { %v6713_v2 = vadd.f32 %v6620_v60, %v435_v0  ;;  %5623 = vrot.lane.b32.xlu0 %v5622_v63, %s6384_s15  ;;  %v5423_v5 = vpop.f32.mrb[33].mxu0  ;;  %v5685_v63 = vld [vmem:[#allocation8 + $0x8] sm:$0xff]  }
 0x1e1   :  { %v438_v6 = vpop.f32.mrb[34].mxu0  ;;  %5172 = vmatpush3.bf16.msra.mxu1 %v5685_v63  ;;  %v5687_v63 = vld [vmem:[#allocation8 + $0x10] sm:$0xff]  }
 0x1e2   :  { %v506_v8 = vmax.f32 %v6713_v2, 0.0  ;;  %v6718_v9 = vadd.f32 %v6620_v60, %v438_v6  ;;  %v5424_v11 = vpop.f32.mrb[35].mxu0 }
 0x1e4   :  { %v507_v14 = vmax.f32 %v6718_v9, 0.0 }
 0x1e6   :  { %v5627_v15 = vpack.i.bf16 %v507_v14, %v506_v8 }
 0x1e7   :  { %v443_v17 = vpop.f32.mrb[36].mxu0 }
 0x1e8   :  { %v6726_v18 = vadd.f32 %v6620_v60, %v443_v17  ;;  %5628 = vrot.lane.b32.xlu1 %v5627_v15, %s6384_s15  ;;  %v5427_v20 = vpop.f32.mrb[37].mxu0 }
 0x1e9   :  { %v446_v23 = vpop.f32.mrb[38].mxu0 }
 0x1ea   :  { %v508_v27 = vmax.f32 %v6726_v18, 0.0  ;;  %v6739_v29 = vadd.f32 %v6620_v60, %v446_v23  ;;  %v5428_v32 = vpop.f32.mrb[39].mxu0 }
 0x1ec   :  { %v509_v33 = vmax.f32 %v6739_v29, 0.0 }
 0x1ee   :  { %v5632_v56 = vpack.i.bf16 %v509_v33, %v508_v27 }
 0x1ef   :  { %v451_v39 = vpop.f32.mrb[40].mxu0 }
 0x1f0   :  { %v6749_v58 = vadd.f32 %v6620_v60, %v451_v39  ;;  %5633 = vrot.lane.b32.xlu0 %v5632_v56, %s6384_s15  ;;  %v5431_v41 = vpop.f32.mrb[41].mxu0 }
 0x1f1   :  { %v454_v42 = vpop.f32.mrb[42].mxu0 }
 0x1f2   :  { %v8178_v50 = vmax.f32 %v6749_v58, 0.0  ;;  %v6754_v51 = vadd.f32 %v6620_v60, %v454_v42  ;;  %v5432_v54 = vpop.f32.mrb[43].mxu0 }
 0x1f3   :  { %v5686_v54 = vld [vmem:[#allocation8 + $0x50] sm:$0xff]  }
 0x1f4   :  { %v8179_v59 = vmax.f32 %v6754_v51, 0.0  ;;  %5638 = vrot.lane.b32.xlu0 %v5637_v53, %s6384_s15  ;;  %5173 = vmatprep.subr.bf16.mxu1 %v5686_v54  ;;  %v5693_v54 = vld [vmem:[#allocation8 + $0x28] sm:$0xff]  }
 0x1f5   :  { %5174 = vmatpush3.bf16.msra.mxu1 %v5687_v63 }
 0x1f6   :  { %v5642_v0 = vpack.i.bf16 %v8179_v59, %v8178_v50  ;;  %v5695_v59 = vld [vmem:[#allocation8 + $0x30] sm:$0xff]  }
 0x1f7   :  { %v459_v5 = vpop.f32.mrb[44].mxu0 }
 0x1f8   :  { %5643 = vrot.lane.b32.xlu1 %v5642_v0, %s6384_s15  ;;  %v5435_v6 = vpop.f32.mrb[45].mxu0  ;;  %v5688_v0 = vld [vmem:[#allocation8 + $0x58] sm:$0xff]  }
 0x1f9   :  { %v462_v11 = vpop.f32.mrb[46].mxu0  ;;  %v5689_v6 = vld [vmem:[#allocation8 + $0x18] sm:$0xff]   ;;  %5175 = vmatprep.subr.bf16.mxu1 %v5688_v0 }
 0x1fa   :  { %v5436_v15 = vpop.f32.mrb[47].mxu0  ;;  %5176 = vmatpush3.bf16.msra.mxu1 %v5689_v6  ;;  %v6795_v10 = vadd.f32 %v6620_v60, %v462_v11 }
 0x1fb   :  { %v5690_v15 = vld [vmem:[#allocation8 + $0x60] sm:$0xff]  }
 0x1fc   :  { %5177 = vmatprep.subr.bf16.mxu1 %v5690_v15 }
 0x1ff   :  { %v6767_v17 = vpop.f32.mrb[48].mxu0 }
 0x200   :  { %v5439_v20 = vpop.f32.mrb[49].mxu0  ;;  %v6812_v16 = vadd.f32 %v6620_v60, %v6767_v17 }
 0x201   :  { %v6769_v23 = vpop.f32.mrb[50].mxu0 }
 0x202   :  { %v5440_v32 = vpop.f32.mrb[51].mxu0  ;;  %v6816_v11 = vadd.f32 %v6620_v60, %v6769_v23 }
 0x203   :  { %v5691_v32 = vld [vmem:[#allocation8 + $0x20] sm:$0xff]  }
 0x204   :  { %5178 = vmatpush3.bf16.msra.mxu1 %v5691_v32  ;;  %v6792_v32 = vadd.f32 %v6620_v60, %v459_v5  ;;  %v515_v17 = vmax.f32 %v6816_v11, 0.0 }
 0x207   :  { %v6771_v56 = vpop.f32.mrb[52].mxu0 }
 0x208   :  { %v5443_v39 = vpop.f32.mrb[53].mxu0 }
 0x209   :  { %v6773_v41 = vpop.f32.mrb[54].mxu0 }
 0x20a   :  { %v5444_v42 = vpop.f32.mrb[55].mxu0 }
 0x20b   :  { %v5692_v42 = vld [vmem:[#allocation8 + $0x68] sm:$0xff]  }
 0x20c   :  { %5179 = vmatprep.subr.bf16.mxu1 %v5692_v42  ;;  %v512_v42 = vmax.f32 %v6792_v32, 0.0 }
 0x20d   :  { %5180 = vmatpush3.bf16.msra.mxu1 %v5693_v54 }
 0x20f   :  { %v6775_v44 = vpop.f32.mrb[56].mxu0 }
 0x210   :  { %v5447_v45 = vpop.f32.mrb[57].mxu0  ;;  %v6879_v9 = vadd.f32 %v6620_v60, %v6775_v44 }
 0x211   :  { %v6777_v48 = vpop.f32.mrb[58].mxu0 }
 0x212   :  { %v5448_v53 = vpop.f32.mrb[59].mxu0  ;;  %v6883_v2 = vadd.f32 %v6620_v60, %v6777_v48  ;;  %v518_v44 = vmax.f32 %v6879_v9, 0.0 }
 0x222   :  { %v5599_v20 = vpop.permute.xlu1 %5598 }
 0x223   :  { %v5601_v39 = vunpack.i.h.bf16 %v5599_v20  ;;  %v5600_v50 = vunpack.i.l.bf16 %v5599_v20  ;;  %v5694_v20 = vld [vmem:[#allocation8 + $0x70] sm:$0xff]  }
 0x224   :  { %5181 = vmatprep.subr.bf16.mxu1 %v5694_v20 }
 0x225   :  { %v642_v45 = vmax.f32 %v492_v3, %v5600_v50  ;;  %v643_v53 = vmax.f32 %v493_v4, %v5601_v39  ;;  %5182 = vmatpush3.bf16.msra.mxu1 %v5695_v59  ;;  %v5696_v4 = vld [vmem:[#allocation8 + $0x78] sm:$0xff]  }
 0x226   :  { %v5697_v50 = vld [vmem:[#allocation8 + $0x38] sm:$0xff]   ;;  %5183 = vmatprep.subr.bf16.mxu1 %v5696_v4 }
 0x227   :  { %v671_v63 = vpack.c.bf16 %v643_v53, %v642_v45  ;;  %v513_v45 = vmax.f32 %v6795_v10, 0.0  ;;  %v5700_v10 = vld [vmem:[#allocation8 + $0x90] sm:$0xff]  }
 0x229   :  { %687 = vst.msk [vmem:[#allocation3 + $0x18] sm:$0xff] %vm685_vm15, %v671_v63  ;;  %706 = vrot.lane.b32.xlu0 %v671_v63, %s6384_s15  ;;  %5184 = vmatpush3.bf16.msra.mxu1 %v5697_v50  ;;  %v5647_v19 = vpack.i.bf16 %v513_v45, %v512_v42 }
 0x22a   :  { %v5609_v0 = vpop.permute.xlu1 %5608 }
 0x22b   :  { %v5611_v6 = vunpack.i.h.bf16 %v5609_v0  ;;  %v5610_v15 = vunpack.i.l.bf16 %v5609_v0  ;;  %v514_v0 = vmax.f32 %v6812_v16, 0.0  ;;  %v5702_v16 = vld [vmem:[#allocation8 + $0xa0] sm:$0xff]  }
 0x22d   :  { %v645_v62 = vmax.f32 %v495_v13, %v5611_v6  ;;  %v644_v1 = vmax.f32 %v494_v12, %v5610_v15 }
 0x22f   :  { %v672_v3 = vpack.c.bf16 %v645_v62, %v644_v1 }
 0x231   :  { %688 = vst.msk [vmem:[#allocation3 + $0x30] sm:$0xff] %vm685_vm15, %v672_v3  ;;  %747 = vst.msk [vmem:[#allocation3 + $0x8] sm:$0xff] %vm685_vm15, %v672_v3 }
 0x232   :  { %v5594_v39 = vpop.permute.xlu0 %5593 }
 0x233   :  { %v5596_v7 = vunpack.i.h.bf16 %v5594_v39  ;;  %v5595_v12 = vunpack.i.l.bf16 %v5594_v39 }
 0x235   :  { %v647_v13 = vmax.f32 %v497_v22, %v5596_v7  ;;  %v646_v59 = vmax.f32 %v496_v21, %v5595_v12 }
 0x237   :  { %v673_v53 = vpack.c.bf16 %v647_v13, %v646_v59 }
 0x239   :  { %710 = vrot.lane.b32.xlu1 %v673_v53, %s6384_s15  ;;  %689 = vst.msk [vmem:[#allocation3 + $0x48] sm:$0xff] %vm685_vm15, %v673_v53  ;;  %748 = vst.msk [vmem:[#allocation3 + $0x20] sm:$0xff] %vm685_vm15, %v673_v53 }
 0x23a   :  { %v5604_v5 = vpop.permute.xlu0 %5603 }
 0x23b   :  { %v5606_v21 = vunpack.i.h.bf16 %v5604_v5  ;;  %v5605_v22 = vunpack.i.l.bf16 %v5604_v5 }
 0x23d   :  { %v649_v54 = vmax.f32 %v499_v31, %v5606_v21  ;;  %v648_v63 = vmax.f32 %v498_v30, %v5605_v22  ;;  %5648 = vrot.lane.b32.xlu1 %v5647_v19, %s6384_s15  ;;  %v5652_v31 = vpack.i.bf16 %v515_v17, %v514_v0  ;;  %v519_v19 = vmax.f32 %v6883_v2, 0.0 }
 0x23f   :  { %v674_v6 = vpack.c.bf16 %v649_v54, %v648_v63  ;;  %v5662_v29 = vpack.i.bf16 %v519_v19, %v518_v44 }
 0x241   :  { %690 = vst.msk [vmem:[#allocation3 + $0x60] sm:$0xff] %vm685_vm15, %v674_v6  ;;  %749 = vst.msk [vmem:[#allocation3 + $0x38] sm:$0xff] %vm685_vm15, %v674_v6  ;;  %712 = vrot.lane.b32.xlu0 %v674_v6, %s6384_s15  ;;  %708 = vrot.lane.b32.xlu1 %v672_v3, %s6384_s15 }
 0x242   :  { %775 = vst.msk [vmem:[#allocation3 + $0x10] sm:$0xff] %vm685_vm15, %v674_v6  ;;  %v5614_v28 = vpop.permute.xlu0 %5613 }
 0x243   :  { %v5616_v25 = vunpack.i.h.bf16 %v5614_v28  ;;  %v5615_v30 = vunpack.i.l.bf16 %v5614_v28  ;;  %v8246_v28 = vmax.f32 %v6754_v51, 0.0 }
 0x245   :  { %v651_v23 = vmax.f32 %v501_v40, %v5616_v25  ;;  %v650_v15 = vmax.f32 %v500_v37, %v5615_v30  ;;  %5653 = vrot.lane.b32.xlu0 %v5652_v31, %s6384_s15 }
 0x247   :  { %v675_v20 = vpack.c.bf16 %v651_v23, %v650_v15 }
 0x249   :  { %691 = vst.msk [vmem:[#allocation3 + $0x78] sm:$0xff] %vm685_vm15, %v675_v20  ;;  %750 = vst.msk [vmem:[#allocation3 + $0x50] sm:$0xff] %vm685_vm15, %v675_v20  ;;  %714 = vrot.lane.b32.xlu1 %v675_v20, %s6384_s15 }
 0x24a   :  { %776 = vst.msk [vmem:[#allocation3 + $0x28] sm:$0xff] %vm685_vm15, %v675_v20  ;;  %v5619_v62 = vpop.permute.xlu1 %5618 }
 0x24b   :  { %v5621_v1 = vunpack.i.h.bf16 %v5619_v62  ;;  %v5620_v3 = vunpack.i.l.bf16 %v5619_v62 }
 0x24d   :  { %v653_v38 = vmax.f32 %v503_v49, %v5621_v1  ;;  %v652_v34 = vmax.f32 %v502_v46, %v5620_v3  ;;  %v6861_v46 = vadd.f32 %v6620_v60, %v6771_v56  ;;  %v6865_v49 = vadd.f32 %v6620_v60, %v6773_v41 }
 0x24f   :  { %v676_v37 = vpack.c.bf16 %v653_v38, %v652_v34  ;;  %v516_v12 = vmax.f32 %v6861_v46, 0.0  ;;  %v517_v13 = vmax.f32 %v6865_v49, 0.0  ;;  %v5699_v38 = vld [vmem:[#allocation8 + $0x88] sm:$0xff]  }
 0x251   :  { %692 = vst.msk [vmem:[#allocation3 + $0x90] sm:$0xff] %vm685_vm15, %v676_v37  ;;  %751 = vst.msk [vmem:[#allocation3 + $0x68] sm:$0xff] %vm685_vm15, %v676_v37  ;;  %716 = vrot.lane.b32.xlu0 %v676_v37, %s6384_s15 }
 0x252   :  { %777 = vst.msk [vmem:[#allocation3 + $0x40] sm:$0xff] %vm685_vm15, %v676_v37  ;;  %v5624_v40 = vpop.permute.xlu0 %5623 }
 0x253   :  { %v5626_v4 = vunpack.i.h.bf16 %v5624_v40  ;;  %v5625_v50 = vunpack.i.l.bf16 %v5624_v40 }
 0x255   :  { %v655_v39 = vmax.f32 %v505_v61, %v5626_v4  ;;  %v654_v47 = vmax.f32 %v504_v55, %v5625_v50 }
 0x257   :  { %v677_v43 = vpack.c.bf16 %v655_v39, %v654_v47 }
 0x259   :  { %693 = vst.msk [vmem:[#allocation3 + $0xa8] sm:$0xff] %vm685_vm15, %v677_v43  ;;  %752 = vst.msk [vmem:[#allocation3 + $0x80] sm:$0xff] %vm685_vm15, %v677_v43  ;;  %718 = vrot.lane.b32.xlu1 %v677_v43, %s6384_s15 }
 0x25a   :  { %778 = vst.msk [vmem:[#allocation3 + $0x58] sm:$0xff] %vm685_vm15, %v677_v43  ;;  %v5629_v57 = vpop.permute.xlu1 %5628  ;;  %v5701_v43 = vld [vmem:[#allocation8 + $0x98] sm:$0xff]  }
 0x25b   :  { %v5631_v52 = vunpack.i.h.bf16 %v5629_v57  ;;  %v5630_v55 = vunpack.i.l.bf16 %v5629_v57 }
 0x25d   :  { %v657_v61 = vmax.f32 %v507_v14, %v5631_v52  ;;  %v656_v7 = vmax.f32 %v506_v8, %v5630_v55  ;;  %v5657_v8 = vpack.i.bf16 %v517_v13, %v516_v12  ;;  %v5704_v55 = vld [vmem:[#allocation8 + $0xb0] sm:$0xff]  }
 0x25f   :  { %v678_v59 = vpack.c.bf16 %v657_v61, %v656_v7 }
 0x261   :  { %694 = vst.msk [vmem:[#allocation3 + $0xc0] sm:$0xff] %vm685_vm15, %v678_v59  ;;  %753 = vst.msk [vmem:[#allocation3 + $0x98] sm:$0xff] %vm685_vm15, %v678_v59  ;;  %720 = vrot.lane.b32.xlu0 %v678_v59, %s6384_s15 }
 0x262   :  { %779 = vst.msk [vmem:[#allocation3 + $0x70] sm:$0xff] %vm685_vm15, %v678_v59  ;;  %v5634_v14 = vpop.permute.xlu0 %5633  ;;  %v5705_v59 = vld [vmem:[#allocation8 + $0xb8] sm:$0xff]  }
 0x263   :  { %v5636_v56 = vunpack.i.h.bf16 %v5634_v14  ;;  %v5635_v41 = vunpack.i.l.bf16 %v5634_v14 }
 0x265   :  { %v659_v53 = vmax.f32 %v509_v33, %v5636_v56  ;;  %v658_v5 = vmax.f32 %v508_v27, %v5635_v41  ;;  %5658 = vrot.lane.b32.xlu0 %v5657_v8, %s6384_s15 }
 0x266   :  { %v5639_v60 = vpop.permute.xlu0 %5638 }
 0x267   :  { %v679_v48 = vpack.c.bf16 %v659_v53, %v658_v5  ;;  %v5641_v21 = vunpack.i.h.bf16 %v5639_v60  ;;  %v5640_v22 = vunpack.i.l.bf16 %v5639_v60 }
 0x269   :  { %695 = vst.msk [vmem:[#allocation3 + $0xd8] sm:$0xff] %vm685_vm15, %v679_v48  ;;  %754 = vst.msk [vmem:[#allocation3 + $0xb0] sm:$0xff] %vm685_vm15, %v679_v48  ;;  %v641_v18 = vmax.f32 %v491_v36, %v5641_v21  ;;  %v640_v27 = vmax.f32 %v490_v35, %v5640_v22  ;;  %722 = vrot.lane.b32.xlu1 %v679_v48, %s6384_s15  ;;  %v8247_v36 = vmax.f32 %v6749_v58, 0.0  ;;  %v5698_v35 = vld [vmem:[#allocation8 + $0x80] sm:$0xff]  }
 0x26a   :  { %780 = vst.msk [vmem:[#allocation3 + $0x88] sm:$0xff] %vm685_vm15, %v679_v48  ;;  %v5644_v33 = vpop.permute.xlu1 %5643  ;;  %5449 = vmatprep.subr.bf16.mxu1 %v5698_v35 }
 0x26b   :  { %v670_v54 = vpack.c.bf16 %v641_v18, %v640_v27  ;;  %v5646_v63 = vunpack.i.h.bf16 %v5644_v33  ;;  %v5645_v6 = vunpack.i.l.bf16 %v5644_v33 }
 0x26d   :  { %686 = vst.msk [vmem:[#allocation3] sm:$0xff] %vm685_vm15, %v670_v54  ;;  %v661_v26 = vmax.f32 %v8246_v28, %v5646_v63  ;;  %v660_v24 = vmax.f32 %v8247_v36, %v5645_v6  ;;  %5663 = vrot.lane.b32.xlu1 %v5662_v29, %s6384_s15 }
 0x26f   :  { %v680_v25 = vpack.c.bf16 %v661_v26, %v660_v24 }
 0x271   :  { %724 = vrot.lane.b32.xlu0 %v680_v25, %s6384_s15  ;;  %755 = vst.msk [vmem:[#allocation3 + $0xc8] sm:$0xff] %vm685_vm15, %v680_v25  ;;  %781 = vst.msk [vmem:[#allocation3 + $0xa0] sm:$0xff] %vm685_vm15, %v680_v25 }
 0x29b   :  { %v707_v30 = vpop.permute.xlu0 %706 }
 0x29c   :  { %737 = vst.msk [vmem:[#allocation3] sm:$0xff] %vm736_vm0, %v707_v30 }
 0x2a3   :  { %v803_v34 = vld [vmem:[#allocation3] sm:$0xff] }
 0x2ab   :  { %v711_v51 = vpop.permute.xlu1 %710 }
 0x2ac   :  { %739 = vst.msk [vmem:[#allocation3 + $0x30] sm:$0xff] %vm736_vm0, %v711_v51  ;;  %765 = vst.msk [vmem:[#allocation3 + $0x8] sm:$0xff] %vm736_vm0, %v711_v51  ;;  %v1311_v51 = vld [vmem:[#allocation10 + $0x40] sm:$0xff] }
 0x2af   :  { %v5649_v58 = vpop.permute.xlu1 %5648 }
 0x2b0   :  { %v5651_v31 = vunpack.i.h.bf16 %v5649_v58  ;;  %v5650_v23 = vunpack.i.l.bf16 %v5649_v58  ;;  %v1315_v58 = vld [vmem:[#allocation10 + $0x60] sm:$0xff] }
 0x2b2   :  { %v663_v15 = vmax.f32 %v513_v45, %v5651_v31  ;;  %v662_v20 = vmax.f32 %v512_v42, %v5650_v23  ;;  %v4885_v31 = vcombine.low %v1311_v51, %v1315_v58  ;;  %v4886_v23 = vcombine.high %v1311_v51, %v1315_v58 }
 0x2b3   :  { %v713_v62 = vpop.permute.xlu0 %712  ;;  %v709_v1 = vpop.permute.xlu1 %708  ;;  %v804_v3 = vld [vmem:[#allocation3 + $0x8] sm:$0xff]  ;;  %v809_v52 = vld [vmem:[#allocation3 + $0x30] sm:$0xff] }
 0x2b4   :  { %740 = vst.msk [vmem:[#allocation3 + $0x48] sm:$0xff] %vm736_vm0, %v713_v62  ;;  %766 = vst.msk [vmem:[#allocation3 + $0x20] sm:$0xff] %vm736_vm0, %v713_v62  ;;  %1064 = vmatprep.mubr.bf16.mxu1 %v804_v3  ;;  %v681_v37 = vpack.c.bf16 %v663_v15, %v662_v20 }
 0x2b5   :  { %738 = vst.msk [vmem:[#allocation3 + $0x18] sm:$0xff] %vm736_vm0, %v709_v1  ;;  %1065 = vmatmul.mubr.bf16.vlgmr.msra.gmra.mrb[0].mxu1 %v803_v34  ;;  %v1323_v34 = vld [vmem:[#allocation10 + $0xa0] sm:$0xff] }
 0x2b6   :  { %759 = vrot.lane.b32.xlu1 %v681_v37, %s6384_s15  ;;  %756 = vst.msk [vmem:[#allocation3 + $0xe0] sm:$0xff] %vm685_vm15, %v681_v37  ;;  %782 = vst.msk [vmem:[#allocation3 + $0xb8] sm:$0xff] %vm685_vm15, %v681_v37  ;;  %5450 = vmatpush3.bf16.msra.mxu1 %v5698_v35  ;;  %v1327_v37 = vld [vmem:[#allocation10 + $0xc0] sm:$0xff] }
 0x2b7   :  { %v5654_v32 = vpop.permute.xlu0 %5653  ;;  %5451 = vmatprep.subr.bf16.mxu1 %v5699_v38 }
 0x2b8   :  { %v5656_v42 = vunpack.i.h.bf16 %v5654_v32  ;;  %v5655_v45 = vunpack.i.l.bf16 %v5654_v32 }
 0x2ba   :  { %v664_v40 = vmax.f32 %v514_v0, %v5655_v45  ;;  %v665_v4 = vmax.f32 %v515_v17, %v5656_v42  ;;  %5452 = vmatpush3.bf16.msra.mxu1 %v5699_v38  ;;  %v5703_v17 = vld [vmem:[#allocation8 + $0xa8] sm:$0xff]   ;;  %v1319_v38 = vld [vmem:[#allocation10 + $0x80] sm:$0xff] }
 0x2bb   :  { %v715_v50 = vpop.permute.xlu1 %714  ;;  %v807_v39 = vld [vmem:[#allocation3 + $0x20] sm:$0xff]  ;;  %5453 = vmatprep.subr.bf16.mxu1 %v5700_v10  ;;  %v812_v8 = vld [vmem:[#allocation3 + $0x48] sm:$0xff]  ;;  %v4893_v32 = vcombine.low %v1319_v38, %v1323_v34  ;;  %v1331_v42 = vld [vmem:[#allocation10 + $0xe0] sm:$0xff] }
 0x2bc   :  { %v806_v47 = vld [vmem:[#allocation3 + $0x18] sm:$0xff]  ;;  %741 = vst.msk [vmem:[#allocation3 + $0x60] sm:$0xff] %vm736_vm0, %v715_v50  ;;  %767 = vst.msk [vmem:[#allocation3 + $0x38] sm:$0xff] %vm736_vm0, %v715_v50  ;;  %1072 = vmatprep.mubr.bf16.mxu1 %v807_v39  ;;  %v682_v57 = vpack.c.bf16 %v665_v4, %v664_v40  ;;  %v4902_v45 = vcombine.high %v1327_v37, %v1331_v42  ;;  %v1335_v40 = vld [vmem:[#allocation10 + $0x100] sm:$0xff] }
 0x2bd   :  { %793 = vst.msk [vmem:[#allocation3 + $0x10] sm:$0xff] %vm736_vm0, %v715_v50  ;;  %1073 = vmatmul.mubr.bf16.gmra.mrb[4].mxu1 %v806_v47  ;;  %v1339_v4 = vld [vmem:[#allocation10 + $0x120] sm:$0xff]  ;;  %v1304_v50 = vld [vmem:[#allocation10 + $0x8] sm:$0xff]  ;;  %v4901_v47 = vcombine.low %v1327_v37, %v1331_v42 }
 0x2be   :  { %783 = vst.msk [vmem:[#allocation3 + $0xd0] sm:$0xff] %vm685_vm15, %v682_v57  ;;  %761 = vrot.lane.b32.xlu0 %v682_v57, %s6384_s15  ;;  %5454 = vmatpush3.bf16.msra.mxu1 %v5700_v10  ;;  %v4894_v10 = vcombine.high %v1319_v38, %v1323_v34  ;;  %v1308_v39 = vld [vmem:[#allocation10 + $0x28] sm:$0xff] }
 0x2bf   :  { %5455 = vmatprep.subr.bf16.mxu1 %v5701_v43  ;;  %v4880_v57 = vcombine.high %v1304_v50, %v1308_v39  ;;  %v1348_v38 = vld [vmem:[#allocation10 + $0x168] sm:$0xff] }
 0x2c0   :  { %v1352_v42 = vld [vmem:[#allocation10 + $0x188] sm:$0xff] }
 0x2c2   :  { %5456 = vmatpush3.bf16.msra.mxu1 %v5701_v43  ;;  %v4879_v43 = vcombine.low %v1304_v50, %v1308_v39 }
 0x2c3   :  { %v717_v11 = vpop.permute.xlu0 %716  ;;  %v810_v0 = vld [vmem:[#allocation3 + $0x38] sm:$0xff]  ;;  %5457 = vmatprep.subr.bf16.mxu1 %v5702_v16  ;;  %v815_v41 = vld [vmem:[#allocation3 + $0x60] sm:$0xff] }
 0x2c4   :  { %742 = vst.msk [vmem:[#allocation3 + $0x78] sm:$0xff] %vm736_vm0, %v717_v11  ;;  %768 = vst.msk [vmem:[#allocation3 + $0x50] sm:$0xff] %vm736_vm0, %v717_v11  ;;  %1080 = vmatprep.mubr.bf16.mxu1 %v810_v0  ;;  %v805_v62 = vld [vmem:[#allocation3 + $0x10] sm:$0xff] }
 0x2c5   :  { %794 = vst.msk [vmem:[#allocation3 + $0x28] sm:$0xff] %vm736_vm0, %v717_v11  ;;  %1081 = vmatmul.mubr.bf16.gmra.mrb[8].mxu1 %v809_v52  ;;  %v4910_v11 = vcombine.high %v1335_v40, %v1339_v4  ;;  %v1347_v52 = vld [vmem:[#allocation10 + $0x160] sm:$0xff] }
 0x2c6   :  { %5458 = vmatpush3.bf16.msra.mxu1 %v5702_v16 }
 0x2c7   :  { %5459 = vmatprep.subr.bf16.mxu1 %v5703_v17 }
 0x2ca   :  { %5460 = vmatpush3.bf16.msra.mxu1 %v5703_v17  ;;  %v1343_v17 = vld [vmem:[#allocation10 + $0x140] sm:$0xff] }
 0x2cb   :  { %v719_v61 = vpop.permute.xlu1 %718  ;;  %v813_v7 = vld [vmem:[#allocation3 + $0x50] sm:$0xff]  ;;  %5461 = vmatprep.subr.bf16.mxu1 %v5704_v55  ;;  %v818_v27 = vld [vmem:[#allocation3 + $0x78] sm:$0xff] }
 0x2cc   :  { %743 = vst.msk [vmem:[#allocation3 + $0x90] sm:$0xff] %vm736_vm0, %v719_v61  ;;  %769 = vst.msk [vmem:[#allocation3 + $0x68] sm:$0xff] %vm736_vm0, %v719_v61  ;;  %1088 = vmatprep.mubr.bf16.mxu1 %v813_v7  ;;  %v808_v1 = vld [vmem:[#allocation3 + $0x28] sm:$0xff]  ;;  %v1351_v7 = vld [vmem:[#allocation10 + $0x180] sm:$0xff] }
 0x2cd   :  { %795 = vst.msk [vmem:[#allocation3 + $0x40] sm:$0xff] %vm736_vm0, %v719_v61  ;;  %1089 = vmatmul.mubr.bf16.gmra.mrb[12].mxu1 %v812_v8  ;;  %v4918_v61 = vcombine.high %v1343_v17, %v1347_v52 }
 0x2ce   :  { %5462 = vmatpush3.bf16.msra.mxu1 %v5704_v55  ;;  %v4909_v55 = vcombine.low %v1335_v40, %v1339_v4 }
 0x2cf   :  { %5463 = vmatprep.subr.bf16.mxu1 %v5705_v59 }
 0x2d2   :  { %5464 = vmatpush3.bf16.msra.mxu1 %v5705_v59  ;;  %v1355_v59 = vld [vmem:[#allocation10 + $0x1a0] sm:$0xff] }
 0x2d3   :  { %v721_v14 = vpop.permute.xlu0 %720  ;;  %v816_v56 = vld [vmem:[#allocation3 + $0x68] sm:$0xff]  ;;  %v821_v6 = vld [vmem:[#allocation3 + $0x90] sm:$0xff]  ;;  %1770 = vmatprep.subr.bf16.mxu1 %v4880_v57  ;;  %v1360_v57 = vld [vmem:[#allocation10 + $0x1c8] sm:$0xff] }
 0x2d4   :  { %744 = vst.msk [vmem:[#allocation3 + $0xa8] sm:$0xff] %vm736_vm0, %v721_v14  ;;  %770 = vst.msk [vmem:[#allocation3 + $0x80] sm:$0xff] %vm736_vm0, %v721_v14  ;;  %1096 = vmatprep.mubr.bf16.mxu1 %v816_v56  ;;  %v811_v3 = vld [vmem:[#allocation3 + $0x40] sm:$0xff] }
 0x2d5   :  { %796 = vst.msk [vmem:[#allocation3 + $0x58] sm:$0xff] %vm736_vm0, %v721_v14  ;;  %1097 = vmatmul.mubr.bf16.gmra.mrb[16].mxu1 %v815_v41  ;;  %v4917_v14 = vcombine.low %v1343_v17, %v1347_v52  ;;  %v4926_v41 = vcombine.high %v1351_v7, %v1355_v59 }
 0x2d7   :  { %v5659_v53 = vpop.permute.xlu0 %5658 }
 0x2d8   :  { %v5661_v5 = vunpack.i.h.bf16 %v5659_v53  ;;  %v5660_v60 = vunpack.i.l.bf16 %v5659_v53 }
 0x2da   :  { %v666_v48 = vmax.f32 %v516_v12, %v5660_v60  ;;  %v667_v21 = vmax.f32 %v517_v13, %v5661_v5  ;;  %v4925_v5 = vcombine.low %v1351_v7, %v1355_v59 }
 0x2db   :  { %v723_v22 = vpop.permute.xlu1 %722  ;;  %v819_v18 = vld [vmem:[#allocation3 + $0x80] sm:$0xff]  ;;  %v824_v9 = vld [vmem:[#allocation3 + $0xa8] sm:$0xff] }
 0x2dc   :  { %745 = vst.msk [vmem:[#allocation3 + $0xc0] sm:$0xff] %vm736_vm0, %v723_v22  ;;  %771 = vst.msk [vmem:[#allocation3 + $0x98] sm:$0xff] %vm736_vm0, %v723_v22  ;;  %1104 = vmatprep.mubr.bf16.mxu1 %v819_v18  ;;  %v683_v29 = vpack.c.bf16 %v667_v21, %v666_v48  ;;  %v814_v16 = vld [vmem:[#allocation3 + $0x58] sm:$0xff] }
 0x2dd   :  { %797 = vst.msk [vmem:[#allocation3 + $0x70] sm:$0xff] %vm736_vm0, %v723_v22  ;;  %1105 = vmatmul.mubr.bf16.gmra.mrb[20].mxu1 %v818_v27  ;;  %v1312_v18 = vld [vmem:[#allocation10 + $0x48] sm:$0xff] }
 0x2de   :  { %784 = vst.msk [vmem:[#allocation3 + $0xe8] sm:$0xff] %vm685_vm15, %v683_v29  ;;  %787 = vrot.lane.b32.xlu1 %v683_v29, %s6384_s15  ;;  %v1316_v27 = vld [vmem:[#allocation10 + $0x68] sm:$0xff] }
 0x2df   :  { %v5664_v46 = vpop.permute.xlu1 %5663  ;;  %v4888_v29 = vcombine.high %v1312_v18, %v1316_v27 }
 0x2e0   :  { %v5666_v12 = vunpack.i.h.bf16 %v5664_v46  ;;  %v5665_v49 = vunpack.i.l.bf16 %v5664_v46  ;;  %v4887_v46 = vcombine.low %v1312_v18, %v1316_v27 }
 0x2e2   :  { %v668_v13 = vmax.f32 %v518_v44, %v5665_v49  ;;  %v669_v33 = vmax.f32 %v519_v19, %v5666_v12  ;;  %v1303_v44 = vld [vmem:[#allocation10] sm:$0xff]  ;;  %v1320_v12 = vld [vmem:[#allocation10 + $0x88] sm:$0xff] }
 0x2e3   :  { %v725_v54 = vpop.permute.xlu0 %724  ;;  %v822_v63 = vld [vmem:[#allocation3 + $0x98] sm:$0xff]  ;;  %v1307_v19 = vld [vmem:[#allocation10 + $0x20] sm:$0xff]  ;;  %v827_v30 = vld [vmem:[#allocation3 + $0xc0] sm:$0xff] }
 0x2e4   :  { %746 = vst.msk [vmem:[#allocation3 + $0xd8] sm:$0xff] %vm736_vm0, %v725_v54  ;;  %772 = vst.msk [vmem:[#allocation3 + $0xb0] sm:$0xff] %vm736_vm0, %v725_v54  ;;  %1112 = vmatprep.mubr.bf16.mxu1 %v822_v63  ;;  %v684_v28 = vpack.c.bf16 %v669_v33, %v668_v13  ;;  %v4877_v36 = vcombine.low %v1303_v44, %v1307_v19  ;;  %v4878_v24 = vcombine.high %v1303_v44, %v1307_v19  ;;  %v817_v0 = vld [vmem:[#allocation3 + $0x70] sm:$0xff]  ;;  %v1324_v49 = vld [vmem:[#allocation10 + $0xa8] sm:$0xff] }
 0x2e5   :  { %798 = vst.msk [vmem:[#allocation3 + $0x88] sm:$0xff] %vm736_vm0, %v725_v54  ;;  %1113 = vmatmul.mubr.bf16.gmra.mrb[24].mxu1 %v821_v6  ;;  %v4896_v13 = vcombine.high %v1320_v12, %v1324_v49  ;;  %v4895_v54 = vcombine.low %v1320_v12, %v1324_v49 }
 0x2e6   :  { %789 = vrot.lane.b32.xlu0 %v684_v28, %s6384_s15  ;;  %1687 = vmatprep.subr.bf16.mxu0 %v4878_v24  ;;  %v1336_v24 = vld [vmem:[#allocation10 + $0x108] sm:$0xff] }
 0x2e7   :  { %1688 = vmatpush1.bf16.msra.mxu0 %v4877_v36 }
 0x2e8   :  { %1689 = vmatprep.subr.bf16.mxu0 %v4886_v23  ;;  %v1363_v23 = vld [vmem:[#allocation10 + $0x1e0] sm:$0xff] }
 0x2eb   :  { %v825_v26 = vld [vmem:[#allocation3 + $0xb0] sm:$0xff]  ;;  %1690 = vmatpush1.bf16.msra.mxu0 %v4885_v31  ;;  %v830_v20 = vld [vmem:[#allocation3 + $0xd8] sm:$0xff] }
 0x2ec   :  { %1120 = vmatprep.mubr.bf16.mxu1 %v825_v26  ;;  %1691 = vmatprep.subr.bf16.mxu0 %v4894_v10  ;;  %v820_v56 = vld [vmem:[#allocation3 + $0x88] sm:$0xff]  ;;  %v1328_v26 = vld [vmem:[#allocation10 + $0xc8] sm:$0xff]  ;;  %v1359_v31 = vld [vmem:[#allocation10 + $0x1c0] sm:$0xff] }
 0x2ed   :  { %1121 = vmatmul.mubr.bf16.gmra.mrb[28].mxu1 %v824_v9  ;;  %v1332_v9 = vld [vmem:[#allocation10 + $0xe8] sm:$0xff] }
 0x2ee   :  { %v4904_v44 = vcombine.high %v1328_v26, %v1332_v9  ;;  %v4903_v36 = vcombine.low %v1328_v26, %v1332_v9 }
 0x2ef   :  { %1692 = vmatpush1.bf16.msra.mxu0 %v4893_v32 }
 0x2f0   :  { %1693 = vmatprep.subr.bf16.mxu0 %v4902_v45  ;;  %v1356_v45 = vld [vmem:[#allocation10 + $0x1a8] sm:$0xff] }
 0x2f1   :  { %v4928_v40 = vcombine.high %v1352_v42, %v1356_v45  ;;  %v4927_v50 = vcombine.low %v1352_v42, %v1356_v45 }
 0x2f3   :  { %1694 = vmatpush1.bf16.msra.mxu0 %v4901_v47 }
 0x2f4   :  { %1695 = vmatprep.subr.bf16.mxu0 %v4910_v11 }
 0x2f7   :  { %1696 = vmatpush1.bf16.msra.mxu0 %v4909_v55 }
 0x2f8   :  { %1697 = vmatprep.subr.bf16.mxu0 %v4918_v61  ;;  %v8180_v61 = vmov 0  }
 0x2f9   :  { %1719 = vmatprep.mubr.bf16.mxu0 %v8180_v61 }
 0x2fb   :  { %1698 = vmatpush1.bf16.msra.mxu0 %v4917_v14 }
 0x2fc   :  { %1699 = vmatprep.subr.bf16.mxu0 %v4926_v41  ;;  %v6989_v41 = vld [vmem:[#allocation10 + $0x10] sm:$0xff] }
 0x2ff   :  { %1700 = vmatpush1.bf16.msra.mxu0 %v4925_v5  ;;  %v6993_v5 = vld [vmem:[#allocation10 + $0x18] sm:$0xff] }
 0x328   :  { %v760_v2 = vpop.permute.xlu1 %759 }
 0x329   :  { %773 = vst.msk [vmem:[#allocation3 + $0xc8] sm:$0xff] %vm736_vm0, %v760_v2  ;;  %799 = vst.msk [vmem:[#allocation3 + $0xa0] sm:$0xff] %vm736_vm0, %v760_v2 }
 0x330   :  { %v762_v35 = vpop.permute.xlu0 %761  ;;  %v828_v25 = vld [vmem:[#allocation3 + $0xc8] sm:$0xff]  ;;  %v823_v53 = vld [vmem:[#allocation3 + $0xa0] sm:$0xff] }
 0x331   :  { %774 = vst.msk [vmem:[#allocation3 + $0xe0] sm:$0xff] %vm736_vm0, %v762_v35  ;;  %800 = vst.msk [vmem:[#allocation3 + $0xb8] sm:$0xff] %vm736_vm0, %v762_v35  ;;  %1128 = vmatprep.mubr.bf16.mxu1 %v828_v25  ;;  %v1340_v35 = vld [vmem:[#allocation10 + $0x128] sm:$0xff] }
 0x332   :  { %1129 = vmatmul.mubr.bf16.gmra.mrb[32].mxu1 %v827_v30  ;;  %v4912_v25 = vcombine.high %v1336_v24, %v1340_v35  ;;  %v4911_v51 = vcombine.low %v1336_v24, %v1340_v35 }
 0x338   :  { %v831_v15 = vld [vmem:[#allocation3 + $0xe0] sm:$0xff]  ;;  %v826_v48 = vld [vmem:[#allocation3 + $0xb8] sm:$0xff] }
 0x339   :  { %1136 = vmatprep.mubr.bf16.mxu1 %v831_v15 }
 0x33a   :  { %1137 = vmatmul.mubr.bf16.gmra.mrb[36].mxu1 %v830_v20 }
 0x33b   :  { %5465 = vmatprep.mubr.bf16.mxu1 %v805_v62  ;;  %v4933_v62 = vcombine.low %v1359_v31, %v1363_v23 }
 0x342   :  { %5466 = vmatmul.mubr.bf16.vlgmr.msra.gmra.mrb[40].mxu1 %v808_v1  ;;  %v4934_v1 = vcombine.high %v1359_v31, %v1363_v23 }
 0x343   :  { %5469 = vmatprep.mubr.bf16.mxu1 %v811_v3  ;;  %1771 = vmatpush1.bf16.msra.mxu1 %v4879_v43  ;;  %v1344_v3 = vld [vmem:[#allocation10 + $0x148] sm:$0xff] }
 0x344   :  { %1772 = vmatprep.subr.bf16.mxu1 %v4888_v29  ;;  %v4920_v37 = vcombine.high %v1344_v3, %v1348_v38  ;;  %1701 = vmatprep.subr.bf16.mxu0 %v4934_v1  ;;  %v4919_v10 = vcombine.low %v1344_v3, %v1348_v38 }
 0x345   :  { %1702 = vmatpush1.bf16.msra.mxu0 %v4933_v62 }
 0x347   :  { %1773 = vmatpush1.bf16.msra.mxu1 %v4887_v46 }
 0x348   :  { %1774 = vmatprep.subr.bf16.mxu1 %v4896_v13 }
 0x34a   :  { %5470 = vmatmul.mubr.bf16.gmra.mrb[44].mxu1 %v814_v16  ;;  %v1364_v16 = vld [vmem:[#allocation10 + $0x1e8] sm:$0xff] }
 0x34b   :  { %5473 = vmatprep.mubr.bf16.mxu1 %v817_v0  ;;  %1775 = vmatpush1.bf16.msra.mxu1 %v4895_v54  ;;  %v4936_v0 = vcombine.high %v1360_v57, %v1364_v16  ;;  %v4935_v52 = vcombine.low %v1360_v57, %v1364_v16 }
 0x34c   :  { %1776 = vmatprep.subr.bf16.mxu1 %v4904_v44 }
 0x34f   :  { %1777 = vmatpush1.bf16.msra.mxu1 %v4903_v36 }
 0x350   :  { %v788_v8 = vpop.permute.xlu1 %787  ;;  %1778 = vmatprep.subr.bf16.mxu1 %v4912_v25 }
 0x351   :  { %801 = vst.msk [vmem:[#allocation3 + $0xd0] sm:$0xff] %vm736_vm0, %v788_v8 }
 0x352   :  { %5474 = vmatmul.mubr.bf16.gmra.mrb[48].mxu1 %v820_v56 }
 0x353   :  { %5477 = vmatprep.mubr.bf16.mxu1 %v823_v53  ;;  %1779 = vmatpush1.bf16.msra.mxu1 %v4911_v51  ;;  %v6991_v53 = vld [vmem:[#allocation10 + $0x30] sm:$0xff] }
 0x354   :  { %1780 = vmatprep.subr.bf16.mxu1 %v4920_v37 }
 0x357   :  { %1781 = vmatpush1.bf16.msra.mxu1 %v4919_v10 }
 0x358   :  { %v790_v60 = vpop.permute.xlu0 %789  ;;  %v829_v21 = vld [vmem:[#allocation3 + $0xd0] sm:$0xff]  ;;  %1782 = vmatprep.subr.bf16.mxu1 %v4928_v40 }
 0x359   :  { %802 = vst.msk [vmem:[#allocation3 + $0xe8] sm:$0xff] %vm736_vm0, %v790_v60  ;;  %v4881_v60 = vcombine.low %v6989_v41, %v6991_v53 }
 0x35a   :  { %5478 = vmatmul.mubr.bf16.gmra.mrb[52].mxu1 %v826_v48  ;;  %v4882_v48 = vcombine.high %v6989_v41, %v6991_v53  ;;  %v1333_v41 = vld [vmem:[#allocation10 + $0xf0] sm:$0xff] }
 0x35b   :  { %5481 = vmatprep.mubr.bf16.mxu1 %v829_v21  ;;  %1783 = vmatpush1.bf16.msra.mxu1 %v4927_v50  ;;  %v6999_v21 = vld [vmem:[#allocation10 + $0x38] sm:$0xff] }
 0x35c   :  { %1784 = vmatprep.subr.bf16.mxu1 %v4936_v0  ;;  %v4883_v18 = vcombine.low %v6993_v5, %v6999_v21  ;;  %v4884_v27 = vcombine.high %v6993_v5, %v6999_v21  ;;  %1853 = vmatprep.subr.bf16.mxu0 %v4882_v48 }
 0x35f   :  { %1785 = vmatpush1.bf16.msra.mxu1 %v4935_v52 }
 0x360   :  { %v832_v22 = vld [vmem:[#allocation3 + $0xe8] sm:$0xff]  ;;  %1936 = vmatprep.subr.bf16.mxu1 %v4884_v27 }
 0x362   :  { %5482 = vmatmul.mubr.bf16.gmra.mrb[56].mxu1 %v832_v22 }
 0x363   :  { %1802 = vmatprep.mubr.bf16.mxu1 %v8180_v61 }
 0x388   :  { %v5185_v33 = vpop.f32.mrb[0].mxu1 }
 0x389   :  { %v5186_v63 = vpop.f32.mrb[1].mxu1 }
 0x38a   :  { %v6971_v6 = vadd.f32 %v5186_v63, %v5185_v33  ;;  %v5188_v28 = vpop.f32.mrb[2].mxu1 }
 0x38b   :  { %v5189_v2 = vpop.f32.mrb[3].mxu1 }
 0x38c   :  { %v6973_v19 = vadd.f32 %v5189_v2, %v5188_v28 }
 0x390   :  { %v5191_v30 = vpop.f32.mrb[4].mxu1 }
 0x391   :  { %v5192_v58 = vpop.f32.mrb[5].mxu1 }
 0x392   :  { %v6975_v15 = vadd.f32 %v5192_v58, %v5191_v30  ;;  %v5194_v20 = vpop.f32.mrb[6].mxu1 }
 0x393   :  { %v5195_v34 = vpop.f32.mrb[7].mxu1 }
 0x394   :  { %v6977_v32 = vadd.f32 %v5195_v34, %v5194_v20 }
 0x398   :  { %v5197_v4 = vpop.f32.mrb[8].mxu1 }
 0x399   :  { %v5198_v39 = vpop.f32.mrb[9].mxu1 }
 0x39a   :  { %v6979_v47 = vadd.f32 %v5198_v39, %v5197_v4  ;;  %v5200_v43 = vpop.f32.mrb[10].mxu1  ;;  %v7032_v39 = vld [vmem:[%s8169_s4] ss:$0 sm:$0xff] }
 0x39b   :  { %v5201_v11 = vpop.f32.mrb[11].mxu1  ;;  %v1067_v16 = vadd.f32 %v6971_v6, %v7032_v39  ;;  %v1078_v52 = vadd.f32 %v6977_v32, %v7032_v39 }
 0x39c   :  { %v6981_v17 = vadd.f32 %v5201_v11, %v5200_v43  ;;  %v1075_v43 = vadd.f32 %v6975_v15, %v7032_v39 }
 0x3a0   :  { %v5203_v55 = vpop.f32.mrb[12].mxu1 }
 0x3a1   :  { %v5204_v7 = vpop.f32.mrb[13].mxu1 }
 0x3a2   :  { %v6985_v59 = vadd.f32 %v5204_v7, %v5203_v55  ;;  %v5206_v8 = vpop.f32.mrb[14].mxu1 }
 0x3a3   :  { %v5207_v14 = vpop.f32.mrb[15].mxu1 }
 0x3a4   :  { %v6987_v56 = vadd.f32 %v5207_v14, %v5206_v8  ;;  %v1070_v8 = vadd.f32 %v6973_v19, %v7032_v39  ;;  %v1091_v6 = vadd.f32 %v6985_v59, %v7032_v39  ;;  %v1086_v59 = vadd.f32 %v6981_v17, %v7032_v39 }
 0x3a8   :  { %v5209_v22 = vpop.f32.mrb[16].mxu1 }
 0x3a9   :  { %v5210_v29 = vpop.f32.mrb[17].mxu1 }
 0x3aa   :  { %v7005_v46 = vadd.f32 %v5210_v29, %v5209_v22  ;;  %v5212_v12 = vpop.f32.mrb[18].mxu1 }
 0x3ab   :  { %v5213_v49 = vpop.f32.mrb[19].mxu1 }
 0x3ac   :  { %v7007_v13 = vadd.f32 %v5213_v49, %v5212_v12 }
 0x3b0   :  { %v5215_v33 = vpop.f32.mrb[20].mxu1 }
 0x3b1   :  { %v5216_v54 = vpop.f32.mrb[21].mxu1 }
 0x3b2   :  { %v7009_v63 = vadd.f32 %v5216_v54, %v5215_v33  ;;  %v5218_v28 = vpop.f32.mrb[22].mxu1  ;;  %v1313_v33 = vld [vmem:[#allocation10 + $0x50] sm:$0xff] }
 0x3b3   :  { %v5219_v26 = vpop.f32.mrb[23].mxu1  ;;  %v1317_v54 = vld [vmem:[#allocation10 + $0x70] sm:$0xff] }
 0x3b4   :  { %v7011_v9 = vadd.f32 %v5219_v26, %v5218_v28  ;;  %v1083_v26 = vadd.f32 %v6979_v47, %v7032_v39  ;;  %v1325_v47 = vld [vmem:[#allocation10 + $0xb0] sm:$0xff] }
 0x3b8   :  { %v5221_v2 = vpop.f32.mrb[24].mxu1 }
 0x3b9   :  { %v5222_v44 = vpop.f32.mrb[25].mxu1 }
 0x3ba   :  { %v7013_v36 = vadd.f32 %v5222_v44, %v5221_v2  ;;  %v5224_v24 = vpop.f32.mrb[26].mxu1  ;;  %v1094_v44 = vadd.f32 %v6987_v56, %v7032_v39 }
 0x3bb   :  { %v5225_v35 = vpop.f32.mrb[27].mxu1 }
 0x3bc   :  { %v7015_v25 = vadd.f32 %v5225_v35, %v5224_v24  ;;  %v1314_v24 = vld [vmem:[#allocation10 + $0x58] sm:$0xff] }
 0x3bd   :  { %v1318_v35 = vld [vmem:[#allocation10 + $0x78] sm:$0xff] }
 0x3be   :  { %v4892_v56 = vcombine.high %v1314_v24, %v1318_v35 }
 0x3c0   :  { %v5227_v30 = vpop.f32.mrb[28].mxu1 }
 0x3c1   :  { %v5228_v51 = vpop.f32.mrb[29].mxu1 }
 0x3c2   :  { %v7017_v58 = vadd.f32 %v5228_v51, %v5227_v30  ;;  %v5230_v31 = vpop.f32.mrb[30].mxu1 }
 0x3c3   :  { %v5231_v23 = vpop.f32.mrb[31].mxu1 }
 0x3c4   :  { %v7019_v20 = vadd.f32 %v5231_v23, %v5230_v31  ;;  %v4890_v23 = vcombine.high %v1313_v33, %v1317_v54 }
 0x405   :  { %v5233_v62 = vpop.f32.mrb[32].mxu1 }
 0x406   :  { %v5234_v1 = vpop.f32.mrb[33].mxu1 }
 0x407   :  { %v7021_v3 = vadd.f32 %v5234_v1, %v5233_v62  ;;  %v5236_v38 = vpop.f32.mrb[34].mxu1 }
 0x408   :  { %v5237_v34 = vpop.f32.mrb[35].mxu1 }
 0x409   :  { %v7023_v37 = vadd.f32 %v5237_v34, %v5236_v38  ;;  %v1321_v34 = vld [vmem:[#allocation10 + $0x90] sm:$0xff] }
 0x40d   :  { %v5239_v10 = vpop.f32.mrb[36].mxu1 }
 0x40e   :  { %v5240_v42 = vpop.f32.mrb[37].mxu1 }
 0x40f   :  { %v7025_v45 = vadd.f32 %v5240_v42, %v5239_v10  ;;  %v5242_v40 = vpop.f32.mrb[38].mxu1 }
 0x410   :  { %v5243_v4 = vpop.f32.mrb[39].mxu1 }
 0x411   :  { %v7027_v50 = vadd.f32 %v5243_v4, %v5242_v40  ;;  %v4889_v4 = vcombine.low %v1313_v33, %v1317_v54  ;;  %v1337_v33 = vld [vmem:[#allocation10 + $0x110] sm:$0xff] }
 0x412   :  { %v1341_v54 = vld [vmem:[#allocation10 + $0x130] sm:$0xff] }
 0x415   :  { %v5467_v57 = vpop.f32.mrb[40].mxu1 }
 0x416   :  { %v1188_v11 = vadd.f32 %v5467_v57, %v1075_v43  ;;  %v1179_v0 = vpop.f32.mrb[41].mxu1  ;;  %v4898_v57 = vcombine.high %v1321_v34, %v1325_v47 }
 0x417   :  { %v1180_v55 = vadd.f32 %v1179_v0, %v1067_v16  ;;  %v5468_v7 = vpop.f32.mrb[42].mxu1  ;;  %v1107_v16 = vadd.f32 %v7009_v63, %v7032_v39  ;;  %v1329_v0 = vld [vmem:[#allocation10 + $0xd0] sm:$0xff]  ;;  %v1110_v63 = vadd.f32 %v7011_v9, %v7032_v39 }
 0x418   :  { %v1260_v14 = vmax.f32 %v1188_v11, 0.0  ;;  %v1191_v48 = vadd.f32 %v5468_v7, %v1078_v52  ;;  %v1182_v22 = vpop.f32.mrb[43].mxu1  ;;  %v4891_v11 = vcombine.low %v1314_v24, %v1318_v35  ;;  %v1099_v52 = vadd.f32 %v7005_v46, %v7032_v39  ;;  %v1326_v7 = vld [vmem:[#allocation10 + $0xb8] sm:$0xff] }
 0x419   :  { %v1258_v27 = vmax.f32 %v1180_v55, 0.0  ;;  %v1183_v29 = vadd.f32 %v1182_v22, %v1070_v8  ;;  %v1322_v55 = vld [vmem:[#allocation10 + $0x98] sm:$0xff]  ;;  %v1102_v22 = vadd.f32 %v7007_v13, %v7032_v39  ;;  %v4905_v13 = vcombine.low %v1329_v0, %v1333_v41 }
 0x41a   :  { %v1261_v15 = vmax.f32 %v1191_v48, 0.0  ;;  %v4897_v48 = vcombine.low %v1321_v34, %v1325_v47  ;;  %v1330_v46 = vld [vmem:[#allocation10 + $0xd8] sm:$0xff]  ;;  %v4914_v24 = vcombine.high %v1337_v33, %v1341_v54  ;;  %v1123_v35 = vadd.f32 %v7017_v58, %v7032_v39 }
 0x41b   :  { %v1278_v12 = vmax.f32 %v1258_v27, %v1260_v14  ;;  %v1259_v49 = vmax.f32 %v1183_v29, 0.0  ;;  %v4906_v27 = vcombine.high %v1329_v0, %v1333_v41  ;;  %v1334_v29 = vld [vmem:[#allocation10 + $0xf8] sm:$0xff] }
 0x41c   :  { %v1342_v34 = vld [vmem:[#allocation10 + $0x138] sm:$0xff] }
 0x41d   :  { %v1279_v28 = vmax.f32 %v1259_v49, %v1261_v15  ;;  %v5471_v32 = vpop.f32.mrb[44].mxu1  ;;  %v1350_v41 = vld [vmem:[#allocation10 + $0x178] sm:$0xff] }
 0x41e   :  { %v1204_v2 = vadd.f32 %v5471_v32, %v1091_v6  ;;  %v1195_v19 = vpop.f32.mrb[45].mxu1  ;;  %v4900_v6 = vcombine.high %v1322_v55, %v1326_v7  ;;  %v4899_v32 = vcombine.low %v1322_v55, %v1326_v7 }
 0x41f   :  { %v7048_v30 = vpack.c.bf16 %v1279_v28, %v1278_v12  ;;  %v1196_v51 = vadd.f32 %v1195_v19, %v1083_v26  ;;  %v5472_v31 = vpop.f32.mrb[46].mxu1 }
 0x420   :  { %v1264_v62 = vmax.f32 %v1204_v2, 0.0  ;;  %v1207_v1 = vadd.f32 %v5472_v31, %v1094_v44  ;;  %v1198_v38 = vpop.f32.mrb[47].mxu1  ;;  %v4908_v2 = vcombine.high %v1330_v46, %v1334_v29 }
 0x421   :  { %v1262_v10 = vmax.f32 %v1196_v51, 0.0  ;;  %v1199_v42 = vadd.f32 %v1198_v38, %v1086_v59  ;;  %1720 = vmatmul.mubr.bf16.vlgmr.msra.gmra.mrb[60].mxu0 %v7048_v30  ;;  %1803 = vmatmul.mubr.bf16.vlgmr.msra.gmra.mrb[60].mxu1 %v7048_v30  ;;  %v1338_v51 = vld [vmem:[#allocation10 + $0x118] sm:$0xff]  ;;  %v1349_v38 = vld [vmem:[#allocation10 + $0x170] sm:$0xff] }
 0x422   :  { %v1265_v40 = vmax.f32 %v1207_v1, 0.0  ;;  %1854 = vmatpush1.bf16.msra.mxu0 %v4881_v60  ;;  %1729 = vmatprep.mubr.bf16.mxu0 %v8180_v61  ;;  %v1345_v1 = vld [vmem:[#allocation10 + $0x150] sm:$0xff]  ;;  %v4916_v0 = vcombine.high %v1338_v51, %v1342_v34  ;;  %v4915_v7 = vcombine.low %v1338_v51, %v1342_v34 }
 0x423   :  { %v1282_v17 = vmax.f32 %v1262_v10, %v1264_v62  ;;  %v1263_v43 = vmax.f32 %v1199_v42, 0.0  ;;  %1855 = vmatprep.subr.bf16.mxu0 %v4890_v23  ;;  %1812 = vmatprep.mubr.bf16.mxu1 %v8180_v61  ;;  %v1115_v23 = vadd.f32 %v7013_v36, %v7032_v39  ;;  %v4907_v62 = vcombine.low %v1330_v46, %v1334_v29 }
 0x424   :  { %1937 = vmatpush1.bf16.msra.mxu1 %v4883_v18  ;;  %v1126_v42 = vadd.f32 %v7019_v20, %v7032_v39  ;;  %v1118_v36 = vadd.f32 %v7015_v25, %v7032_v39  ;;  %v1357_v20 = vld [vmem:[#allocation10 + $0x1b0] sm:$0xff]  ;;  %v4921_v25 = vcombine.low %v1345_v1, %v1349_v38  ;;  %v1131_v46 = vadd.f32 %v7021_v3, %v7032_v39 }
 0x425   :  { %v1283_v53 = vmax.f32 %v1263_v43, %v1265_v40  ;;  %v5475_v60 = vpop.f32.mrb[48].mxu1  ;;  %1938 = vmatprep.subr.bf16.mxu1 %v4892_v56  ;;  %v4913_v56 = vcombine.low %v1337_v33, %v1341_v54  ;;  %v1142_v54 = vadd.f32 %v7027_v50, %v7032_v39 }
 0x426   :  { %v1220_v8 = vadd.f32 %v5475_v60, %v1107_v16  ;;  %v1211_v14 = vpop.f32.mrb[49].mxu1  ;;  %1856 = vmatpush1.bf16.msra.mxu0 %v4889_v4 }
 0x427   :  { %v7068_v5 = vpack.c.bf16 %v1283_v53, %v1282_v17  ;;  %v1212_v21 = vadd.f32 %v1211_v14, %v1099_v52  ;;  %v5476_v18 = vpop.f32.mrb[50].mxu1  ;;  %1857 = vmatprep.subr.bf16.mxu0 %v4898_v57  ;;  %v1346_v17 = vld [vmem:[#allocation10 + $0x158] sm:$0xff]  ;;  %v1353_v53 = vld [vmem:[#allocation10 + $0x190] sm:$0xff] }
 0x428   :  { %v1268_v15 = vmax.f32 %v1220_v8, 0.0  ;;  %v1223_v12 = vadd.f32 %v5476_v18, %v1110_v63  ;;  %v1214_v49 = vpop.f32.mrb[51].mxu1  ;;  %1939 = vmatpush1.bf16.msra.mxu1 %v4891_v11  ;;  %v4922_v11 = vcombine.high %v1345_v1, %v1349_v38  ;;  %v4924_v63 = vcombine.high %v1346_v17, %v1350_v41  ;;  %v1354_v18 = vld [vmem:[#allocation10 + $0x198] sm:$0xff]  ;;  %v7107_v1 = vld [vmem:[%s8171_s6 + $0x4] ss:$16 sps:$4 sm:$0xff]  }
 0x429   :  { %v1266_v9 = vmax.f32 %v1212_v21, 0.0  ;;  %v1215_v28 = vadd.f32 %v1214_v49, %v1102_v22  ;;  %1730 = vmatmul.mubr.bf16.gmra.mrb[64].mxu0 %v7068_v5  ;;  %1813 = vmatmul.mubr.bf16.gmra.mrb[64].mxu1 %v7068_v5  ;;  %v1139_v21 = vadd.f32 %v7025_v45, %v7032_v39  ;;  %v4923_v29 = vcombine.low %v1346_v17, %v1350_v41  ;;  %v1365_v49 = vld [vmem:[#allocation10 + $0x1f0] sm:$0xff]  ;;  %v7162_v17 = vld [vmem:[%s8171_s6 + $0x28] ss:$16 sps:$4 sm:$0xff]   ;;  %v7200_v41 = vld [vmem:[%s8171_s6 + $0x6c] ss:$16 sps:$4 sm:$0xff]  }
 0x42a   :  { %v1269_v26 = vmax.f32 %v1223_v12, 0.0  ;;  %1858 = vmatpush1.bf16.msra.mxu0 %v4897_v48  ;;  %1739 = vmatprep.mubr.bf16.mxu0 %v8180_v61  ;;  %v4930_v48 = vcombine.high %v1353_v53, %v1357_v20  ;;  %v1361_v12 = vld [vmem:[#allocation10 + $0x1d0] sm:$0xff]  ;;  %v4929_v45 = vcombine.low %v1353_v53, %v1357_v20  ;;  %8253 = vst [vmem:[#allocation22_spill] sm:$0xff] %v7200_v41  ;;  %v7221_v20 = vld [vmem:[%s8171_s6 + $0x68] ss:$16 sps:$4 sm:$0xff]  }
 0x42b   :  { %v1286_v19 = vmax.f32 %v1266_v9, %v1268_v15  ;;  %v1267_v44 = vmax.f32 %v1215_v28, 0.0  ;;  %1859 = vmatprep.subr.bf16.mxu0 %v4906_v27  ;;  %1822 = vmatprep.mubr.bf16.mxu1 %v8180_v61  ;;  %v1358_v15 = vld [vmem:[#allocation10 + $0x1b8] sm:$0xff]  ;;  %v7216_v53 = vld [vmem:[%s8171_s6 + $0x80] ss:$16 sps:$4 sm:$0xff]   ;;  %8256 = vst [vmem:[#allocation25_spill] sm:$0xff] %v7221_v20 }
 0x42c   :  { %1940 = vmatprep.subr.bf16.mxu1 %v4900_v6  ;;  %8255 = vst [vmem:[#allocation24_spill] sm:$0xff] %v7216_v53 }
 0x42d   :  { %v1287_v31 = vmax.f32 %v1267_v44, %v1269_v26  ;;  %v5479_v59 = vpop.f32.mrb[52].mxu1  ;;  %1941 = vmatpush1.bf16.msra.mxu1 %v4899_v32  ;;  %v1134_v26 = vadd.f32 %v7023_v37, %v7032_v39  ;;  %v4938_v44 = vcombine.high %v1361_v12, %v1365_v49  ;;  %v4937_v37 = vcombine.low %v1361_v12, %v1365_v49  ;;  %v7330_v12 = vld [vmem:[#allocation11 + $0x8] ss:$16 sps:$4 sm:$0xff]   ;;  %v7332_v49 = vld [vmem:[#allocation11 + $0x24] ss:$16 sps:$4 sm:$0xff]  }
 0x42e   :  { %v1236_v47 = vadd.f32 %v5479_v59, %v1123_v35  ;;  %v1227_v10 = vpop.f32.mrb[53].mxu1  ;;  %1860 = vmatpush1.bf16.msra.mxu0 %v4905_v13  ;;  %1942 = vmatprep.subr.bf16.mxu1 %v4908_v2  ;;  %v1366_v35 = vld [vmem:[#allocation10 + $0x1f8] sm:$0xff]  ;;  %v4931_v59 = vcombine.low %v1354_v18, %v1358_v15 }
 0x42f   :  { %v7082_v58 = vpack.c.bf16 %v1287_v31, %v1286_v19  ;;  %v1228_v40 = vadd.f32 %v1227_v10, %v1115_v23  ;;  %v5480_v4 = vpop.f32.mrb[54].mxu1  ;;  %1861 = vmatprep.subr.bf16.mxu0 %v4914_v24  ;;  %v4932_v19 = vcombine.high %v1354_v18, %v1358_v15  ;;  %v1362_v24 = vld [vmem:[#allocation10 + $0x1d8] sm:$0xff]  ;;  %v7298_v18 = vld [vmem:[%s8171_s6 + $0xe0] ss:$16 sps:$4 sm:$0xff]  }
 0x430   :  { %v1272_v43 = vmax.f32 %v1236_v47, 0.0  ;;  %v1239_v57 = vadd.f32 %v5480_v4, %v1126_v42  ;;  %v1230_v16 = vpop.f32.mrb[55].mxu1  ;;  %v4939_v34 = vcombine.low %v1362_v24, %v1366_v35  ;;  %v7115_v10 = vld [vmem:[%s8171_s6 + $0xc] ss:$16 sps:$4 sm:$0xff]   ;;  %v7125_v42 = vld [vmem:[%s8171_s6] ss:$16 sps:$4 sm:$0xff]  }
 0x431   :  { %v1270_v60 = vmax.f32 %v1228_v40, 0.0  ;;  %v1231_v52 = vadd.f32 %v1230_v16, %v1118_v36  ;;  %1740 = vmatmul.mubr.bf16.gmra.mrb[68].mxu0 %v7082_v58  ;;  %1823 = vmatmul.mubr.bf16.gmra.mrb[68].mxu1 %v7082_v58  ;;  %v7135_v40 = vld [vmem:[%s8171_s6 + $0x8] ss:$16 sps:$4 sm:$0xff]   ;;  %v7142_v4 = vld [vmem:[%s8171_s6 + $0x2c] ss:$16 sps:$4 sm:$0xff]   ;;  %8268 = vst [vmem:[#allocation37_spill] sm:$0xff] %v7298_v18 }
 0x432   :  { %v1273_v55 = vmax.f32 %v1239_v57, 0.0  ;;  %1862 = vmatpush1.bf16.msra.mxu0 %v4913_v56  ;;  %1943 = vmatpush1.bf16.msra.mxu1 %v4907_v62  ;;  %v4940_v62 = vcombine.high %v1362_v24, %v1366_v35  ;;  %v7130_v56 = vld [vmem:[%s8171_s6 + $0x24] ss:$16 sps:$4 sm:$0xff]   ;;  %v7148_v36 = vld [vmem:[%s8171_s6 + $0x20] ss:$16 sps:$4 sm:$0xff]  }
 0x433   :  { %v1290_v8 = vmax.f32 %v1270_v60, %v1272_v43  ;;  %v1271_v14 = vmax.f32 %v1231_v52, 0.0  ;;  %1749 = vmatprep.mubr.bf16.mxu0 %v8180_v61  ;;  %1832 = vmatprep.mubr.bf16.mxu1 %v8180_v61  ;;  %v7169_v43 = vld [vmem:[%s8171_s6 + $0x40] ss:$16 sps:$4 sm:$0xff]   ;;  %v7175_v57 = vld [vmem:[%s8171_s6 + $0x64] ss:$16 sps:$4 sm:$0xff]  }
 0x434   :  { %1863 = vmatprep.subr.bf16.mxu0 %v4922_v11  ;;  %1944 = vmatprep.subr.bf16.mxu1 %v4916_v0  ;;  %8248 = vst [vmem:[#allocation17_spill] sm:$0xff] %v7169_v43  ;;  %8249 = vst [vmem:[#allocation18_spill] sm:$0xff] %v7175_v57  ;;  %v7181_v16 = vld [vmem:[%s8171_s6 + $0x4c] ss:$16 sps:$4 sm:$0xff]   ;;  %v7188_v11 = vld [vmem:[%s8171_s6 + $0x48] ss:$16 sps:$4 sm:$0xff]  }
 0x435   :  { %v1291_v22 = vmax.f32 %v1271_v14, %v1273_v55  ;;  %v5483_v27 = vpop.f32.mrb[56].mxu1  ;;  %8250 = vst [vmem:[#allocation19_spill] sm:$0xff] %v7181_v16  ;;  %8251 = vst [vmem:[#allocation20_spill] sm:$0xff] %v7188_v11  ;;  %v7195_v0 = vld [vmem:[%s8171_s6 + $0x60] ss:$16 sps:$4 sm:$0xff]  }
 0x436   :  { %v1252_v6 = vadd.f32 %v5483_v27, %v1139_v21  ;;  %v1243_v33 = vpop.f32.mrb[57].mxu1  ;;  %1864 = vmatpush1.bf16.msra.mxu0 %v4921_v25  ;;  %1945 = vmatpush1.bf16.msra.mxu1 %v4915_v7  ;;  %8252 = vst [vmem:[#allocation21_spill] sm:$0xff] %v7195_v0  ;;  %v7227_v60 = vld [vmem:[%s8171_s6 + $0x8c] ss:$16 sps:$4 sm:$0xff]   ;;  %v7232_v52 = vld [vmem:[%s8171_s6 + $0xa4] ss:$16 sps:$4 sm:$0xff]  }
 0x437   :  { %v7096_v9 = vpack.c.bf16 %v1291_v22, %v1290_v8  ;;  %v1244_v28 = vadd.f32 %v1243_v33, %v1131_v46  ;;  %v5484_v32 = vpop.f32.mrb[58].mxu1  ;;  %1946 = vmatprep.subr.bf16.mxu1 %v4924_v63  ;;  %1865 = vmatprep.subr.bf16.mxu0 %v4930_v48  ;;  %8257 = vst [vmem:[#allocation26_spill] sm:$0xff] %v7227_v60  ;;  %8258 = vst [vmem:[#allocation27_spill] sm:$0xff] %v7232_v52  ;;  %v7241_v55 = vld [vmem:[%s8171_s6 + $0x88] ss:$16 sps:$4 sm:$0xff]  }
 0x438   :  { %v1276_v3 = vmax.f32 %v1252_v6, 0.0  ;;  %v1255_v13 = vadd.f32 %v5484_v32, %v1142_v54  ;;  %v1246_v2 = vpop.f32.mrb[59].mxu1  ;;  %8259 = vst [vmem:[#allocation28_spill] sm:$0xff] %v7241_v55  ;;  %v7246_v25 = vld [vmem:[%s8171_s6 + $0xa0] ss:$16 sps:$4 sm:$0xff]  }
 0x439   :  { %v1274_v50 = vmax.f32 %v1244_v28, 0.0  ;;  %v1247_v51 = vadd.f32 %v1246_v2, %v1134_v26  ;;  %1750 = vmatmul.mubr.bf16.gmra.mrb[72].mxu0 %v7096_v9  ;;  %1833 = vmatmul.mubr.bf16.gmra.mrb[72].mxu1 %v7096_v9  ;;  %8260 = vst [vmem:[#allocation29_spill] sm:$0xff] %v7246_v25  ;;  %v7258_v7 = vld [vmem:[%s8171_s6 + $0xc4] ss:$16 sps:$4 sm:$0xff]   ;;  %v7267_v8 = vld [vmem:[%s8171_s6 + $0xa8] ss:$16 sps:$4 sm:$0xff]  }
 0x43a   :  { %v1277_v31 = vmax.f32 %v1255_v13, 0.0  ;;  %1947 = vmatpush1.bf16.msra.mxu1 %v4923_v29  ;;  %1866 = vmatpush1.bf16.msra.mxu0 %v4929_v45  ;;  %8262 = vst [vmem:[#allocation31_spill] sm:$0xff] %v7258_v7  ;;  %8263 = vst [vmem:[#allocation32_spill] sm:$0xff] %v7267_v8  ;;  %v7272_v14 = vld [vmem:[%s8171_s6 + $0xc0] ss:$16 sps:$4 sm:$0xff]  }
 0x43b   :  { %v1294_v39 = vmax.f32 %v1274_v50, %v1276_v3  ;;  %v1275_v23 = vmax.f32 %v1247_v51, 0.0  ;;  %1759 = vmatprep.mubr.bf16.mxu0 %v8180_v61  ;;  %1842 = vmatprep.mubr.bf16.mxu1 %v8180_v61  ;;  %8264 = vst [vmem:[#allocation33_spill] sm:$0xff] %v7272_v14  ;;  %v7279_v63 = vld [vmem:[%s8171_s6 + $0xcc] ss:$16 sps:$4 sm:$0xff]   ;;  %v7284_v48 = vld [vmem:[%s8171_s6 + $0xe4] ss:$16 sps:$4 sm:$0xff]  }
 0x43c   :  { %1948 = vmatprep.subr.bf16.mxu1 %v4932_v19  ;;  %1867 = vmatprep.subr.bf16.mxu0 %v4938_v44  ;;  %8265 = vst [vmem:[#allocation34_spill] sm:$0xff] %v7279_v63  ;;  %8266 = vst [vmem:[#allocation35_spill] sm:$0xff] %v7284_v48  ;;  %v7293_v21 = vld [vmem:[%s8171_s6 + $0xc8] ss:$16 sps:$4 sm:$0xff]   ;;  %v7305_v22 = vld [vmem:[%s8171_s6 + $0xec] ss:$16 sps:$4 sm:$0xff]  }
 0x43d   :  { %v1295_v38 = vmax.f32 %v1275_v23, %v1277_v31  ;;  %8267 = vst [vmem:[#allocation36_spill] sm:$0xff] %v7293_v21  ;;  %8269 = vst [vmem:[#allocation38_spill] sm:$0xff] %v7305_v22  ;;  %v7307_v27 = vld [vmem:[#allocation11 + $0x4] ss:$16 sps:$4 sm:$0xff]   ;;  %v7316_v46 = vld [vmem:[%s8171_s6 + $0xe8] ss:$16 sps:$4 sm:$0xff]  }
 0x43e   :  { %1949 = vmatpush1.bf16.msra.mxu1 %v4931_v59  ;;  %1868 = vmatpush1.bf16.msra.mxu0 %v4937_v37  ;;  %8270 = vst [vmem:[#allocation39_spill] sm:$0xff] %v7307_v27  ;;  %8271 = vst [vmem:[#allocation40_spill] sm:$0xff] %v7316_v46  ;;  %v7320_v29 = vld [vmem:[#allocation11 + $0xc] ss:$16 sps:$4 sm:$0xff]   ;;  %v7328_v15 = vld [vmem:[#allocation11] ss:$16 sps:$4 sm:$0xff]  }
 0x43f   :  { %v7109_v47 = vpack.c.bf16 %v1295_v38, %v1294_v39  ;;  %1950 = vmatprep.subr.bf16.mxu1 %v4940_v62  ;;  %2245 = vmatprep.subr.bf16.mxu0 %v7107_v1  ;;  %8272 = vst [vmem:[#allocation41_spill] sm:$0xff] %v7320_v29  ;;  %v7334_v6 = vld [vmem:[#allocation11 + $0x2c] ss:$16 sps:$4 sm:$0xff]   ;;  %v7340_v33 = vld [vmem:[#allocation11 + $0x20] ss:$16 sps:$4 sm:$0xff]  }
 0x440   :  { %v7342_v54 = vld [vmem:[#allocation11 + $0x28] ss:$16 sps:$4 sm:$0xff]   ;;  %v7346_v45 = vld [vmem:[#allocation11 + $0x44] ss:$16 sps:$4 sm:$0xff]   ;;  %v7354_v28 = vld [vmem:[#allocation11 + $0x40] ss:$16 sps:$4 sm:$0xff]  }
 0x441   :  { %1760 = vmatmul.mubr.bf16.gmra.mrb[76].mxu0 %v7109_v47  ;;  %1843 = vmatmul.mubr.bf16.gmra.mrb[76].mxu1 %v7109_v47  ;;  %v7356_v32 = vld [vmem:[#allocation11 + $0x48] ss:$16 sps:$4 sm:$0xff]   ;;  %v7360_v26 = vld [vmem:[#allocation11 + $0x64] ss:$16 sps:$4 sm:$0xff]   ;;  %v7362_v3 = vld [vmem:[#allocation11 + $0x6c] ss:$16 sps:$4 sm:$0xff]  }
 0x442   :  { %1951 = vmatpush1.bf16.msra.mxu1 %v4939_v34  ;;  %1885 = vmatprep.mubr.bf16.mxu0 %v8180_v61  ;;  %v7366_v13 = vld [vmem:[#allocation11 + $0x60] ss:$16 sps:$4 sm:$0xff]   ;;  %v7368_v2 = vld [vmem:[#allocation11 + $0x68] ss:$16 sps:$4 sm:$0xff]   ;;  %v7372_v19 = vld [vmem:[#allocation11 + $0x84] ss:$16 sps:$4 sm:$0xff]  }
 0x443   :  { %1968 = vmatprep.mubr.bf16.mxu1 %v8180_v61  ;;  %2288 = vmatprep.subr.bf16.mxu1 %v7115_v10  ;;  %v7374_v44 = vld [vmem:[#allocation11 + $0x8c] ss:$16 sps:$4 sm:$0xff]   ;;  %v7378_v24 = vld [vmem:[#allocation11 + $0x80] ss:$16 sps:$4 sm:$0xff]   ;;  %v7380_v35 = vld [vmem:[#allocation11 + $0x88] ss:$16 sps:$4 sm:$0xff]  }
 0x444   :  { %v7384_v50 = vld [vmem:[#allocation11 + $0xa4] ss:$16 sps:$4 sm:$0xff]   ;;  %v7386_v51 = vld [vmem:[#allocation11 + $0xac] ss:$16 sps:$4 sm:$0xff]   ;;  %v7390_v31 = vld [vmem:[#allocation11 + $0xa0] ss:$16 sps:$4 sm:$0xff]  }
 0x445   :  { %v7392_v59 = vld [vmem:[#allocation11 + $0xa8] ss:$16 sps:$4 sm:$0xff]   ;;  %v7396_v37 = vld [vmem:[#allocation11 + $0xc4] ss:$16 sps:$4 sm:$0xff]   ;;  %v7398_v39 = vld [vmem:[#allocation11 + $0xcc] ss:$16 sps:$4 sm:$0xff]  }
 0x446   :  { %8273 = vst [vmem:[#allocation42_spill] sm:$0xff] %v7398_v39  ;;  %v7402_v23 = vld [vmem:[#allocation11 + $0xc0] ss:$16 sps:$4 sm:$0xff]   ;;  %v7404_v62 = vld [vmem:[#allocation11 + $0xc8] ss:$16 sps:$4 sm:$0xff]  }
 0x447   :  { %v7408_v38 = vld [vmem:[#allocation11 + $0xe4] ss:$16 sps:$4 sm:$0xff]   ;;  %v7410_v34 = vld [vmem:[#allocation11 + $0xec] ss:$16 sps:$4 sm:$0xff]  }
 0x449   :  { %1886 = vmatmul.mubr.bf16.vlgmr.msra.gmra.mrb[80].mxu0 %v7048_v30  ;;  %1969 = vmatmul.mubr.bf16.vlgmr.msra.gmra.mrb[80].mxu1 %v7048_v30  ;;  %v7156_v30 = vld [vmem:[%s8171_s6 + $0x44] ss:$16 sps:$4 sm:$0xff]  }
 0x44a   :  { %2246 = vmatpush1.bf16.msra.mxu0 %v7125_v42  ;;  %1895 = vmatprep.mubr.bf16.mxu0 %v8180_v61 }
 0x44b   :  { %2247 = vmatprep.subr.bf16.mxu0 %v7130_v56  ;;  %1978 = vmatprep.mubr.bf16.mxu1 %v8180_v61 }
 0x44c   :  { %2289 = vmatpush1.bf16.msra.mxu1 %v7135_v40 }
 0x44d   :  { %2290 = vmatprep.subr.bf16.mxu1 %v7142_v4 }
 0x44e   :  { %2248 = vmatpush1.bf16.msra.mxu0 %v7148_v36 }
 0x44f   :  { %2249 = vmatprep.subr.bf16.mxu0 %v7156_v30 }
 0x450   :  { %2291 = vmatpush1.bf16.msra.mxu1 %v7162_v17 }
 0x451   :  { %1896 = vmatmul.mubr.bf16.gmra.mrb[84].mxu0 %v7068_v5  ;;  %1979 = vmatmul.mubr.bf16.gmra.mrb[84].mxu1 %v7068_v5  ;;  %v7207_v5 = vld [vmem:[%s8171_s6 + $0x84] ss:$16 sps:$4 sm:$0xff]  }
 0x452   :  { %2250 = vmatpush1.bf16.msra.mxu0 %v7169_v43  ;;  %1905 = vmatprep.mubr.bf16.mxu0 %v8180_v61  ;;  %8254 = vst [vmem:[#allocation23_spill] sm:$0xff] %v7207_v5 }
 0x453   :  { %2251 = vmatprep.subr.bf16.mxu0 %v7175_v57  ;;  %1988 = vmatprep.mubr.bf16.mxu1 %v8180_v61 }
 0x454   :  { %2292 = vmatprep.subr.bf16.mxu1 %v7181_v16 }
 0x455   :  { %2293 = vmatpush1.bf16.msra.mxu1 %v7188_v11 }
 0x456   :  { %2252 = vmatpush1.bf16.msra.mxu0 %v7195_v0  ;;  %2294 = vmatprep.subr.bf16.mxu1 %v7200_v41 }
 0x457   :  { %2253 = vmatprep.subr.bf16.mxu0 %v7207_v5 }
 0x459   :  { %1906 = vmatmul.mubr.bf16.gmra.mrb[88].mxu0 %v7082_v58  ;;  %1989 = vmatmul.mubr.bf16.gmra.mrb[88].mxu1 %v7082_v58  ;;  %v7253_v58 = vld [vmem:[%s8171_s6 + $0xac] ss:$16 sps:$4 sm:$0xff]  }
 0x45a   :  { %2254 = vmatpush1.bf16.msra.mxu0 %v7216_v53  ;;  %2295 = vmatpush1.bf16.msra.mxu1 %v7221_v20  ;;  %8261 = vst [vmem:[#allocation30_spill] sm:$0xff] %v7253_v58 }
 0x45b   :  { %1915 = vmatprep.mubr.bf16.mxu0 %v8180_v61  ;;  %1998 = vmatprep.mubr.bf16.mxu1 %v8180_v61 }
 0x45c   :  { %2296 = vmatprep.subr.bf16.mxu1 %v7227_v60  ;;  %2255 = vmatprep.subr.bf16.mxu0 %v7232_v52 }
 0x45e   :  { %2297 = vmatpush1.bf16.msra.mxu1 %v7241_v55  ;;  %2256 = vmatpush1.bf16.msra.mxu0 %v7246_v25 }
 0x45f   :  { %2298 = vmatprep.subr.bf16.mxu1 %v7253_v58  ;;  %2257 = vmatprep.subr.bf16.mxu0 %v7258_v7 }
 0x461   :  { %1916 = vmatmul.mubr.bf16.gmra.mrb[92].mxu0 %v7096_v9  ;;  %1999 = vmatmul.mubr.bf16.gmra.mrb[92].mxu1 %v7096_v9  ;;  %v7348_v9 = vld [vmem:[#allocation11 + $0x4c] ss:$16 sps:$4 sm:$0xff]  }
 0x462   :  { %2299 = vmatpush1.bf16.msra.mxu1 %v7267_v8  ;;  %2258 = vmatpush1.bf16.msra.mxu0 %v7272_v14 }
 0x463   :  { %1925 = vmatprep.mubr.bf16.mxu0 %v8180_v61  ;;  %2008 = vmatprep.mubr.bf16.mxu1 %v8180_v61 }
 0x464   :  { %2300 = vmatprep.subr.bf16.mxu1 %v7279_v63  ;;  %2259 = vmatprep.subr.bf16.mxu0 %v7284_v48 }
 0x466   :  { %2301 = vmatpush1.bf16.msra.mxu1 %v7293_v21  ;;  %2260 = vmatpush1.bf16.msra.mxu0 %v7298_v18 }
 0x467   :  { %2302 = vmatprep.subr.bf16.mxu1 %v7305_v22  ;;  %2578 = vmatprep.subr.bf16.mxu0 %v7307_v27 }
 0x469   :  { %1926 = vmatmul.mubr.bf16.gmra.mrb[96].mxu0 %v7109_v47  ;;  %2009 = vmatmul.mubr.bf16.gmra.mrb[96].mxu1 %v7109_v47  ;;  %v7414_v47 = vld [vmem:[#allocation11 + $0xe0] ss:$16 sps:$4 sm:$0xff]  }
 0x46a   :  { %2303 = vmatpush1.bf16.msra.mxu1 %v7316_v46  ;;  %2277 = vmatprep.mubr.bf16.mxu0 %v8180_v61 }
 0x46b   :  { %2320 = vmatprep.mubr.bf16.mxu1 %v8180_v61  ;;  %2621 = vmatprep.subr.bf16.mxu1 %v7320_v29 }
 0x471   :  { %2278 = vmatmul.mubr.bf16.vlgmr.msra.gmra.mrb[60].mxu0 %v8180_v61  ;;  %2321 = vmatmul.mubr.bf16.vlgmr.msra.gmra.mrb[60].mxu1 %v8180_v61 }
 0x472   :  { %2579 = vmatpush1.bf16.msra.mxu0 %v7328_v15  ;;  %2622 = vmatpush1.bf16.msra.mxu1 %v7330_v12 }
 0x473   :  { %2580 = vmatprep.subr.bf16.mxu0 %v7332_v49  ;;  %2623 = vmatprep.subr.bf16.mxu1 %v7334_v6 }
 0x474   :  { %2610 = vmatprep.mubr.bf16.mxu0 %v8180_v61  ;;  %2653 = vmatprep.mubr.bf16.mxu1 %v8180_v61  ;;  %v7416_v61 = vld [vmem:[#allocation11 + $0xe8] ss:$16 sps:$4 sm:$0xff]  }
 0x476   :  { %2581 = vmatpush1.bf16.msra.mxu0 %v7340_v33  ;;  %2624 = vmatpush1.bf16.msra.mxu1 %v7342_v54 }
 0x477   :  { %2582 = vmatprep.subr.bf16.mxu0 %v7346_v45  ;;  %2625 = vmatprep.subr.bf16.mxu1 %v7348_v9 }
 0x47a   :  { %2583 = vmatpush1.bf16.msra.mxu0 %v7354_v28  ;;  %2626 = vmatpush1.bf16.msra.mxu1 %v7356_v32 }
 0x47b   :  { %2584 = vmatprep.subr.bf16.mxu0 %v7360_v26  ;;  %2627 = vmatprep.subr.bf16.mxu1 %v7362_v3 }
 0x47e   :  { %2585 = vmatpush1.bf16.msra.mxu0 %v7366_v13  ;;  %2628 = vmatpush1.bf16.msra.mxu1 %v7368_v2 }
 0x47f   :  { %2586 = vmatprep.subr.bf16.mxu0 %v7372_v19  ;;  %2629 = vmatprep.subr.bf16.mxu1 %v7374_v44 }
 0x482   :  { %2587 = vmatpush1.bf16.msra.mxu0 %v7378_v24  ;;  %2630 = vmatpush1.bf16.msra.mxu1 %v7380_v35 }
 0x483   :  { %2588 = vmatprep.subr.bf16.mxu0 %v7384_v50  ;;  %2631 = vmatprep.subr.bf16.mxu1 %v7386_v51 }
 0x486   :  { %2589 = vmatpush1.bf16.msra.mxu0 %v7390_v31  ;;  %2632 = vmatpush1.bf16.msra.mxu1 %v7392_v59 }
 0x487   :  { %2590 = vmatprep.subr.bf16.mxu0 %v7396_v37  ;;  %2633 = vmatprep.subr.bf16.mxu1 %v7398_v39  ;;  %v8274_v39 = vmov 0  }
 0x48a   :  { %2591 = vmatpush1.bf16.msra.mxu0 %v7402_v23  ;;  %2634 = vmatpush1.bf16.msra.mxu1 %v7404_v62 }
 0x48b   :  { %2592 = vmatprep.subr.bf16.mxu0 %v7408_v38  ;;  %2635 = vmatprep.subr.bf16.mxu1 %v7410_v34 }
 0x48e   :  { %2593 = vmatpush1.bf16.msra.mxu0 %v7414_v47  ;;  %2636 = vmatpush1.bf16.msra.mxu1 %v7416_v61 }
 0x48f   :  { %2751 = vmatprep.subr.bf16.mxu0 %v7107_v1  ;;  %2794 = vmatprep.subr.bf16.mxu1 %v7115_v10 }
 0x491   :  { %2611 = vmatmul.mubr.bf16.vlgmr.msra.gmra.mrb[96].mxu0 %v8274_v39  ;;  %2654 = vmatmul.mubr.bf16.vlgmr.msra.gmra.mrb[96].mxu1 %v8274_v39 }
 0x492   :  { %2752 = vmatpush1.bf16.msra.mxu0 %v7125_v42  ;;  %2795 = vmatpush1.bf16.msra.mxu1 %v7135_v40 }
 0x493   :  { %2753 = vmatprep.subr.bf16.mxu0 %v7130_v56  ;;  %2796 = vmatprep.subr.bf16.mxu1 %v7142_v4 }
 0x494   :  { %2783 = vmatprep.mubr.bf16.mxu0 %v8274_v39  ;;  %2826 = vmatprep.mubr.bf16.mxu1 %v8274_v39 }
 0x496   :  { %2754 = vmatpush1.bf16.msra.mxu0 %v7148_v36  ;;  %2797 = vmatpush1.bf16.msra.mxu1 %v7162_v17 }
 0x497   :  { %2755 = vmatprep.subr.bf16.mxu0 %v7156_v30  ;;  %2798 = vmatprep.subr.bf16.mxu1 %v7181_v16 }
 0x49a   :  { %2756 = vmatpush1.bf16.msra.mxu0 %v7169_v43  ;;  %2799 = vmatpush1.bf16.msra.mxu1 %v7188_v11 }
 0x49b   :  { %2757 = vmatprep.subr.bf16.mxu0 %v7175_v57  ;;  %2800 = vmatprep.subr.bf16.mxu1 %v7200_v41 }
 0x49e   :  { %2758 = vmatpush1.bf16.msra.mxu0 %v7195_v0  ;;  %2801 = vmatpush1.bf16.msra.mxu1 %v7221_v20 }
 0x49f   :  { %2759 = vmatprep.subr.bf16.mxu0 %v7207_v5  ;;  %2802 = vmatprep.subr.bf16.mxu1 %v7227_v60 }
 0x4a2   :  { %2760 = vmatpush1.bf16.msra.mxu0 %v7216_v53  ;;  %2803 = vmatpush1.bf16.msra.mxu1 %v7241_v55 }
 0x4a3   :  { %2761 = vmatprep.subr.bf16.mxu0 %v7232_v52  ;;  %2804 = vmatprep.subr.bf16.mxu1 %v7253_v58 }
 0x4a6   :  { %2762 = vmatpush1.bf16.msra.mxu0 %v7246_v25  ;;  %2805 = vmatpush1.bf16.msra.mxu1 %v7267_v8  ;;  %v2340_v8 = vlaneseq }
 0x4a7   :  { %2763 = vmatprep.subr.bf16.mxu0 %v7258_v7  ;;  %2806 = vmatprep.subr.bf16.mxu1 %v7279_v63 }
 0x4a8   :  { %v7460_v7 = vshrl.u32 %v2340_v8, 7 }
 0x4aa   :  { %2764 = vmatpush1.bf16.msra.mxu0 %v7272_v14  ;;  %2807 = vmatpush1.bf16.msra.mxu1 %v7293_v21  ;;  %v2342_v63 = vsub.s32 0, %v7460_v7  ;;  %v2083_v21 = vld [vmem:[%s8173_s8] sm:$0xf]  ;;  %v8212_v60 = vsub.s32 2, %v7460_v7 }
 0x4ab   :  { %2765 = vmatprep.subr.bf16.mxu0 %v7284_v48  ;;  %2808 = vmatprep.subr.bf16.mxu1 %v7305_v22  ;;  %v2346_v48 = vsub.s32 1, %v7460_v7 }
 0x4ac   :  { %v7467_v22 = vrot.slane %v2083_v21, %v2342_v63 }
 0x4ae   :  { %2766 = vmatpush1.bf16.msra.mxu0 %v7298_v18  ;;  %2809 = vmatpush1.bf16.msra.mxu1 %v7316_v46  ;;  %8275 = vst [vmem:[#allocation43_spill] sm:$0xff] %v7467_v22  ;;  %v7469_v18 = vrot.slane %v2083_v21, %v2346_v48 }
 0x4af   :  { %2903 = vmatprep.subr.bf16.mxu0 %v7307_v27  ;;  %2946 = vmatprep.subr.bf16.mxu1 %v7320_v29  ;;  %v8208_v27 = vsub.s32 3, %v7460_v7 }
 0x4b0   :  { %8276 = vst [vmem:[#allocation44_spill] sm:$0xff] %v7469_v18 }
 0x4b1   :  { %v7478_v57 = vrot.slane %v2083_v21, %v8208_v27 }
 0x4b3   :  { %8277 = vst [vmem:[#allocation45_spill] sm:$0xff] %v7478_v57 }
 0x544   :  { %v2279_v46 = vpop.f32.mrb[60].mxu0  ;;  %v2322_v14 = vpop.f32.mrb[60].mxu1 }
 0x545   :  { %v2360_v29 = vadd.f32 %v7467_v22, %v2279_v46  ;;  %v2281_v8 = vpop.f32.mrb[61].mxu0  ;;  %v2324_v25 = vpop.f32.mrb[61].mxu1 }
 0x546   :  { %v2361_v58 = vadd.f32 %v7469_v18, %v2281_v8  ;;  %v2283_v52 = vpop.f32.mrb[62].mxu0  ;;  %v2326_v55 = vpop.f32.mrb[62].mxu1  ;;  %v2363_v43 = vadd.f32 %v7478_v57, %v2324_v25 }
 0x547   :  { %v4973_v53 = vmul.f32 -1.442695, %v2360_v29  ;;  %v2364_v5 = vadd.f32 %v7467_v22, %v2283_v52  ;;  %v2285_v20 = vpop.f32.mrb[63].mxu0  ;;  %v2328_v0 = vpop.f32.mrb[63].mxu1  ;;  %v7483_v29 = vrot.slane %v2083_v21, %v8212_v60 }
 0x548   :  { %v4975_v41 = vmul.f32 -1.442695, %v2361_v58  ;;  %v2365_v46 = vadd.f32 %v7469_v18, %v2285_v20  ;;  %v2367_v52 = vadd.f32 %v7478_v57, %v2328_v0  ;;  %v4977_v27 = vmul.f32 -1.442695, %v2363_v43 }
 0x549   :  { %5882 = vpow2.f32 %v4973_v53  ;;  %v4974_v11 = vmul.f32 -1.442695, %v2364_v5  ;;  %8278 = vst [vmem:[#allocation46_spill] sm:$0xff] %v7483_v29  ;;  %v2362_v58 = vadd.f32 %v7483_v29, %v2322_v14 }
 0x54a   :  { %5884 = vpow2.f32 %v4975_v41  ;;  %v4976_v8 = vmul.f32 -1.442695, %v2365_v46  ;;  %v4978_v22 = vmul.f32 -1.442695, %v2367_v52  ;;  %v2366_v41 = vadd.f32 %v7483_v29, %v2326_v55 }
 0x54b   :  { %5886 = vpow2.f32 %v4974_v11 }
 0x54c   :  { %5888 = vpow2.f32 %v4976_v8 }
 0x54d   :  { %5890 = vtanh.f32 %v2362_v58 }
 0x54e   :  { %5892 = vpow2.f32 %v4977_v27 }
 0x54f   :  { %5894 = vpow2.f32 %v4978_v22 }
 0x553   :  { %v5883_v16 = vpop.eup %5882 }
 0x554   :  { %v5885_v53 = vpop.eup %5884  ;;  %v2374_v5 = vadd.f32 1.0, %v5883_v16  ;;  %v2084_v16 = vld [vmem:[%s8174_s9] sm:$0xf] }
 0x555   :  { %v2386_v20 = vadd.f32 1.0, %v5885_v53  ;;  %v5887_v21 = vpop.eup %5886  ;;  %v7492_v22 = vrot.slane %v2084_v16, %v2342_v63 }
 0x556   :  { %5896 = vrcp.f32 %v2374_v5  ;;  %v2375_v11 = vadd.f32 1.0, %v5887_v21  ;;  %v5889_v25 = vpop.eup %5888  ;;  %v7494_v5 = vrot.slane %v2084_v16, %v2346_v48 }
 0x557   :  { %5898 = vrcp.f32 %v2386_v20  ;;  %v2387_v0 = vadd.f32 1.0, %v5889_v25  ;;  %v5891_v43 = vpop.eup %5890 }
 0x558   :  { %5900 = vtanh.f32 %v2366_v41  ;;  %v5893_v14 = vpop.eup %5892  ;;  %8279 = vst [vmem:[#allocation47_spill] sm:$0xff] %v7494_v5 }
 0x559   :  { %5902 = vrcp.f32 %v2375_v11  ;;  %v5895_v27 = vpop.eup %5894  ;;  %v2400_v53 = vadd.f32 1.0, %v5893_v14 }
 0x55a   :  { %5904 = vrcp.f32 %v2387_v0  ;;  %v2401_v20 = vadd.f32 1.0, %v5895_v27 }
 0x55b   :  { %5906 = vrcp.f32 %v2400_v53 }
 0x55c   :  { %5908 = vrcp.f32 %v2401_v20  ;;  %v8281_v20 = vsub.s32 2, %v7460_v7 }
 0x560   :  { %v5897_v46 = vpop.eup %5896 }
 0x561   :  { %v5899_v55 = vpop.eup %5898  ;;  %v2408_v8 = vmul.f32 %v5897_v46, %v5891_v43 }
 0x562   :  { %v5901_v52 = vpop.eup %5900  ;;  %v2406_v58 = vmul.f32 0.0, %v5899_v55 }
 0x563   :  { %v5903_v41 = vpop.eup %5902 }
 0x564   :  { %v7496_v21 = vadd.f32 %v2408_v8, %v2406_v58  ;;  %v2409_v11 = vmul.f32 %v5903_v41, %v5901_v52  ;;  %v2612_v25 = vpop.f32.mrb[96].mxu0  ;;  %v2655_v0 = vpop.f32.mrb[96].mxu1 }
 0x565   :  { %v5905_v60 = vpop.eup %5904  ;;  %v2693_v29 = vadd.f32 %v7492_v22, %v2612_v25  ;;  %v2614_v57 = vpop.f32.mrb[97].mxu0  ;;  %v7512_v25 = vrot.slane %v2084_v16, %v8281_v20 }
 0x566   :  { %v2657_v18 = vpop.f32.mrb[97].mxu1  ;;  %v2407_v63 = vmul.f32 0.0, %v5905_v60  ;;  %v2694_v43 = vadd.f32 %v7494_v5, %v2614_v57  ;;  %v2616_v46 = vpop.f32.mrb[98].mxu0  ;;  %5910 = vtanh.f32 %v7496_v21  ;;  %v8280_v60 = vsub.s32 3, %v7460_v7 }
 0x567   :  { %v2659_v14 = vpop.f32.mrb[98].mxu1  ;;  %v5011_v48 = vmul.f32 -1.442695, %v2693_v29  ;;  %v2697_v27 = vadd.f32 %v7492_v22, %v2616_v46  ;;  %v2618_v55 = vpop.f32.mrb[99].mxu0 }
 0x568   :  { %v2661_v8 = vpop.f32.mrb[99].mxu1  ;;  %v7502_v52 = vadd.f32 %v2409_v11, %v2407_v63  ;;  %v5013_v58 = vmul.f32 -1.442695, %v2694_v43  ;;  %v2698_v41 = vadd.f32 %v7494_v5, %v2618_v55  ;;  %v7507_v53 = vrot.slane %v2084_v16, %v8280_v60  ;;  %v5907_v63 = vpop.eup %5906 }
 0x569   :  { %5912 = vpow2.f32 %v5011_v48  ;;  %v5012_v57 = vmul.f32 -1.442695, %v2697_v27  ;;  %v2695_v43 = vadd.f32 %v7512_v25, %v2655_v0  ;;  %v5909_v46 = vpop.eup %5908 }
 0x56a   :  { %5914 = vtanh.f32 %v7502_v52  ;;  %v5014_v29 = vmul.f32 -1.442695, %v2698_v41  ;;  %v2696_v11 = vadd.f32 %v7507_v53, %v2657_v18  ;;  %v2700_v55 = vadd.f32 %v7507_v53, %v2661_v8 }
 0x56b   :  { %5916 = vpow2.f32 %v5013_v58  ;;  %v2699_v58 = vadd.f32 %v7512_v25, %v2659_v14 }
 0x56c   :  { %5918 = vpow2.f32 %v5012_v57  ;;  %v5015_v48 = vmul.f32 -1.442695, %v2696_v11  ;;  %v5016_v16 = vmul.f32 -1.442695, %v2700_v55 }
 0x56d   :  { %5920 = vpow2.f32 %v5014_v29 }
 0x56e   :  { %5922 = vtanh.f32 %v2695_v43 }
 0x56f   :  { %5924 = vpow2.f32 %v5015_v48 }
 0x570   :  { %v5911_v27 = vpop.eup %5910 }
 0x571   :  { %v2414_v18 = vmul.f32 %v5911_v27, %v5907_v63 }
 0x573   :  { %v5913_v60 = vpop.eup %5912 }
 0x574   :  { %v5915_v41 = vpop.eup %5914  ;;  %v2707_v5 = vadd.f32 1.0, %v5913_v60 }
 0x575   :  { %v5917_v7 = vpop.eup %5916  ;;  %v2415_v57 = vmul.f32 %v5915_v41, %v5909_v46 }
 0x576   :  { %5926 = vrcp.f32 %v2707_v5  ;;  %v2719_v29 = vadd.f32 1.0, %v5917_v7  ;;  %v5919_v20 = vpop.eup %5918 }
 0x577   :  { %5928 = vtanh.f32 %v2699_v58  ;;  %v7518_v0 = vpack.c.bf16 %v2415_v57, %v2414_v18  ;;  %v2708_v8 = vadd.f32 1.0, %v5919_v20  ;;  %v5921_v11 = vpop.eup %5920 }
 0x578   :  { %5930 = vrcp.f32 %v2719_v29  ;;  %v2720_v14 = vadd.f32 1.0, %v5921_v11  ;;  %v5923_v5 = vpop.eup %5922 }
 0x579   :  { %8282 = vst [vmem:[#allocation48_spill] sm:$0xff] %v7518_v0  ;;  %5932 = vpow2.f32 %v5016_v16  ;;  %2784 = vmatmul.mubr.bf16.vlgmr.msra.gmra.mrb[64].mxu0 %v7518_v0  ;;  %2827 = vmatmul.mubr.bf16.vlgmr.msra.gmra.mrb[64].mxu1 %v7518_v0  ;;  %v5925_v63 = vpop.eup %5924 }
 0x57a   :  { %5934 = vrcp.f32 %v2708_v8  ;;  %2904 = vmatpush1.bf16.msra.mxu0 %v7328_v15  ;;  %2947 = vmatpush1.bf16.msra.mxu1 %v7330_v12  ;;  %v2733_v41 = vadd.f32 1.0, %v5925_v63  ;;  %v8283_v8 = vld [vmem:[#allocation42_spill] sm:$0xff] }
 0x57b   :  { %2905 = vmatprep.subr.bf16.mxu0 %v7332_v49  ;;  %2948 = vmatprep.subr.bf16.mxu1 %v7334_v6  ;;  %5936 = vrcp.f32 %v2720_v14 }
 0x57c   :  { %2935 = vmatprep.mubr.bf16.mxu0 %v8274_v39  ;;  %2978 = vmatprep.mubr.bf16.mxu1 %v8274_v39  ;;  %5938 = vrcp.f32 %v2733_v41  ;;  %v8298_v41 = vld [vmem:[#allocation29_spill] sm:$0xff] }
 0x57e   :  { %2906 = vmatpush1.bf16.msra.mxu0 %v7340_v33  ;;  %2949 = vmatpush1.bf16.msra.mxu1 %v7342_v54 }
 0x57f   :  { %2907 = vmatprep.subr.bf16.mxu0 %v7346_v45  ;;  %2950 = vmatprep.subr.bf16.mxu1 %v7348_v9 }
 0x580   :  { %v5927_v43 = vpop.eup %5926 }
 0x581   :  { %v5929_v46 = vpop.eup %5928  ;;  %v2741_v48 = vmul.f32 %v5927_v43, %v5923_v5 }
 0x582   :  { %v5931_v55 = vpop.eup %5930  ;;  %2908 = vmatpush1.bf16.msra.mxu0 %v7354_v28  ;;  %2951 = vmatpush1.bf16.msra.mxu1 %v7356_v32 }
 0x583   :  { %v5933_v27 = vpop.eup %5932  ;;  %v2739_v60 = vmul.f32 0.0, %v5931_v55  ;;  %2909 = vmatprep.subr.bf16.mxu0 %v7360_v26  ;;  %2952 = vmatprep.subr.bf16.mxu1 %v7362_v3  ;;  %v8291_v55 = vld [vmem:[#allocation25_spill] sm:$0xff] }
 0x584   :  { %v5935_v58 = vpop.eup %5934  ;;  %v2734_v57 = vadd.f32 1.0, %v5933_v27  ;;  %v8292_v27 = vld [vmem:[#allocation23_spill] sm:$0xff] }
 0x585   :  { %v7536_v7 = vadd.f32 %v2741_v48, %v2739_v60  ;;  %v2742_v16 = vmul.f32 %v5935_v58, %v5929_v46  ;;  %v5937_v18 = vpop.eup %5936  ;;  %v8296_v60 = vld [vmem:[#allocation27_spill] sm:$0xff]  ;;  %v8297_v58 = vld [vmem:[#allocation30_spill] sm:$0xff] }
 0x586   :  { %2910 = vmatpush1.bf16.msra.mxu0 %v7366_v13  ;;  %2953 = vmatpush1.bf16.msra.mxu1 %v7368_v2  ;;  %v2740_v29 = vmul.f32 0.0, %v5937_v18  ;;  %v5939_v11 = vpop.eup %5938  ;;  %v8300_v18 = vld [vmem:[#allocation31_spill] sm:$0xff] }
 0x587   :  { %2911 = vmatprep.subr.bf16.mxu0 %v7372_v19  ;;  %2954 = vmatprep.subr.bf16.mxu1 %v7374_v44  ;;  %5940 = vtanh.f32 %v7536_v7 }
 0x588   :  { %v7543_v20 = vadd.f32 %v2742_v16, %v2740_v29  ;;  %5942 = vrcp.f32 %v2734_v57  ;;  %v8299_v16 = vld [vmem:[#allocation32_spill] sm:$0xff]  ;;  %v8301_v57 = vld [vmem:[#allocation34_spill] sm:$0xff]  ;;  %v8302_v29 = vld [vmem:[#allocation33_spill] sm:$0xff] }
 0x58a   :  { %2912 = vmatpush1.bf16.msra.mxu0 %v7378_v24  ;;  %2955 = vmatpush1.bf16.msra.mxu1 %v7380_v35  ;;  %5944 = vtanh.f32 %v7543_v20 }
 0x58b   :  { %2913 = vmatprep.subr.bf16.mxu0 %v7384_v50  ;;  %2956 = vmatprep.subr.bf16.mxu1 %v7386_v51 }
 0x58e   :  { %2914 = vmatpush1.bf16.msra.mxu0 %v7390_v31  ;;  %2957 = vmatpush1.bf16.msra.mxu1 %v7392_v59 }
 0x58f   :  { %2915 = vmatprep.subr.bf16.mxu0 %v7396_v37  ;;  %2958 = vmatprep.subr.bf16.mxu1 %v8283_v8 }
 0x591   :  { %v5941_v14 = vpop.eup %5940 }
 0x592   :  { %2916 = vmatpush1.bf16.msra.mxu0 %v7402_v23  ;;  %2959 = vmatpush1.bf16.msra.mxu1 %v7404_v62  ;;  %v5943_v5 = vpop.eup %5942  ;;  %v2747_v43 = vmul.f32 %v5941_v14, %v5939_v11  ;;  %v8303_v11 = vld [vmem:[#allocation36_spill] sm:$0xff]  ;;  %v8304_v14 = vld [vmem:[#allocation35_spill] sm:$0xff] }
 0x593   :  { %2917 = vmatprep.subr.bf16.mxu0 %v7408_v38  ;;  %2960 = vmatprep.subr.bf16.mxu1 %v7410_v34 }
 0x594   :  { %v5945_v63 = vpop.eup %5944 }
 0x595   :  { %v2748_v46 = vmul.f32 %v5945_v63, %v5943_v5  ;;  %v8305_v5 = vld [vmem:[#allocation38_spill] sm:$0xff]  ;;  %v8306_v63 = vld [vmem:[#allocation37_spill] sm:$0xff] }
 0x596   :  { %2918 = vmatpush1.bf16.msra.mxu0 %v7414_v47  ;;  %2961 = vmatpush1.bf16.msra.mxu1 %v7416_v61 }
 0x597   :  { %3055 = vmatprep.subr.bf16.mxu0 %v7107_v1  ;;  %3098 = vmatprep.subr.bf16.mxu1 %v7115_v10  ;;  %v7562_v48 = vpack.c.bf16 %v2748_v46, %v2747_v43  ;;  %v8285_v1 = vld [vmem:[#allocation19_spill] sm:$0xff]  ;;  %v8286_v10 = vld [vmem:[#allocation17_spill] sm:$0xff]  ;;  %v8307_v43 = vld [vmem:[#allocation40_spill] sm:$0xff] }
 0x598   :  { %v8308_v46 = vld [vmem:[#allocation39_spill] sm:$0xff] }
 0x599   :  { %8284 = vst [vmem:[#allocation42_spill] sm:$0xff] %v7562_v48  ;;  %2936 = vmatmul.mubr.bf16.vlgmr.msra.gmra.mrb[92].mxu0 %v7562_v48  ;;  %2979 = vmatmul.mubr.bf16.vlgmr.msra.gmra.mrb[92].mxu1 %v7562_v48 }
 0x59a   :  { %3056 = vmatpush1.bf16.msra.mxu0 %v7125_v42  ;;  %3099 = vmatpush1.bf16.msra.mxu1 %v7135_v40  ;;  %v8287_v42 = vld [vmem:[#allocation20_spill] sm:$0xff]  ;;  %v8288_v40 = vld [vmem:[#allocation18_spill] sm:$0xff] }
 0x59b   :  { %3057 = vmatprep.subr.bf16.mxu0 %v7130_v56  ;;  %3100 = vmatprep.subr.bf16.mxu1 %v7142_v4  ;;  %v8289_v56 = vld [vmem:[#allocation22_spill] sm:$0xff]  ;;  %v8290_v4 = vld [vmem:[#allocation21_spill] sm:$0xff] }
 0x59c   :  { %3087 = vmatprep.mubr.bf16.mxu0 %v8274_v39  ;;  %3130 = vmatprep.mubr.bf16.mxu1 %v8274_v39 }
 0x59e   :  { %3058 = vmatpush1.bf16.msra.mxu0 %v7148_v36  ;;  %3101 = vmatpush1.bf16.msra.mxu1 %v7162_v17  ;;  %v8293_v36 = vld [vmem:[#allocation26_spill] sm:$0xff]  ;;  %v8294_v17 = vld [vmem:[#allocation24_spill] sm:$0xff] }
 0x59f   :  { %3059 = vmatprep.subr.bf16.mxu0 %v7156_v30  ;;  %3102 = vmatprep.subr.bf16.mxu1 %v8285_v1  ;;  %v8295_v30 = vld [vmem:[#allocation28_spill] sm:$0xff]  ;;  %v8309_v1 = vld [vmem:[#allocation41_spill] sm:$0xff] }
 0x5a2   :  { %3060 = vmatpush1.bf16.msra.mxu0 %v8286_v10  ;;  %3103 = vmatpush1.bf16.msra.mxu1 %v8287_v42 }
 0x5a3   :  { %3061 = vmatprep.subr.bf16.mxu0 %v8288_v40  ;;  %3104 = vmatprep.subr.bf16.mxu1 %v8289_v56  ;;  %v8310_v40 = vld [vmem:[#allocation43_spill] sm:$0xff] }
 0x5a6   :  { %3062 = vmatpush1.bf16.msra.mxu0 %v8290_v4  ;;  %3105 = vmatpush1.bf16.msra.mxu1 %v8291_v55 }
 0x5a7   :  { %3063 = vmatprep.subr.bf16.mxu0 %v8292_v27  ;;  %3106 = vmatprep.subr.bf16.mxu1 %v8293_v36  ;;  %v8311_v27 = vld [vmem:[#allocation44_spill] sm:$0xff] }
 0x5aa   :  { %3064 = vmatpush1.bf16.msra.mxu0 %v8294_v17  ;;  %3107 = vmatpush1.bf16.msra.mxu1 %v8295_v30 }
 0x5ab   :  { %3065 = vmatprep.subr.bf16.mxu0 %v8296_v60  ;;  %3108 = vmatprep.subr.bf16.mxu1 %v8297_v58 }
 0x5ae   :  { %3066 = vmatpush1.bf16.msra.mxu0 %v8298_v41  ;;  %3109 = vmatpush1.bf16.msra.mxu1 %v8299_v16 }
 0x5af   :  { %3067 = vmatprep.subr.bf16.mxu0 %v8300_v18  ;;  %3110 = vmatprep.subr.bf16.mxu1 %v8301_v57 }
 0x5b2   :  { %3068 = vmatpush1.bf16.msra.mxu0 %v8302_v29  ;;  %3111 = vmatpush1.bf16.msra.mxu1 %v8303_v11 }
 0x5b3   :  { %3069 = vmatprep.subr.bf16.mxu0 %v8304_v14  ;;  %3112 = vmatprep.subr.bf16.mxu1 %v8305_v5  ;;  %v8312_v14 = vld [vmem:[#allocation45_spill] sm:$0xff] }
 0x5b6   :  { %3070 = vmatpush1.bf16.msra.mxu0 %v8306_v63  ;;  %3113 = vmatpush1.bf16.msra.mxu1 %v8307_v43  ;;  %v8313_v63 = vld [vmem:[#allocation46_spill] sm:$0xff] }
 0x5b7   :  { %3207 = vmatprep.subr.bf16.mxu0 %v8308_v46  ;;  %3250 = vmatprep.subr.bf16.mxu1 %v8309_v1 }
 0x64c   :  { %v2785_v10 = vpop.f32.mrb[64].mxu0  ;;  %v2828_v42 = vpop.f32.mrb[64].mxu1 }
 0x64d   :  { %v2845_v56 = vadd.f32 %v2785_v10, %v8310_v40  ;;  %v2787_v4 = vpop.f32.mrb[65].mxu0  ;;  %v2830_v55 = vpop.f32.mrb[65].mxu1  ;;  %v2847_v43 = vadd.f32 %v2828_v42, %v8313_v63 }
 0x64e   :  { %v2846_v36 = vadd.f32 %v2787_v4, %v8311_v27  ;;  %v2789_v17 = vpop.f32.mrb[66].mxu0  ;;  %v2832_v30 = vpop.f32.mrb[66].mxu1  ;;  %v2848_v5 = vadd.f32 %v2830_v55, %v8312_v14 }
 0x64f   :  { %v5017_v60 = vmul.f32 -1.442695, %v2845_v56  ;;  %v2849_v58 = vadd.f32 %v2789_v17, %v8310_v40  ;;  %v2791_v41 = vpop.f32.mrb[67].mxu0  ;;  %v2834_v16 = vpop.f32.mrb[67].mxu1  ;;  %v2851_v10 = vadd.f32 %v2832_v30, %v8313_v63 }
 0x650   :  { %v5019_v18 = vmul.f32 -1.442695, %v2846_v36  ;;  %v2850_v57 = vadd.f32 %v2791_v41, %v8311_v27  ;;  %v5021_v46 = vmul.f32 -1.442695, %v2848_v5  ;;  %v2852_v1 = vadd.f32 %v2834_v16, %v8312_v14 }
 0x651   :  { %5946 = vpow2.f32 %v5017_v60  ;;  %v5018_v29 = vmul.f32 -1.442695, %v2849_v58 }
 0x652   :  { %5948 = vpow2.f32 %v5019_v18  ;;  %v5020_v11 = vmul.f32 -1.442695, %v2850_v57  ;;  %v5022_v17 = vmul.f32 -1.442695, %v2852_v1 }
 0x653   :  { %5950 = vpow2.f32 %v5018_v29 }
 0x654   :  { %5952 = vpow2.f32 %v5020_v11 }
 0x655   :  { %5954 = vtanh.f32 %v2847_v43 }
 0x656   :  { %5956 = vpow2.f32 %v5021_v46 }
 0x657   :  { %5958 = vtanh.f32 %v2851_v10 }
 0x65b   :  { %v5947_v56 = vpop.eup %5946 }
 0x65c   :  { %v5949_v4 = vpop.eup %5948  ;;  %v2859_v36 = vadd.f32 1.0, %v5947_v56 }
 0x65d   :  { %v2871_v60 = vadd.f32 1.0, %v5949_v4  ;;  %v5951_v58 = vpop.eup %5950 }
 0x65e   :  { %5960 = vrcp.f32 %v2859_v36  ;;  %v2860_v55 = vadd.f32 1.0, %v5951_v58  ;;  %v5953_v41 = vpop.eup %5952 }
 0x65f   :  { %5962 = vrcp.f32 %v2871_v60  ;;  %v2872_v42 = vadd.f32 1.0, %v5953_v41  ;;  %v5955_v16 = vpop.eup %5954 }
 0x660   :  { %5964 = vpow2.f32 %v5022_v17  ;;  %v5957_v18 = vpop.eup %5956 }
 0x661   :  { %5966 = vrcp.f32 %v2860_v55  ;;  %v5959_v30 = vpop.eup %5958  ;;  %v2885_v1 = vadd.f32 1.0, %v5957_v18 }
 0x662   :  { %5968 = vrcp.f32 %v2872_v42 }
 0x663   :  { %5970 = vrcp.f32 %v2885_v1 }
 0x668   :  { %v5961_v57 = vpop.eup %5960 }
 0x669   :  { %v5963_v29 = vpop.eup %5962  ;;  %v2893_v11 = vmul.f32 %v5961_v57, %v5955_v16  ;;  %v8314_v16 = vld [vmem:[#allocation47_spill] sm:$0xff] }
 0x66a   :  { %v5965_v5 = vpop.eup %5964  ;;  %v2891_v43 = vmul.f32 %v5963_v29, %v7496_v21 }
 0x66b   :  { %v5967_v46 = vpop.eup %5966  ;;  %v2886_v36 = vadd.f32 1.0, %v5965_v5 }
 0x66c   :  { %v7609_v10 = vadd.f32 %v2893_v11, %v2891_v43  ;;  %v2894_v56 = vmul.f32 %v5967_v46, %v5959_v30  ;;  %v5969_v4 = vpop.eup %5968  ;;  %v2937_v17 = vpop.f32.mrb[92].mxu0 }
 0x66d   :  { %v2980_v60 = vpop.f32.mrb[92].mxu1  ;;  %v2892_v58 = vmul.f32 %v5969_v4, %v7502_v52  ;;  %v2997_v55 = vadd.f32 %v2937_v17, %v7492_v22  ;;  %v2939_v41 = vpop.f32.mrb[93].mxu0 }
 0x66e   :  { %v2982_v42 = vpop.f32.mrb[93].mxu1  ;;  %v2998_v57 = vadd.f32 %v2939_v41, %v8314_v16  ;;  %v2941_v48 = vpop.f32.mrb[94].mxu0  ;;  %5972 = vtanh.f32 %v7609_v10  ;;  %v2999_v17 = vadd.f32 %v2980_v60, %v7512_v25 }
 0x66f   :  { %v2984_v21 = vpop.f32.mrb[94].mxu1  ;;  %v7615_v18 = vadd.f32 %v2894_v56, %v2892_v58  ;;  %v5023_v30 = vmul.f32 -1.442695, %v2997_v55  ;;  %v3001_v29 = vadd.f32 %v2941_v48, %v7492_v22  ;;  %v2943_v11 = vpop.f32.mrb[95].mxu0  ;;  %5974 = vrcp.f32 %v2886_v36 }
 0x670   :  { %v2986_v5 = vpop.f32.mrb[95].mxu1  ;;  %v5025_v52 = vmul.f32 -1.442695, %v2998_v57  ;;  %v3002_v43 = vadd.f32 %v2943_v11, %v8314_v16  ;;  %v3000_v4 = vadd.f32 %v2982_v42, %v7507_v53  ;;  %v5971_v56 = vpop.eup %5970  ;;  %v3003_v41 = vadd.f32 %v2984_v21, %v7512_v25 }
 0x671   :  { %5976 = vtanh.f32 %v7615_v18  ;;  %v5024_v46 = vmul.f32 -1.442695, %v3001_v29  ;;  %v3004_v36 = vadd.f32 %v2986_v5, %v7507_v53 }
 0x672   :  { %5978 = vpow2.f32 %v5023_v30  ;;  %v5026_v1 = vmul.f32 -1.442695, %v3002_v43  ;;  %v5027_v58 = vmul.f32 -1.442695, %v3000_v4 }
 0x673   :  { %5980 = vpow2.f32 %v5025_v52  ;;  %v5028_v42 = vmul.f32 -1.442695, %v3004_v36  ;;  %v7755_v36 = vld [vmem:[%s8171_s6 + $0x6c] ss:$16 sps:$4 sm:$0xff]  }
 0x674   :  { %5982 = vpow2.f32 %v5024_v46 }
 0x675   :  { %5984 = vpow2.f32 %v5026_v1 }
 0x676   :  { %5986 = vtanh.f32 %v2999_v17 }
 0x677   :  { %5988 = vpow2.f32 %v5027_v58 }
 0x678   :  { %v5973_v48 = vpop.eup %5972  ;;  %5990 = vtanh.f32 %v3003_v41  ;;  %v7767_v41 = vld [vmem:[%s8171_s6 + $0x68] ss:$16 sps:$4 sm:$0xff]  }
 0x679   :  { %v5975_v55 = vpop.eup %5974  ;;  %v2899_v30 = vmul.f32 %v5973_v48, %v5971_v56 }
 0x67b   :  { %v5977_v57 = vpop.eup %5976 }
 0x67c   :  { %v5979_v11 = vpop.eup %5978  ;;  %v2900_v29 = vmul.f32 %v5977_v57, %v5975_v55  ;;  %v7761_v55 = vld [vmem:[%s8171_s6 + $0x60] ss:$16 sps:$4 sm:$0xff]   ;;  %v7773_v57 = vld [vmem:[%s8171_s6 + $0x84] ss:$16 sps:$4 sm:$0xff]  }
 0x67d   :  { %v5981_v52 = vpop.eup %5980  ;;  %v3011_v43 = vadd.f32 1.0, %v5979_v11  ;;  %v7779_v11 = vld [vmem:[%s8171_s6 + $0x8c] ss:$16 sps:$4 sm:$0xff]  }
 0x67e   :  { %v3023_v46 = vadd.f32 1.0, %v5981_v52  ;;  %v7624_v1 = vpack.c.bf16 %v2900_v29, %v2899_v30  ;;  %v5983_v60 = vpop.eup %5982  ;;  %v7785_v30 = vld [vmem:[%s8171_s6 + $0x80] ss:$16 sps:$4 sm:$0xff]   ;;  %v7791_v29 = vld [vmem:[%s8171_s6 + $0x88] ss:$16 sps:$4 sm:$0xff]  }
 0x67f   :  { %5992 = vrcp.f32 %v3011_v43  ;;  %v3012_v5 = vadd.f32 1.0, %v5983_v60  ;;  %v5985_v21 = vpop.eup %5984  ;;  %v7797_v52 = vld [vmem:[%s8171_s6 + $0xa4] ss:$16 sps:$4 sm:$0xff]   ;;  %v7803_v43 = vld [vmem:[%s8171_s6 + $0xac] ss:$16 sps:$4 sm:$0xff]  }
 0x680   :  { %8315 = vst [vmem:[#allocation19_spill] sm:$0xff] %v7624_v1  ;;  %5994 = vrcp.f32 %v3023_v46  ;;  %3088 = vmatmul.mubr.bf16.vlgmr.msra.gmra.mrb[68].mxu0 %v7624_v1  ;;  %3131 = vmatmul.mubr.bf16.vlgmr.msra.gmra.mrb[68].mxu1 %v7624_v1  ;;  %v3024_v4 = vadd.f32 1.0, %v5985_v21  ;;  %v5987_v56 = vpop.eup %5986  ;;  %v7815_v46 = vld [vmem:[%s8171_s6 + $0xa8] ss:$16 sps:$4 sm:$0xff]   ;;  %v7821_v60 = vld [vmem:[%s8171_s6 + $0xc4] ss:$16 sps:$4 sm:$0xff]  }
 0x681   :  { %5996 = vpow2.f32 %v5028_v42  ;;  %3208 = vmatpush1.bf16.msra.mxu0 %v7328_v15  ;;  %3251 = vmatpush1.bf16.msra.mxu1 %v7330_v12  ;;  %v5989_v15 = vpop.eup %5988  ;;  %v7809_v42 = vld [vmem:[%s8171_s6 + $0xa0] ss:$16 sps:$4 sm:$0xff]  }
 0x682   :  { %5998 = vrcp.f32 %v3012_v5  ;;  %3209 = vmatprep.subr.bf16.mxu0 %v7332_v49  ;;  %3252 = vmatprep.subr.bf16.mxu1 %v7334_v6  ;;  %v5991_v12 = vpop.eup %5990  ;;  %v7827_v5 = vld [vmem:[%s8171_s6 + $0xcc] ss:$16 sps:$4 sm:$0xff]   ;;  %v7833_v21 = vld [vmem:[%s8171_s6 + $0xc0] ss:$16 sps:$4 sm:$0xff]  }
 0x683   :  { %3239 = vmatprep.mubr.bf16.mxu0 %v8274_v39  ;;  %3282 = vmatprep.mubr.bf16.mxu1 %v8274_v39  ;;  %6000 = vrcp.f32 %v3024_v4  ;;  %v7839_v4 = vld [vmem:[%s8171_s6 + $0xc8] ss:$16 sps:$4 sm:$0xff]  }
 0x685   :  { %3210 = vmatpush1.bf16.msra.mxu0 %v7340_v33  ;;  %3253 = vmatpush1.bf16.msra.mxu1 %v7342_v54 }
 0x686   :  { %3211 = vmatprep.subr.bf16.mxu0 %v7346_v45  ;;  %3254 = vmatprep.subr.bf16.mxu1 %v7348_v9  ;;  %v3037_v45 = vadd.f32 1.0, %v5989_v15  ;;  %v7851_v15 = vld [vmem:[%s8171_s6 + $0xec] ss:$16 sps:$4 sm:$0xff]  }
 0x688   :  { %6002 = vrcp.f32 %v3037_v45 }
 0x689   :  { %v5993_v17 = vpop.eup %5992  ;;  %3212 = vmatpush1.bf16.msra.mxu0 %v7354_v28  ;;  %3255 = vmatpush1.bf16.msra.mxu1 %v7356_v32 }
 0x68a   :  { %v5995_v49 = vpop.eup %5994  ;;  %v3045_v6 = vmul.f32 %v5993_v17, %v5987_v56  ;;  %3213 = vmatprep.subr.bf16.mxu0 %v7360_v26  ;;  %3256 = vmatprep.subr.bf16.mxu1 %v7362_v3  ;;  %v7845_v56 = vld [vmem:[%s8171_s6 + $0xe4] ss:$16 sps:$4 sm:$0xff]   ;;  %v7863_v17 = vld [vmem:[%s8171_s6 + $0xe8] ss:$16 sps:$4 sm:$0xff]  }
 0x68b   :  { %v5997_v33 = vpop.eup %5996  ;;  %v3043_v54 = vmul.f32 %v5995_v49, %v7536_v7  ;;  %v7737_v7 = vld [vmem:[%s8171_s6 + $0x40] ss:$16 sps:$4 sm:$0xff]   ;;  %v7866_v49 = vld [vmem:[#allocation11 + $0x4] ss:$16 sps:$4 sm:$0xff]  }
 0x68c   :  { %v5999_v48 = vpop.eup %5998  ;;  %v3038_v32 = vadd.f32 1.0, %v5997_v33 }
 0x68d   :  { %v7643_v58 = vadd.f32 %v3045_v6, %v3043_v54  ;;  %v3046_v9 = vmul.f32 %v5999_v48, %v5991_v12  ;;  %3214 = vmatpush1.bf16.msra.mxu0 %v7366_v13  ;;  %3257 = vmatpush1.bf16.msra.mxu1 %v7368_v2  ;;  %v6001_v28 = vpop.eup %6000  ;;  %v7857_v12 = vld [vmem:[%s8171_s6 + $0xe0] ss:$16 sps:$4 sm:$0xff]   ;;  %v7869_v6 = vld [vmem:[#allocation11 + $0xc] ss:$16 sps:$4 sm:$0xff]  }
 0x68e   :  { %3215 = vmatprep.subr.bf16.mxu0 %v7372_v19  ;;  %3258 = vmatprep.subr.bf16.mxu1 %v7374_v44  ;;  %v3044_v26 = vmul.f32 %v6001_v28, %v7543_v20  ;;  %v7743_v20 = vld [vmem:[%s8171_s6 + $0x48] ss:$16 sps:$4 sm:$0xff]   ;;  %8317 = vst [vmem:[#allocation20_spill] sm:$0xff] %v7869_v6 }
 0x68f   :  { %6004 = vtanh.f32 %v7643_v58 }
 0x690   :  { %v7651_v3 = vadd.f32 %v3046_v9, %v3044_v26  ;;  %6006 = vrcp.f32 %v3038_v32 }
 0x691   :  { %3216 = vmatpush1.bf16.msra.mxu0 %v7378_v24  ;;  %3259 = vmatpush1.bf16.msra.mxu1 %v7380_v35 }
 0x692   :  { %3217 = vmatprep.subr.bf16.mxu0 %v7384_v50  ;;  %3260 = vmatprep.subr.bf16.mxu1 %v7386_v51  ;;  %6008 = vtanh.f32 %v7651_v3  ;;  %v6003_v13 = vpop.eup %6002  ;;  %v7671_v50 = vld [vmem:[%s8171_s6 + $0x4] ss:$16 sps:$4 sm:$0xff]   ;;  %v7677_v51 = vld [vmem:[%s8171_s6 + $0xc] ss:$16 sps:$4 sm:$0xff]  }
 0x695   :  { %3218 = vmatpush1.bf16.msra.mxu0 %v7390_v31  ;;  %3261 = vmatpush1.bf16.msra.mxu1 %v7392_v59  ;;  %v7693_v59 = vld [vmem:[%s8171_s6 + $0x8] ss:$16 sps:$4 sm:$0xff]  }
 0x696   :  { %3219 = vmatprep.subr.bf16.mxu0 %v7396_v37  ;;  %3262 = vmatprep.subr.bf16.mxu1 %v8283_v8  ;;  %v7699_v37 = vld [vmem:[%s8171_s6 + $0x24] ss:$16 sps:$4 sm:$0xff]  }
 0x697   :  { %v7749_v8 = vld [vmem:[%s8171_s6 + $0x64] ss:$16 sps:$4 sm:$0xff]  }
 0x699   :  { %3220 = vmatpush1.bf16.msra.mxu0 %v7402_v23  ;;  %3263 = vmatpush1.bf16.msra.mxu1 %v7404_v62  ;;  %v6005_v2 = vpop.eup %6004  ;;  %v7705_v23 = vld [vmem:[%s8171_s6 + $0x2c] ss:$16 sps:$4 sm:$0xff]   ;;  %v7713_v62 = vld [vmem:[%s8171_s6 + $0x20] ss:$16 sps:$4 sm:$0xff]  }
 0x69a   :  { %3221 = vmatprep.subr.bf16.mxu0 %v7408_v38  ;;  %3264 = vmatprep.subr.bf16.mxu1 %v7410_v34  ;;  %v6007_v19 = vpop.eup %6006  ;;  %v3051_v24 = vmul.f32 %v6005_v2, %v6003_v13  ;;  %v7719_v38 = vld [vmem:[%s8171_s6 + $0x28] ss:$16 sps:$4 sm:$0xff]   ;;  %v7725_v34 = vld [vmem:[%s8171_s6 + $0x44] ss:$16 sps:$4 sm:$0xff]  }
 0x69c   :  { %v6009_v44 = vpop.eup %6008 }
 0x69d   :  { %3222 = vmatpush1.bf16.msra.mxu0 %v7414_v47  ;;  %3265 = vmatpush1.bf16.msra.mxu1 %v7416_v61  ;;  %v3052_v35 = vmul.f32 %v6009_v44, %v6007_v19  ;;  %v7687_v61 = vld [vmem:[%s8171_s6] ss:$16 sps:$4 sm:$0xff]   ;;  %v7731_v47 = vld [vmem:[%s8171_s6 + $0x4c] ss:$16 sps:$4 sm:$0xff]  }
 0x69e   :  { %3359 = vmatprep.subr.bf16.mxu0 %v7671_v50  ;;  %3402 = vmatprep.subr.bf16.mxu1 %v7677_v51 }
 0x69f   :  { %v7680_v31 = vpack.c.bf16 %v3052_v35, %v3051_v24 }
 0x6a1   :  { %8316 = vst [vmem:[#allocation17_spill] sm:$0xff] %v7680_v31  ;;  %3240 = vmatmul.mubr.bf16.vlgmr.msra.gmra.mrb[88].mxu0 %v7680_v31  ;;  %3283 = vmatmul.mubr.bf16.vlgmr.msra.gmra.mrb[88].mxu1 %v7680_v31 }
 0x6a2   :  { %3360 = vmatpush1.bf16.msra.mxu0 %v7687_v61  ;;  %3403 = vmatpush1.bf16.msra.mxu1 %v7693_v59 }
 0x6a3   :  { %3361 = vmatprep.subr.bf16.mxu0 %v7699_v37  ;;  %3404 = vmatprep.subr.bf16.mxu1 %v7705_v23 }
 0x6a4   :  { %3391 = vmatprep.mubr.bf16.mxu0 %v8274_v39  ;;  %3434 = vmatprep.mubr.bf16.mxu1 %v8274_v39 }
 0x6a6   :  { %3362 = vmatpush1.bf16.msra.mxu0 %v7713_v62  ;;  %3405 = vmatpush1.bf16.msra.mxu1 %v7719_v38 }
 0x6a7   :  { %3363 = vmatprep.subr.bf16.mxu0 %v7725_v34  ;;  %3406 = vmatprep.subr.bf16.mxu1 %v7731_v47 }
 0x6aa   :  { %3364 = vmatpush1.bf16.msra.mxu0 %v7737_v7  ;;  %3407 = vmatpush1.bf16.msra.mxu1 %v7743_v20 }
 0x6ab   :  { %3365 = vmatprep.subr.bf16.mxu0 %v7749_v8  ;;  %3408 = vmatprep.subr.bf16.mxu1 %v7755_v36 }
 0x6ae   :  { %3366 = vmatpush1.bf16.msra.mxu0 %v7761_v55  ;;  %3409 = vmatpush1.bf16.msra.mxu1 %v7767_v41 }
 0x6af   :  { %3367 = vmatprep.subr.bf16.mxu0 %v7773_v57  ;;  %3410 = vmatprep.subr.bf16.mxu1 %v7779_v11 }
 0x6b2   :  { %3368 = vmatpush1.bf16.msra.mxu0 %v7785_v30  ;;  %3411 = vmatpush1.bf16.msra.mxu1 %v7791_v29 }
 0x6b3   :  { %3369 = vmatprep.subr.bf16.mxu0 %v7797_v52  ;;  %3412 = vmatprep.subr.bf16.mxu1 %v7803_v43 }
 0x6b6   :  { %3370 = vmatpush1.bf16.msra.mxu0 %v7809_v42  ;;  %3413 = vmatpush1.bf16.msra.mxu1 %v7815_v46 }
 0x6b7   :  { %3371 = vmatprep.subr.bf16.mxu0 %v7821_v60  ;;  %3414 = vmatprep.subr.bf16.mxu1 %v7827_v5 }
 0x6ba   :  { %3372 = vmatpush1.bf16.msra.mxu0 %v7833_v21  ;;  %3415 = vmatpush1.bf16.msra.mxu1 %v7839_v4 }
 0x6bb   :  { %3373 = vmatprep.subr.bf16.mxu0 %v7845_v56  ;;  %3416 = vmatprep.subr.bf16.mxu1 %v7851_v15 }
 0x6be   :  { %3374 = vmatpush1.bf16.msra.mxu0 %v7857_v12  ;;  %3417 = vmatpush1.bf16.msra.mxu1 %v7863_v17 }
 0x6bf   :  { %3511 = vmatprep.subr.bf16.mxu0 %v7866_v49  ;;  %3554 = vmatprep.subr.bf16.mxu1 %v7869_v6 }
 0x753   :  { %v3089_v33 = vpop.f32.mrb[68].mxu0  ;;  %v3132_v54 = vpop.f32.mrb[68].mxu1 }
 0x754   :  { %v3149_v48 = vadd.f32 %v3089_v33, %v8310_v40  ;;  %v3091_v45 = vpop.f32.mrb[69].mxu0  ;;  %v3134_v9 = vpop.f32.mrb[69].mxu1 }
 0x755   :  { %v3150_v28 = vadd.f32 %v3091_v45, %v8311_v27  ;;  %v3093_v32 = vpop.f32.mrb[70].mxu0  ;;  %v3136_v26 = vpop.f32.mrb[70].mxu1  ;;  %v3152_v33 = vadd.f32 %v3134_v9, %v8312_v14  ;;  %v3151_v45 = vadd.f32 %v3132_v54, %v8313_v63 }
 0x756   :  { %v5029_v13 = vmul.f32 -1.442695, %v3149_v48  ;;  %v3153_v2 = vadd.f32 %v3093_v32, %v8310_v40  ;;  %v3095_v19 = vpop.f32.mrb[71].mxu0  ;;  %v3138_v44 = vpop.f32.mrb[71].mxu1  ;;  %v3155_v32 = vadd.f32 %v3136_v26, %v8313_v63 }
 0x757   :  { %v5031_v24 = vmul.f32 -1.442695, %v3150_v28  ;;  %v3154_v35 = vadd.f32 %v3095_v19, %v8311_v27  ;;  %v5033_v1 = vmul.f32 -1.442695, %v3152_v33  ;;  %v3156_v48 = vadd.f32 %v3138_v44, %v8312_v14 }
 0x758   :  { %6010 = vpow2.f32 %v5029_v13  ;;  %v5030_v0 = vmul.f32 -1.442695, %v3153_v2 }
 0x759   :  { %6012 = vpow2.f32 %v5031_v24  ;;  %v5032_v31 = vmul.f32 -1.442695, %v3154_v35  ;;  %v5034_v13 = vmul.f32 -1.442695, %v3156_v48 }
 0x75a   :  { %6014 = vpow2.f32 %v5030_v0 }
 0x75b   :  { %6016 = vpow2.f32 %v5032_v31 }
 0x75c   :  { %6018 = vtanh.f32 %v3151_v45 }
 0x75d   :  { %6020 = vpow2.f32 %v5033_v1 }
 0x75e   :  { %6022 = vtanh.f32 %v3155_v32 }
 0x762   :  { %v6011_v40 = vpop.eup %6010 }
 0x763   :  { %v6013_v28 = vpop.eup %6012  ;;  %v3163_v6 = vadd.f32 1.0, %v6011_v40 }
 0x764   :  { %v3175_v2 = vadd.f32 1.0, %v6013_v28  ;;  %v6015_v19 = vpop.eup %6014 }
 0x765   :  { %6024 = vrcp.f32 %v3163_v6  ;;  %v3164_v0 = vadd.f32 1.0, %v6015_v19  ;;  %v6017_v31 = vpop.eup %6016 }
 0x766   :  { %6026 = vrcp.f32 %v3175_v2  ;;  %v3176_v54 = vadd.f32 1.0, %v6017_v31  ;;  %v6019_v9 = vpop.eup %6018 }
 0x767   :  { %6028 = vpow2.f32 %v5034_v13  ;;  %v6021_v44 = vpop.eup %6020 }
 0x768   :  { %6030 = vrcp.f32 %v3164_v0  ;;  %v6023_v26 = vpop.eup %6022  ;;  %v3189_v48 = vadd.f32 1.0, %v6021_v44 }
 0x769   :  { %6032 = vrcp.f32 %v3176_v54 }
 0x76a   :  { %6034 = vrcp.f32 %v3189_v48 }
 0x76f   :  { %v6025_v24 = vpop.eup %6024 }
 0x770   :  { %v6027_v35 = vpop.eup %6026  ;;  %v3197_v33 = vmul.f32 %v6025_v24, %v6019_v9 }
 0x771   :  { %v6029_v40 = vpop.eup %6028  ;;  %v3195_v1 = vmul.f32 %v6027_v35, %v7609_v10 }
 0x772   :  { %v6031_v45 = vpop.eup %6030  ;;  %v3190_v2 = vadd.f32 1.0, %v6029_v40 }
 0x773   :  { %v7881_v32 = vadd.f32 %v3197_v33, %v3195_v1  ;;  %v3198_v6 = vmul.f32 %v6031_v45, %v6023_v26  ;;  %v6033_v28 = vpop.eup %6032 }
 0x774   :  { %v3196_v13 = vmul.f32 %v6033_v28, %v7615_v18  ;;  %v3241_v19 = vpop.f32.mrb[88].mxu0  ;;  %v3284_v0 = vpop.f32.mrb[88].mxu1 }
 0x775   :  { %v3301_v31 = vadd.f32 %v3241_v19, %v7492_v22  ;;  %v3243_v54 = vpop.f32.mrb[89].mxu0  ;;  %v3286_v63 = vpop.f32.mrb[89].mxu1  ;;  %6036 = vtanh.f32 %v7881_v32 }
 0x776   :  { %v7886_v9 = vadd.f32 %v3198_v6, %v3196_v13  ;;  %v3302_v10 = vadd.f32 %v3243_v54, %v8314_v16  ;;  %v3245_v44 = vpop.f32.mrb[90].mxu0  ;;  %v3288_v24 = vpop.f32.mrb[90].mxu1  ;;  %6038 = vrcp.f32 %v3190_v2  ;;  %v3304_v6 = vadd.f32 %v3286_v63, %v7507_v53 }
 0x777   :  { %v5035_v26 = vmul.f32 -1.442695, %v3301_v31  ;;  %v3305_v35 = vadd.f32 %v3245_v44, %v7492_v22  ;;  %v3247_v18 = vpop.f32.mrb[91].mxu0  ;;  %v3290_v33 = vpop.f32.mrb[91].mxu1  ;;  %v3303_v2 = vadd.f32 %v3284_v0, %v7512_v25 }
 0x778   :  { %6040 = vtanh.f32 %v7886_v9  ;;  %v5037_v40 = vmul.f32 -1.442695, %v3302_v10  ;;  %v3306_v1 = vadd.f32 %v3247_v18, %v8314_v16  ;;  %v6035_v28 = vpop.eup %6034  ;;  %v5039_v19 = vmul.f32 -1.442695, %v3304_v6  ;;  %v7900_v6 = vld [vmem:[#allocation11] ss:$16 sps:$4 sm:$0xff]  }
 0x779   :  { %6042 = vpow2.f32 %v5035_v26  ;;  %v5036_v45 = vmul.f32 -1.442695, %v3305_v35  ;;  %v3308_v31 = vadd.f32 %v3290_v33, %v7507_v53  ;;  %v3307_v10 = vadd.f32 %v3288_v24, %v7512_v25 }
 0x77a   :  { %6044 = vpow2.f32 %v5037_v40  ;;  %v5038_v48 = vmul.f32 -1.442695, %v3306_v1 }
 0x77b   :  { %6046 = vpow2.f32 %v5036_v45  ;;  %v5040_v63 = vmul.f32 -1.442695, %v3308_v31  ;;  %v7914_v31 = vld [vmem:[#allocation11 + $0x20] ss:$16 sps:$4 sm:$0xff]  }
 0x77c   :  { %6048 = vpow2.f32 %v5038_v48  ;;  %8319 = vst [vmem:[#allocation22_spill] sm:$0xff] %v7914_v31 }
 0x77d   :  { %6050 = vtanh.f32 %v3303_v2 }
 0x77e   :  { %6052 = vpow2.f32 %v5039_v19  ;;  %v7909_v19 = vld [vmem:[#allocation11 + $0x2c] ss:$16 sps:$4 sm:$0xff]  }
 0x77f   :  { %v6037_v13 = vpop.eup %6036  ;;  %6054 = vtanh.f32 %v3307_v10 }
 0x780   :  { %v6039_v54 = vpop.eup %6038  ;;  %v3203_v26 = vmul.f32 %v6037_v13, %v6035_v28  ;;  %v7903_v28 = vld [vmem:[#allocation11 + $0x8] ss:$16 sps:$4 sm:$0xff]   ;;  %v7906_v13 = vld [vmem:[#allocation11 + $0x24] ss:$16 sps:$4 sm:$0xff]  }
 0x782   :  { %v6041_v44 = vpop.eup %6040 }
 0x783   :  { %v6043_v18 = vpop.eup %6042  ;;  %v3204_v35 = vmul.f32 %v6041_v44, %v6039_v54  ;;  %v7917_v54 = vld [vmem:[#allocation11 + $0x28] ss:$16 sps:$4 sm:$0xff]   ;;  %v7920_v44 = vld [vmem:[#allocation11 + $0x44] ss:$16 sps:$4 sm:$0xff]  }
 0x784   :  { %v6045_v40 = vpop.eup %6044  ;;  %v3315_v1 = vadd.f32 1.0, %v6043_v18  ;;  %8320 = vst [vmem:[#allocation21_spill] sm:$0xff] %v7917_v54  ;;  %8321 = vst [vmem:[#allocation25_spill] sm:$0xff] %v7920_v44  ;;  %v7923_v18 = vld [vmem:[#allocation11 + $0x4c] ss:$16 sps:$4 sm:$0xff]  }
 0x785   :  { %v3327_v45 = vadd.f32 1.0, %v6045_v40  ;;  %v7896_v48 = vpack.c.bf16 %v3204_v35, %v3203_v26  ;;  %v6047_v0 = vpop.eup %6046  ;;  %8322 = vst [vmem:[#allocation23_spill] sm:$0xff] %v7923_v18 }
 0x786   :  { %6056 = vrcp.f32 %v3315_v1  ;;  %v3316_v33 = vadd.f32 1.0, %v6047_v0  ;;  %v6049_v24 = vpop.eup %6048  ;;  %v7926_v1 = vld [vmem:[#allocation11 + $0x40] ss:$16 sps:$4 sm:$0xff]  }
 0x787   :  { %8318 = vst [vmem:[#allocation18_spill] sm:$0xff] %v7896_v48  ;;  %6058 = vrcp.f32 %v3327_v45  ;;  %3392 = vmatmul.mubr.bf16.vlgmr.msra.gmra.mrb[72].mxu0 %v7896_v48  ;;  %3435 = vmatmul.mubr.bf16.vlgmr.msra.gmra.mrb[72].mxu1 %v7896_v48  ;;  %v3328_v2 = vadd.f32 1.0, %v6049_v24  ;;  %v6051_v10 = vpop.eup %6050  ;;  %8323 = vst [vmem:[#allocation26_spill] sm:$0xff] %v7926_v1  ;;  %v7935_v24 = vld [vmem:[#allocation11 + $0x6c] ss:$16 sps:$4 sm:$0xff]  }
 0x788   :  { %6060 = vpow2.f32 %v5040_v63  ;;  %3512 = vmatpush1.bf16.msra.mxu0 %v7900_v6  ;;  %3555 = vmatpush1.bf16.msra.mxu1 %v7903_v28  ;;  %v6053_v26 = vpop.eup %6052  ;;  %v7929_v63 = vld [vmem:[#allocation11 + $0x48] ss:$16 sps:$4 sm:$0xff]  }
 0x789   :  { %6062 = vrcp.f32 %v3316_v33  ;;  %3513 = vmatprep.subr.bf16.mxu0 %v7906_v13  ;;  %3556 = vmatprep.subr.bf16.mxu1 %v7909_v19  ;;  %v6055_v35 = vpop.eup %6054  ;;  %8324 = vst [vmem:[#allocation24_spill] sm:$0xff] %v7929_v63  ;;  %v7932_v33 = vld [vmem:[#allocation11 + $0x64] ss:$16 sps:$4 sm:$0xff]  }
 0x78a   :  { %3543 = vmatprep.mubr.bf16.mxu0 %v8274_v39  ;;  %3586 = vmatprep.mubr.bf16.mxu1 %v8274_v39  ;;  %6064 = vrcp.f32 %v3328_v2  ;;  %8325 = vst [vmem:[#allocation28_spill] sm:$0xff] %v7932_v33 }
 0x78c   :  { %3514 = vmatpush1.bf16.msra.mxu0 %v7914_v31  ;;  %3557 = vmatpush1.bf16.msra.mxu1 %v7917_v54  ;;  %v7941_v31 = vld [vmem:[#allocation11 + $0x60] ss:$16 sps:$4 sm:$0xff]  }
 0x78d   :  { %3515 = vmatprep.subr.bf16.mxu0 %v7920_v44  ;;  %3558 = vmatprep.subr.bf16.mxu1 %v7923_v18  ;;  %v3341_v44 = vadd.f32 1.0, %v6053_v26  ;;  %v7957_v26 = vld [vmem:[#allocation11 + $0x80] ss:$16 sps:$4 sm:$0xff]  }
 0x78f   :  { %6066 = vrcp.f32 %v3341_v44  ;;  %v7976_v44 = vld [vmem:[#allocation11 + $0xc4] ss:$16 sps:$4 sm:$0xff]  }
 0x790   :  { %v6057_v40 = vpop.eup %6056  ;;  %3516 = vmatpush1.bf16.msra.mxu0 %v7926_v1  ;;  %3559 = vmatpush1.bf16.msra.mxu1 %v7929_v63  ;;  %v7947_v63 = vld [vmem:[#allocation11 + $0x84] ss:$16 sps:$4 sm:$0xff]   ;;  %8331 = vst [vmem:[#allocation34_spill] sm:$0xff] %v7976_v44 }
 0x791   :  { %v6059_v45 = vpop.eup %6058  ;;  %v3349_v0 = vmul.f32 %v6057_v40, %v6051_v10  ;;  %3517 = vmatprep.subr.bf16.mxu0 %v7932_v33  ;;  %3560 = vmatprep.subr.bf16.mxu1 %v7935_v24  ;;  %v7944_v10 = vld [vmem:[#allocation11 + $0x68] ss:$16 sps:$4 sm:$0xff]  }
 0x792   :  { %v6061_v2 = vpop.eup %6060  ;;  %v3347_v48 = vmul.f32 %v6059_v45, %v7643_v58  ;;  %v7950_v58 = vld [vmem:[#allocation11 + $0x8c] ss:$16 sps:$4 sm:$0xff]   ;;  %v7963_v45 = vld [vmem:[#allocation11 + $0xa4] ss:$16 sps:$4 sm:$0xff]  }
 0x793   :  { %v6063_v18 = vpop.eup %6062  ;;  %v3342_v33 = vadd.f32 1.0, %v6061_v2  ;;  %8327 = vst [vmem:[#allocation30_spill] sm:$0xff] %v7963_v45  ;;  %v7982_v2 = vld [vmem:[#allocation11 + $0xc0] ss:$16 sps:$4 sm:$0xff]  }
 0x794   :  { %v7939_v1 = vadd.f32 %v3349_v0, %v3347_v48  ;;  %v3350_v54 = vmul.f32 %v6063_v18, %v6055_v35  ;;  %3518 = vmatpush1.bf16.msra.mxu0 %v7941_v31  ;;  %3561 = vmatpush1.bf16.msra.mxu1 %v7944_v10  ;;  %v6065_v40 = vpop.eup %6064  ;;  %v7960_v35 = vld [vmem:[#allocation11 + $0x88] ss:$16 sps:$4 sm:$0xff]   ;;  %v7966_v0 = vld [vmem:[#allocation11 + $0xac] ss:$16 sps:$4 sm:$0xff]   ;;  %8333 = vst [vmem:[#allocation36_spill] sm:$0xff] %v7982_v2 }
 0x795   :  { %3519 = vmatprep.subr.bf16.mxu0 %v7947_v63  ;;  %3562 = vmatprep.subr.bf16.mxu1 %v7950_v58  ;;  %v3348_v48 = vmul.f32 %v6065_v40, %v7651_v3  ;;  %8326 = vst [vmem:[#allocation27_spill] sm:$0xff] %v7960_v35  ;;  %8328 = vst [vmem:[#allocation29_spill] sm:$0xff] %v7966_v0  ;;  %v7970_v3 = vld [vmem:[#allocation11 + $0xa0] ss:$16 sps:$4 sm:$0xff]   ;;  %v7985_v40 = vld [vmem:[#allocation11 + $0xc8] ss:$16 sps:$4 sm:$0xff]  }
 0x796   :  { %6068 = vtanh.f32 %v7939_v1  ;;  %8329 = vst [vmem:[#allocation32_spill] sm:$0xff] %v7970_v3  ;;  %8334 = vst [vmem:[#allocation35_spill] sm:$0xff] %v7985_v40 }
 0x797   :  { %v7955_v18 = vadd.f32 %v3350_v54, %v3348_v48  ;;  %6070 = vrcp.f32 %v3342_v33  ;;  %v7973_v54 = vld [vmem:[#allocation11 + $0xa8] ss:$16 sps:$4 sm:$0xff]   ;;  %v7979_v33 = vld [vmem:[#allocation11 + $0xcc] ss:$16 sps:$4 sm:$0xff]  }
 0x798   :  { %3520 = vmatpush1.bf16.msra.mxu0 %v7957_v26  ;;  %3563 = vmatpush1.bf16.msra.mxu1 %v7960_v35  ;;  %8330 = vst [vmem:[#allocation31_spill] sm:$0xff] %v7973_v54  ;;  %8332 = vst [vmem:[#allocation33_spill] sm:$0xff] %v7979_v33 }
 0x799   :  { %3521 = vmatprep.subr.bf16.mxu0 %v7963_v45  ;;  %3564 = vmatprep.subr.bf16.mxu1 %v7966_v0  ;;  %6072 = vtanh.f32 %v7955_v18  ;;  %v6067_v48 = vpop.eup %6066  ;;  %v7994_v45 = vld [vmem:[#allocation11 + $0xe0] ss:$16 sps:$4 sm:$0xff]  }
 0x79c   :  { %3522 = vmatpush1.bf16.msra.mxu0 %v7970_v3  ;;  %3565 = vmatpush1.bf16.msra.mxu1 %v7973_v54  ;;  %v7988_v3 = vld [vmem:[#allocation11 + $0xe4] ss:$16 sps:$4 sm:$0xff]   ;;  %v7991_v54 = vld [vmem:[#allocation11 + $0xec] ss:$16 sps:$4 sm:$0xff]  }
 0x79d   :  { %3523 = vmatprep.subr.bf16.mxu0 %v7976_v44  ;;  %3566 = vmatprep.subr.bf16.mxu1 %v7979_v33  ;;  %8335 = vst [vmem:[#allocation38_spill] sm:$0xff] %v7988_v3 }
 0x7a0   :  { %3524 = vmatpush1.bf16.msra.mxu0 %v7982_v2  ;;  %3567 = vmatpush1.bf16.msra.mxu1 %v7985_v40  ;;  %v6069_v44 = vpop.eup %6068  ;;  %v7997_v2 = vld [vmem:[#allocation11 + $0xe8] ss:$16 sps:$4 sm:$0xff]  }
 0x7a1   :  { %3525 = vmatprep.subr.bf16.mxu0 %v7988_v3  ;;  %3568 = vmatprep.subr.bf16.mxu1 %v7991_v54  ;;  %v6071_v0 = vpop.eup %6070  ;;  %v3355_v40 = vmul.f32 %v6069_v44, %v6067_v48 }
 0x7a3   :  { %v6073_v33 = vpop.eup %6072 }
 0x7a4   :  { %3526 = vmatpush1.bf16.msra.mxu0 %v7994_v45  ;;  %3569 = vmatpush1.bf16.msra.mxu1 %v7997_v2  ;;  %v3356_v35 = vmul.f32 %v6073_v33, %v6071_v0 }
 0x7a5   :  { %3663 = vmatprep.subr.bf16.mxu0 %v7671_v50  ;;  %3706 = vmatprep.subr.bf16.mxu1 %v7677_v51  ;;  %v8336_v50 = vld [vmem:[#allocation20_spill] sm:$0xff] }
 0x7a6   :  { %v8002_v3 = vpack.c.bf16 %v3356_v35, %v3355_v40 }
 0x7a8   :  { %3544 = vmatmul.mubr.bf16.vlgmr.msra.gmra.mrb[84].mxu0 %v8002_v3  ;;  %3587 = vmatmul.mubr.bf16.vlgmr.msra.gmra.mrb[84].mxu1 %v8002_v3 }
 0x7a9   :  { %3664 = vmatpush1.bf16.msra.mxu0 %v7687_v61  ;;  %3707 = vmatpush1.bf16.msra.mxu1 %v7693_v59  ;;  %v8337_v59 = vld [vmem:[#allocation43_spill] sm:$0xff] }
 0x7aa   :  { %3665 = vmatprep.subr.bf16.mxu0 %v7699_v37  ;;  %3708 = vmatprep.subr.bf16.mxu1 %v7705_v23 }
 0x7ab   :  { %3695 = vmatprep.mubr.bf16.mxu0 %v8274_v39  ;;  %3738 = vmatprep.mubr.bf16.mxu1 %v8274_v39 }
 0x7ad   :  { %3666 = vmatpush1.bf16.msra.mxu0 %v7713_v62  ;;  %3709 = vmatpush1.bf16.msra.mxu1 %v7719_v38 }
 0x7ae   :  { %3667 = vmatprep.subr.bf16.mxu0 %v7725_v34  ;;  %3710 = vmatprep.subr.bf16.mxu1 %v7731_v47 }
 0x7b1   :  { %3668 = vmatpush1.bf16.msra.mxu0 %v7737_v7  ;;  %3711 = vmatpush1.bf16.msra.mxu1 %v7743_v20 }
 0x7b2   :  { %3669 = vmatprep.subr.bf16.mxu0 %v7749_v8  ;;  %3712 = vmatprep.subr.bf16.mxu1 %v7755_v36 }
 0x7b5   :  { %3670 = vmatpush1.bf16.msra.mxu0 %v7761_v55  ;;  %3713 = vmatpush1.bf16.msra.mxu1 %v7767_v41 }
 0x7b6   :  { %3671 = vmatprep.subr.bf16.mxu0 %v7773_v57  ;;  %3714 = vmatprep.subr.bf16.mxu1 %v7779_v11 }
 0x7b9   :  { %3672 = vmatpush1.bf16.msra.mxu0 %v7785_v30  ;;  %3715 = vmatpush1.bf16.msra.mxu1 %v7791_v29  ;;  %v8338_v29 = vld [vmem:[#allocation46_spill] sm:$0xff] }
 0x7ba   :  { %3673 = vmatprep.subr.bf16.mxu0 %v7797_v52  ;;  %3716 = vmatprep.subr.bf16.mxu1 %v7803_v43 }
 0x7bd   :  { %3674 = vmatpush1.bf16.msra.mxu0 %v7809_v42  ;;  %3717 = vmatpush1.bf16.msra.mxu1 %v7815_v46 }
 0x7be   :  { %3675 = vmatprep.subr.bf16.mxu0 %v7821_v60  ;;  %3718 = vmatprep.subr.bf16.mxu1 %v7827_v5 }
 0x7c1   :  { %3676 = vmatpush1.bf16.msra.mxu0 %v7833_v21  ;;  %3719 = vmatpush1.bf16.msra.mxu1 %v7839_v4 }
 0x7c2   :  { %3677 = vmatprep.subr.bf16.mxu0 %v7845_v56  ;;  %3720 = vmatprep.subr.bf16.mxu1 %v7851_v15 }
 0x7c5   :  { %3678 = vmatpush1.bf16.msra.mxu0 %v7857_v12  ;;  %3721 = vmatpush1.bf16.msra.mxu1 %v7863_v17 }
 0x7c6   :  { %3815 = vmatprep.subr.bf16.mxu0 %v7866_v49  ;;  %3858 = vmatprep.subr.bf16.mxu1 %v8336_v50 }
 0x85a   :  { %v3393_v51 = vpop.f32.mrb[72].mxu0  ;;  %v3436_v61 = vpop.f32.mrb[72].mxu1 }
 0x85b   :  { %v3453_v37 = vadd.f32 %v3393_v51, %v8337_v59  ;;  %v3395_v23 = vpop.f32.mrb[73].mxu0  ;;  %v3438_v62 = vpop.f32.mrb[73].mxu1  ;;  %v3455_v52 = vadd.f32 %v3436_v61, %v8338_v29 }
 0x85c   :  { %v3454_v38 = vadd.f32 %v3395_v23, %v8311_v27  ;;  %v3397_v34 = vpop.f32.mrb[74].mxu0  ;;  %v3440_v47 = vpop.f32.mrb[74].mxu1  ;;  %v3456_v30 = vadd.f32 %v3438_v62, %v8312_v14 }
 0x85d   :  { %v5041_v7 = vmul.f32 -1.442695, %v3453_v37  ;;  %v3457_v20 = vadd.f32 %v3397_v34, %v8337_v59  ;;  %v3399_v8 = vpop.f32.mrb[75].mxu0  ;;  %v3442_v36 = vpop.f32.mrb[75].mxu1  ;;  %v3459_v46 = vadd.f32 %v3440_v47, %v8338_v29 }
 0x85e   :  { %v5043_v55 = vmul.f32 -1.442695, %v3454_v38  ;;  %v3458_v41 = vadd.f32 %v3399_v8, %v8311_v27  ;;  %v5045_v43 = vmul.f32 -1.442695, %v3456_v30  ;;  %v3460_v42 = vadd.f32 %v3442_v36, %v8312_v14 }
 0x85f   :  { %6074 = vpow2.f32 %v5041_v7  ;;  %v5042_v57 = vmul.f32 -1.442695, %v3457_v20 }
 0x860   :  { %6076 = vpow2.f32 %v5043_v55  ;;  %v5044_v11 = vmul.f32 -1.442695, %v3458_v41  ;;  %v5046_v4 = vmul.f32 -1.442695, %v3460_v42 }
 0x861   :  { %6078 = vpow2.f32 %v5042_v57 }
 0x862   :  { %6080 = vpow2.f32 %v5044_v11 }
 0x863   :  { %6082 = vtanh.f32 %v3455_v52 }
 0x864   :  { %6084 = vpow2.f32 %v5045_v43 }
 0x865   :  { %6086 = vtanh.f32 %v3459_v46 }
 0x869   :  { %v6075_v60 = vpop.eup %6074 }
 0x86a   :  { %v6077_v5 = vpop.eup %6076  ;;  %v3467_v21 = vadd.f32 1.0, %v6075_v60 }
 0x86b   :  { %v3479_v56 = vadd.f32 1.0, %v6077_v5  ;;  %v6079_v15 = vpop.eup %6078 }
 0x86c   :  { %6088 = vrcp.f32 %v3467_v21  ;;  %v3468_v12 = vadd.f32 1.0, %v6079_v15  ;;  %v6081_v17 = vpop.eup %6080 }
 0x86d   :  { %6090 = vrcp.f32 %v3479_v56  ;;  %v3480_v49 = vadd.f32 1.0, %v6081_v17  ;;  %v6083_v35 = vpop.eup %6082 }
 0x86e   :  { %6092 = vpow2.f32 %v5046_v4  ;;  %v6085_v0 = vpop.eup %6084 }
 0x86f   :  { %6094 = vrcp.f32 %v3468_v12  ;;  %v6087_v44 = vpop.eup %6086  ;;  %v3493_v37 = vadd.f32 1.0, %v6085_v0 }
 0x870   :  { %6096 = vrcp.f32 %v3480_v49 }
 0x871   :  { %6098 = vrcp.f32 %v3493_v37 }
 0x876   :  { %v6089_v33 = vpop.eup %6088 }
 0x877   :  { %v6091_v40 = vpop.eup %6090  ;;  %v3501_v48 = vmul.f32 %v6089_v33, %v6083_v35 }
 0x878   :  { %v6093_v50 = vpop.eup %6092  ;;  %v3499_v51 = vmul.f32 %v6091_v40, %v7881_v32 }
 0x879   :  { %v6095_v61 = vpop.eup %6094  ;;  %v3494_v34 = vadd.f32 1.0, %v6093_v50 }
 0x87a   :  { %v8049_v23 = vadd.f32 %v3501_v48, %v3499_v51  ;;  %v3502_v62 = vmul.f32 %v6095_v61, %v6087_v44  ;;  %v6097_v38 = vpop.eup %6096 }
 0x87b   :  { %v3500_v47 = vmul.f32 %v6097_v38, %v7886_v9  ;;  %v3545_v7 = vpop.f32.mrb[84].mxu0  ;;  %v3588_v20 = vpop.f32.mrb[84].mxu1 }
 0x87c   :  { %v3605_v8 = vadd.f32 %v3545_v7, %v7492_v22  ;;  %v3547_v36 = vpop.f32.mrb[85].mxu0  ;;  %v3590_v55 = vpop.f32.mrb[85].mxu1  ;;  %6100 = vtanh.f32 %v8049_v23  ;;  %v3607_v56 = vadd.f32 %v3588_v20, %v7512_v25  ;;  %v8339_v7 = vld [vmem:[#allocation22_spill] sm:$0xff]  ;;  %v8340_v20 = vld [vmem:[#allocation21_spill] sm:$0xff] }
 0x87d   :  { %v8054_v41 = vadd.f32 %v3502_v62, %v3500_v47  ;;  %v3606_v32 = vadd.f32 %v3547_v36, %v8314_v16  ;;  %v3549_v57 = vpop.f32.mrb[86].mxu0  ;;  %v3592_v11 = vpop.f32.mrb[86].mxu1  ;;  %6102 = vrcp.f32 %v3494_v34  ;;  %v3608_v21 = vadd.f32 %v3590_v55, %v7507_v53  ;;  %v8341_v36 = vld [vmem:[#allocation25_spill] sm:$0xff] }
 0x87e   :  { %v5047_v30 = vmul.f32 -1.442695, %v3605_v8  ;;  %v3609_v52 = vadd.f32 %v3549_v57, %v7492_v22  ;;  %v3551_v9 = vpop.f32.mrb[87].mxu0  ;;  %v3594_v43 = vpop.f32.mrb[87].mxu1  ;;  %v3611_v35 = vadd.f32 %v3592_v11, %v7512_v25 }
 0x87f   :  { %6104 = vtanh.f32 %v8054_v41  ;;  %v5049_v42 = vmul.f32 -1.442695, %v3606_v32  ;;  %v3610_v46 = vadd.f32 %v3551_v9, %v8314_v16  ;;  %v6099_v4 = vpop.eup %6098  ;;  %v5051_v12 = vmul.f32 -1.442695, %v3608_v21  ;;  %v8346_v21 = vld [vmem:[#allocation27_spill] sm:$0xff] }
 0x880   :  { %6106 = vpow2.f32 %v5047_v30  ;;  %v5048_v60 = vmul.f32 -1.442695, %v3609_v52  ;;  %v3612_v17 = vadd.f32 %v3594_v43, %v7507_v53 }
 0x881   :  { %6108 = vpow2.f32 %v5049_v42  ;;  %v5050_v5 = vmul.f32 -1.442695, %v3610_v46 }
 0x882   :  { %6110 = vpow2.f32 %v5048_v60  ;;  %v5052_v51 = vmul.f32 -1.442695, %v3612_v17  ;;  %v5802_v17 = vld [vmem:[#allocation13 + $0xc0] sm:$0xff]  }
 0x883   :  { %6112 = vpow2.f32 %v5050_v5 }
 0x884   :  { %6114 = vtanh.f32 %v3607_v56  ;;  %v8353_v56 = vld [vmem:[#allocation36_spill] sm:$0xff] }
 0x885   :  { %6116 = vpow2.f32 %v5051_v12  ;;  %v8355_v12 = vld [vmem:[#allocation38_spill] sm:$0xff] }
 0x886   :  { %v6101_v15 = vpop.eup %6100  ;;  %6118 = vtanh.f32 %v3611_v35 }
 0x887   :  { %v6103_v49 = vpop.eup %6102  ;;  %v3507_v33 = vmul.f32 %v6101_v15, %v6099_v4  ;;  %v8352_v4 = vld [vmem:[#allocation33_spill] sm:$0xff] }
 0x889   :  { %v6105_v0 = vpop.eup %6104 }
 0x88a   :  { %v6107_v44 = vpop.eup %6106  ;;  %v3508_v40 = vmul.f32 %v6105_v0, %v6103_v49 }
 0x88b   :  { %v6109_v48 = vpop.eup %6108  ;;  %v3619_v50 = vadd.f32 1.0, %v6107_v44 }
 0x88c   :  { %v3631_v61 = vadd.f32 1.0, %v6109_v48  ;;  %v8064_v37 = vpack.c.bf16 %v3508_v40, %v3507_v33  ;;  %v6111_v62 = vpop.eup %6110  ;;  %v5803_v40 = vld [vmem:[#allocation13 + $0x80] sm:$0xff]  }
 0x88d   :  { %6120 = vrcp.f32 %v3619_v50  ;;  %v3620_v38 = vadd.f32 1.0, %v6111_v62  ;;  %v6113_v34 = vpop.eup %6112  ;;  %v5804_v50 = vld [vmem:[#allocation13 + $0xc8] sm:$0xff]   ;;  %v5808_v62 = vld [vmem:[#allocation13 + $0xd8] sm:$0xff]  }
 0x88e   :  { %6122 = vrcp.f32 %v3631_v61  ;;  %3696 = vmatmul.mubr.bf16.vlgmr.msra.gmra.mrb[76].mxu0 %v8064_v37  ;;  %3739 = vmatmul.mubr.bf16.vlgmr.msra.gmra.mrb[76].mxu1 %v8064_v37  ;;  %v3632_v47 = vadd.f32 1.0, %v6113_v34  ;;  %v6115_v8 = vpop.eup %6114  ;;  %v5807_v61 = vld [vmem:[#allocation13 + $0x90] sm:$0xff]   ;;  %v5812_v34 = vld [vmem:[#allocation13 + $0xe8] sm:$0xff]  }
 0x88f   :  { %6124 = vpow2.f32 %v5052_v51  ;;  %3816 = vmatpush1.bf16.msra.mxu0 %v7900_v6  ;;  %3859 = vmatpush1.bf16.msra.mxu1 %v7903_v28  ;;  %v8342_v6 = vld [vmem:[#allocation23_spill] sm:$0xff]  ;;  %v6117_v28 = vpop.eup %6116  ;;  %v5805_v51 = vld [vmem:[#allocation13 + $0x88] sm:$0xff]  }
 0x890   :  { %6126 = vrcp.f32 %v3620_v38  ;;  %3817 = vmatprep.subr.bf16.mxu0 %v7906_v13  ;;  %3860 = vmatprep.subr.bf16.mxu1 %v7909_v19  ;;  %v6119_v55 = vpop.eup %6118  ;;  %v8343_v13 = vld [vmem:[#allocation26_spill] sm:$0xff]  ;;  %v8344_v19 = vld [vmem:[#allocation24_spill] sm:$0xff]  ;;  %v3645_v43 = vadd.f32 1.0, %v6117_v28  ;;  %v5811_v38 = vld [vmem:[#allocation13 + $0xa0] sm:$0xff]  }
 0x891   :  { %3847 = vmatprep.mubr.bf16.mxu0 %v8274_v39  ;;  %3890 = vmatprep.mubr.bf16.mxu1 %v8274_v39  ;;  %6128 = vrcp.f32 %v3632_v47  ;;  %v8345_v39 = vld [vmem:[#allocation28_spill] sm:$0xff]  ;;  %v5813_v47 = vld [vmem:[#allocation13 + $0xa8] sm:$0xff]   ;;  %v5819_v28 = vld [vmem:[#allocation13 + $0x180] sm:$0xff]  }
 0x892   :  { %6130 = vrcp.f32 %v3645_v43  ;;  %v5828_v43 = vld [vmem:[#allocation13 + $0x1e8] sm:$0xff]  }
 0x893   :  { %3818 = vmatpush1.bf16.msra.mxu0 %v8339_v7  ;;  %3861 = vmatpush1.bf16.msra.mxu1 %v8340_v20  ;;  %v5814_v7 = vld [vmem:[#allocation13 + $0xf0] sm:$0xff]  }
 0x894   :  { %3819 = vmatprep.subr.bf16.mxu0 %v8341_v36  ;;  %3862 = vmatprep.subr.bf16.mxu1 %v8342_v6  ;;  %v5815_v20 = vld [vmem:[#allocation13 + $0xb0] sm:$0xff]   ;;  %v5817_v36 = vld [vmem:[#allocation13 + $0xb8] sm:$0xff]   ;;  %v5818_v6 = vld [vmem:[#allocation13 + $0x1c0] sm:$0xff]  }
 0x897   :  { %v6121_v32 = vpop.eup %6120  ;;  %3820 = vmatpush1.bf16.msra.mxu0 %v8343_v13  ;;  %3863 = vmatpush1.bf16.msra.mxu1 %v8344_v19  ;;  %v8357_v13 = vld [vmem:[#allocation17_spill] sm:$0xff]  ;;  %v5821_v19 = vld [vmem:[#allocation13 + $0x188] sm:$0xff]  }
 0x898   :  { %v6123_v57 = vpop.eup %6122  ;;  %v3653_v11 = vmul.f32 %v6121_v32, %v6115_v8  ;;  %3821 = vmatprep.subr.bf16.mxu0 %v8345_v39  ;;  %3864 = vmatprep.subr.bf16.mxu1 %v7935_v24  ;;  %v5816_v8 = vld [vmem:[#allocation13 + $0xf8] sm:$0xff]   ;;  %v8356_v32 = vld [vmem:[#allocation19_spill] sm:$0xff] }
 0x899   :  { %v6125_v30 = vpop.eup %6124  ;;  %v3651_v52 = vmul.f32 %v6123_v57, %v7939_v1  ;;  %v5822_v57 = vld [vmem:[#allocation13 + $0x1d0] sm:$0xff]   ;;  %v5824_v39 = vld [vmem:[#allocation13 + $0x1d8] sm:$0xff]  }
 0x89a   :  { %v6127_v9 = vpop.eup %6126  ;;  %v3646_v5 = vadd.f32 1.0, %v6125_v30  ;;  %v5825_v30 = vld [vmem:[#allocation13 + $0x198] sm:$0xff]  }
 0x89b   :  { %v8083_v42 = vadd.f32 %v3653_v11, %v3651_v52  ;;  %v3654_v46 = vmul.f32 %v6127_v9, %v6119_v55  ;;  %3822 = vmatpush1.bf16.msra.mxu0 %v7941_v31  ;;  %3865 = vmatpush1.bf16.msra.mxu1 %v7944_v10  ;;  %v6129_v60 = vpop.eup %6128  ;;  %v8347_v31 = vld [vmem:[#allocation30_spill] sm:$0xff]  ;;  %v8348_v10 = vld [vmem:[#allocation29_spill] sm:$0xff]  ;;  %v5823_v11 = vld [vmem:[#allocation13 + $0x190] sm:$0xff]  }
 0x89c   :  { %3823 = vmatprep.subr.bf16.mxu0 %v7947_v63  ;;  %3866 = vmatprep.subr.bf16.mxu1 %v7950_v58  ;;  %v3652_v24 = vmul.f32 %v6129_v60, %v7955_v18  ;;  %v8349_v63 = vld [vmem:[#allocation32_spill] sm:$0xff]  ;;  %v8350_v58 = vld [vmem:[#allocation31_spill] sm:$0xff]  ;;  %v8351_v18 = vld [vmem:[#allocation34_spill] sm:$0xff]  ;;  %v6131_v15 = vpop.eup %6130 }
 0x89d   :  { %6132 = vtanh.f32 %v8083_v42  ;;  %v5820_v55 = vld [vmem:[#allocation13 + $0x1c8] sm:$0xff]   ;;  %v5826_v52 = vld [vmem:[#allocation13 + $0x1e0] sm:$0xff]   ;;  %v5830_v60 = vld [vmem:[#allocation13 + $0x1f0] sm:$0xff]  }
 0x89e   :  { %v8091_v1 = vadd.f32 %v3654_v46, %v3652_v24  ;;  %6134 = vrcp.f32 %v3646_v5  ;;  %v5827_v9 = vld [vmem:[#allocation13 + $0x1a0] sm:$0xff]   ;;  %v5829_v46 = vld [vmem:[#allocation13 + $0x1a8] sm:$0xff]   ;;  %v5831_v5 = vld [vmem:[#allocation13 + $0x1b0] sm:$0xff]  }
 0x89f   :  { %3824 = vmatpush1.bf16.msra.mxu0 %v7957_v26  ;;  %3867 = vmatpush1.bf16.msra.mxu1 %v8346_v21  ;;  %v8354_v26 = vld [vmem:[#allocation35_spill] sm:$0xff]  ;;  %v5832_v24 = vld [vmem:[#allocation13 + $0x1f8] sm:$0xff]  }
 0x8a0   :  { %3825 = vmatprep.subr.bf16.mxu0 %v8347_v31  ;;  %3868 = vmatprep.subr.bf16.mxu1 %v8348_v10  ;;  %6136 = vtanh.f32 %v8091_v1  ;;  %v5833_v21 = vld [vmem:[#allocation13 + $0x1b8] sm:$0xff]   ;;  %v5834_v31 = vld [vmem:[#allocation13 + $0x40] sm:$0xff]  }
 0x8a1   :  { %v5835_v10 = vld [vmem:[#allocation13] sm:$0xff]  }
 0x8a3   :  { %3826 = vmatpush1.bf16.msra.mxu0 %v8349_v63  ;;  %3869 = vmatpush1.bf16.msra.mxu1 %v8350_v58  ;;  %v5836_v63 = vld [vmem:[#allocation13 + $0x48] sm:$0xff]  }
 0x8a4   :  { %3827 = vmatprep.subr.bf16.mxu0 %v8351_v18  ;;  %3870 = vmatprep.subr.bf16.mxu1 %v8352_v4  ;;  %v5837_v58 = vld [vmem:[#allocation13 + $0x8] sm:$0xff]   ;;  %v5838_v18 = vld [vmem:[#allocation13 + $0x50] sm:$0xff]  }
 0x8a5   :  { %v5839_v4 = vld [vmem:[#allocation13 + $0x10] sm:$0xff]  }
 0x8a7   :  { %3828 = vmatpush1.bf16.msra.mxu0 %v8353_v56  ;;  %3871 = vmatpush1.bf16.msra.mxu1 %v8354_v26  ;;  %v6133_v49 = vpop.eup %6132  ;;  %v5840_v56 = vld [vmem:[#allocation13 + $0x58] sm:$0xff]  }
 0x8a8   :  { %3829 = vmatprep.subr.bf16.mxu0 %v8355_v12  ;;  %3872 = vmatprep.subr.bf16.mxu1 %v7991_v54  ;;  %v6135_v35 = vpop.eup %6134  ;;  %v3659_v44 = vmul.f32 %v6133_v49, %v6131_v15  ;;  %v5806_v54 = vld [vmem:[#allocation13 + $0xd0] sm:$0xff]   ;;  %v5841_v26 = vld [vmem:[#allocation13 + $0x18] sm:$0xff]   ;;  %v5842_v15 = vld [vmem:[#allocation13 + $0x60] sm:$0xff]  }
 0x8a9   :  { %v5843_v12 = vld [vmem:[#allocation13 + $0x20] sm:$0xff]   ;;  %v5846_v49 = vld [vmem:[#allocation13 + $0x70] sm:$0xff]  }
 0x8aa   :  { %v6137_v0 = vpop.eup %6136 }
 0x8ab   :  { %3830 = vmatpush1.bf16.msra.mxu0 %v7994_v45  ;;  %3873 = vmatpush1.bf16.msra.mxu1 %v7997_v2  ;;  %v3660_v33 = vmul.f32 %v6137_v0, %v6135_v35  ;;  %v5809_v45 = vld [vmem:[#allocation13 + $0x98] sm:$0xff]   ;;  %v5810_v2 = vld [vmem:[#allocation13 + $0xe0] sm:$0xff]   ;;  %v5847_v35 = vld [vmem:[#allocation13 + $0x30] sm:$0xff]  }
 0x8ac   :  { %5285 = vmatprep.subr.bf16.mxu1 %v5802_v17  ;;  %5263 = vmatprep.subr.bf16.mxu0 %v5834_v31  ;;  %v5845_v17 = vld [vmem:[#allocation13 + $0x28] sm:$0xff]   ;;  %v5848_v0 = vld [vmem:[#allocation13 + $0x78] sm:$0xff]  }
 0x8ad   :  { %v3661_v48 = vpack.c.bf16 %v3660_v33, %v3659_v44  ;;  %v5849_v44 = vld [vmem:[#allocation13 + $0x38] sm:$0xff]   ;;  %v5850_v33 = vld [vmem:[#allocation13 + $0x140] sm:$0xff]  }
 0x8af   :  { %3848 = vmatmul.mubr.bf16.vlgmr.msra.gmra.mrb[80].mxu0 %v3661_v48  ;;  %3891 = vmatmul.mubr.bf16.vlgmr.msra.gmra.mrb[80].mxu1 %v3661_v48 }
 0x8b0   :  { %5286 = vmatpush3.bf16.msra.mxu1 %v5803_v40  ;;  %4697 = vmatprep.mubr.bf16.mxu1 %v3661_v48 }
 0x8b1   :  { %5287 = vmatprep.subr.bf16.mxu1 %v5804_v50  ;;  %5264 = vmatpush3.bf16.msra.mxu0 %v5835_v10 }
 0x8b2   :  { %5265 = vmatprep.subr.bf16.mxu0 %v5836_v63 }
 0x8b4   :  { %5288 = vmatpush3.bf16.msra.mxu1 %v5805_v51 }
 0x8b5   :  { %5289 = vmatprep.subr.bf16.mxu1 %v5806_v54  ;;  %5266 = vmatpush3.bf16.msra.mxu0 %v5837_v58 }
 0x8b6   :  { %5267 = vmatprep.subr.bf16.mxu0 %v5838_v18 }
 0x8b8   :  { %5290 = vmatpush3.bf16.msra.mxu1 %v5807_v61 }
 0x8b9   :  { %5291 = vmatprep.subr.bf16.mxu1 %v5808_v62  ;;  %5268 = vmatpush3.bf16.msra.mxu0 %v5839_v4 }
 0x8ba   :  { %5269 = vmatprep.subr.bf16.mxu0 %v5840_v56 }
 0x8bc   :  { %5292 = vmatpush3.bf16.msra.mxu1 %v5809_v45 }
 0x8bd   :  { %5293 = vmatprep.subr.bf16.mxu1 %v5810_v2  ;;  %5270 = vmatpush3.bf16.msra.mxu0 %v5841_v26 }
 0x8be   :  { %5271 = vmatprep.subr.bf16.mxu0 %v5842_v15 }
 0x8c0   :  { %5294 = vmatpush3.bf16.msra.mxu1 %v5811_v38 }
 0x8c1   :  { %5295 = vmatprep.subr.bf16.mxu1 %v5812_v34  ;;  %5272 = vmatpush3.bf16.msra.mxu0 %v5843_v12 }
 0x8c4   :  { %5296 = vmatpush3.bf16.msra.mxu1 %v5813_v47 }
 0x8c5   :  { %5297 = vmatprep.subr.bf16.mxu1 %v5814_v7 }
 0x8c8   :  { %5298 = vmatpush3.bf16.msra.mxu1 %v5815_v20 }
 0x8c9   :  { %5299 = vmatprep.subr.bf16.mxu1 %v5816_v8 }
 0x8cc   :  { %5300 = vmatpush3.bf16.msra.mxu1 %v5817_v36 }
 0x8cd   :  { %5329 = vmatprep.subr.bf16.mxu1 %v5818_v6 }
 0x8cf   :  { %4698 = vmatmul.mubr.bf16.vlgmr.msra.gmra.mrb[100].mxu1 %v8356_v32 }
 0x8d0   :  { %5330 = vmatpush3.bf16.msra.mxu1 %v5819_v28  ;;  %4779 = vmatprep.mubr.bf16.mxu1 %v8357_v13 }
 0x8d1   :  { %5331 = vmatprep.subr.bf16.mxu1 %v5820_v55 }
 0x8d4   :  { %5332 = vmatpush3.bf16.msra.mxu1 %v5821_v19 }
 0x8d5   :  { %5333 = vmatprep.subr.bf16.mxu1 %v5822_v57 }
 0x8d8   :  { %5334 = vmatpush3.bf16.msra.mxu1 %v5823_v11 }
 0x8d9   :  { %5335 = vmatprep.subr.bf16.mxu1 %v5824_v39 }
 0x8dc   :  { %5336 = vmatpush3.bf16.msra.mxu1 %v5825_v30 }
 0x8dd   :  { %5337 = vmatprep.subr.bf16.mxu1 %v5826_v52 }
 0x8e0   :  { %5338 = vmatpush3.bf16.msra.mxu1 %v5827_v9 }
 0x8e1   :  { %5339 = vmatprep.subr.bf16.mxu1 %v5828_v43 }
 0x8e4   :  { %5340 = vmatpush3.bf16.msra.mxu1 %v5829_v46 }
 0x8e5   :  { %5341 = vmatprep.subr.bf16.mxu1 %v5830_v60 }
 0x8e8   :  { %5342 = vmatpush3.bf16.msra.mxu1 %v5831_v5 }
 0x8e9   :  { %5343 = vmatprep.subr.bf16.mxu1 %v5832_v24 }
 0x8ec   :  { %5344 = vmatpush3.bf16.msra.mxu1 %v5833_v21 }
 0x8ef   :  { %4780 = vmatmul.mubr.bf16.vlgmr.msra.gmra.mrb[104].mxu1 %v8064_v37  ;;  %v5844_v37 = vld [vmem:[#allocation13 + $0x68] sm:$0xff]  }
 0x8f0   :  { %5273 = vmatprep.subr.bf16.mxu0 %v5844_v37 }
 0x8f1   :  { %5274 = vmatpush3.bf16.msra.mxu0 %v5845_v17 }
 0x8f2   :  { %5275 = vmatprep.subr.bf16.mxu0 %v5846_v49 }
 0x8f5   :  { %5276 = vmatpush3.bf16.msra.mxu0 %v5847_v35 }
 0x8f6   :  { %5277 = vmatprep.subr.bf16.mxu0 %v5848_v0 }
 0x8f9   :  { %5278 = vmatpush3.bf16.msra.mxu0 %v5849_v44 }
 0x8fa   :  { %5307 = vmatprep.subr.bf16.mxu0 %v5850_v33 }
 0x961   :  { %v3697_v40 = vpop.f32.mrb[76].mxu0  ;;  %v3740_v48 = vpop.f32.mrb[76].mxu1 }
 0x962   :  { %v3757_v50 = vadd.f32 %v3697_v40, %v8337_v59  ;;  %v3699_v51 = vpop.f32.mrb[77].mxu0  ;;  %v3742_v54 = vpop.f32.mrb[77].mxu1  ;;  %v3759_v28 = vadd.f32 %v3740_v48, %v8338_v29 }
 0x963   :  { %v3758_v61 = vadd.f32 %v3699_v51, %v8311_v27  ;;  %v3701_v62 = vpop.f32.mrb[78].mxu0  ;;  %v3744_v45 = vpop.f32.mrb[78].mxu1  ;;  %v3760_v6 = vadd.f32 %v3742_v54, %v8312_v14 }
 0x964   :  { %v5053_v2 = vmul.f32 -1.442695, %v3757_v50  ;;  %v3761_v38 = vadd.f32 %v3701_v62, %v8337_v59  ;;  %v3703_v34 = vpop.f32.mrb[79].mxu0  ;;  %v3746_v47 = vpop.f32.mrb[79].mxu1  ;;  %v3763_v59 = vadd.f32 %v3744_v45, %v8338_v29 }
 0x965   :  { %v5055_v7 = vmul.f32 -1.442695, %v3758_v61  ;;  %v3762_v20 = vadd.f32 %v3703_v34, %v8311_v27  ;;  %v5057_v55 = vmul.f32 -1.442695, %v3760_v6  ;;  %v3764_v32 = vadd.f32 %v3746_v47, %v8312_v14 }
 0x966   :  { %6138 = vpow2.f32 %v5053_v2  ;;  %v5054_v8 = vmul.f32 -1.442695, %v3761_v38 }
 0x967   :  { %6140 = vpow2.f32 %v5055_v7  ;;  %v5056_v36 = vmul.f32 -1.442695, %v3762_v20  ;;  %v5058_v27 = vmul.f32 -1.442695, %v3764_v32 }
 0x968   :  { %6142 = vpow2.f32 %v5054_v8 }
 0x969   :  { %6144 = vpow2.f32 %v5056_v36 }
 0x96a   :  { %6146 = vtanh.f32 %v3759_v28 }
 0x96b   :  { %6148 = vpow2.f32 %v5057_v55 }
 0x96c   :  { %6150 = vtanh.f32 %v3763_v59 }
 0x970   :  { %v6139_v13 = vpop.eup %6138 }
 0x971   :  { %v6141_v19 = vpop.eup %6140  ;;  %v3771_v57 = vadd.f32 1.0, %v6139_v13 }
 0x972   :  { %v3783_v11 = vadd.f32 1.0, %v6141_v19  ;;  %v6143_v39 = vpop.eup %6142 }
 0x973   :  { %6152 = vrcp.f32 %v3771_v57  ;;  %v3772_v30 = vadd.f32 1.0, %v6143_v39  ;;  %v6145_v52 = vpop.eup %6144 }
 0x974   :  { %6154 = vrcp.f32 %v3783_v11  ;;  %v3784_v9 = vadd.f32 1.0, %v6145_v52  ;;  %v6147_v14 = vpop.eup %6146 }
 0x975   :  { %6156 = vpow2.f32 %v5058_v27  ;;  %v6149_v43 = vpop.eup %6148 }
 0x976   :  { %6158 = vrcp.f32 %v3772_v30  ;;  %v6151_v29 = vpop.eup %6150  ;;  %v3797_v24 = vadd.f32 1.0, %v6149_v43 }
 0x977   :  { %6160 = vrcp.f32 %v3784_v9 }
 0x978   :  { %6162 = vrcp.f32 %v3797_v24 }
 0x97d   :  { %v6153_v46 = vpop.eup %6152 }
 0x97e   :  { %v6155_v60 = vpop.eup %6154  ;;  %v3805_v5 = vmul.f32 %v6153_v46, %v6147_v14 }
 0x97f   :  { %v6157_v21 = vpop.eup %6156  ;;  %v3803_v31 = vmul.f32 %v6155_v60, %v8049_v23 }
 0x980   :  { %v6159_v10 = vpop.eup %6158  ;;  %v3798_v4 = vadd.f32 1.0, %v6157_v21 }
 0x981   :  { %v3807_v63 = vadd.f32 %v3805_v5, %v3803_v31  ;;  %v3806_v58 = vmul.f32 %v6159_v10, %v6151_v29  ;;  %v6161_v18 = vpop.eup %6160 }
 0x982   :  { %v3804_v56 = vmul.f32 %v6161_v18, %v8054_v41  ;;  %v3849_v26 = vpop.f32.mrb[80].mxu0  ;;  %v3892_v15 = vpop.f32.mrb[80].mxu1 }
 0x983   :  { %6164 = vtanh.f32 %v3807_v63  ;;  %v3909_v12 = vadd.f32 %v3849_v26, %v7492_v22  ;;  %v3851_v37 = vpop.f32.mrb[81].mxu0  ;;  %v3894_v17 = vpop.f32.mrb[81].mxu1  ;;  %v3911_v2 = vadd.f32 %v3892_v15, %v7512_v25 }
 0x984   :  { %v3808_v49 = vadd.f32 %v3806_v58, %v3804_v56  ;;  %v3910_v35 = vadd.f32 %v3851_v37, %v8314_v16  ;;  %v3853_v0 = vpop.f32.mrb[82].mxu0  ;;  %v3896_v23 = vpop.f32.mrb[82].mxu1  ;;  %6166 = vrcp.f32 %v3798_v4  ;;  %v3912_v61 = vadd.f32 %v3894_v17, %v7507_v53 }
 0x985   :  { %v5059_v44 = vmul.f32 -1.442695, %v3909_v12  ;;  %v3913_v33 = vadd.f32 %v3853_v0, %v7492_v22  ;;  %v3855_v40 = vpop.f32.mrb[83].mxu0  ;;  %v3898_v48 = vpop.f32.mrb[83].mxu1  ;;  %v5853_v0 = vld [vmem:[#allocation13 + $0x108] sm:$0xff]  }
 0x986   :  { %6168 = vtanh.f32 %v3808_v49  ;;  %v5061_v50 = vmul.f32 -1.442695, %v3910_v35  ;;  %v3914_v41 = vadd.f32 %v3855_v40, %v8314_v16  ;;  %v6163_v62 = vpop.eup %6162  ;;  %v5063_v22 = vmul.f32 -1.442695, %v3912_v61  ;;  %v5851_v49 = vld [vmem:[#allocation13 + $0x100] sm:$0xff]   ;;  %v5852_v35 = vld [vmem:[#allocation13 + $0x148] sm:$0xff]  }
 0x987   :  { %6170 = vpow2.f32 %v5059_v44  ;;  %v5060_v51 = vmul.f32 -1.442695, %v3913_v33  ;;  %v3916_v34 = vadd.f32 %v3898_v48, %v7507_v53  ;;  %v3915_v16 = vadd.f32 %v3896_v23, %v7512_v25  ;;  %v5854_v23 = vld [vmem:[#allocation13 + $0x150] sm:$0xff]   ;;  %v5856_v33 = vld [vmem:[#allocation13 + $0x158] sm:$0xff]  }
 0x988   :  { %6172 = vpow2.f32 %v5061_v50  ;;  %v5062_v54 = vmul.f32 -1.442695, %v3914_v41  ;;  %v5855_v44 = vld [vmem:[#allocation13 + $0x110] sm:$0xff]   ;;  %v5857_v40 = vld [vmem:[#allocation13 + $0x118] sm:$0xff]   ;;  %v5858_v50 = vld [vmem:[#allocation13 + $0x160] sm:$0xff]  }
 0x989   :  { %6174 = vpow2.f32 %v5060_v51  ;;  %v5064_v28 = vmul.f32 -1.442695, %v3916_v34  ;;  %v5863_v34 = vld [vmem:[#allocation13 + $0x130] sm:$0xff]  }
 0x98a   :  { %6176 = vpow2.f32 %v5062_v54 }
 0x98b   :  { %6178 = vtanh.f32 %v3911_v2  ;;  %v5861_v2 = vld [vmem:[#allocation13 + $0x128] sm:$0xff]  }
 0x98c   :  { %6180 = vpow2.f32 %v5063_v22  ;;  %v5862_v22 = vld [vmem:[#allocation13 + $0x170] sm:$0xff]  }
 0x98d   :  { %v6165_v45 = vpop.eup %6164  ;;  %6182 = vtanh.f32 %v3915_v16  ;;  %v5865_v16 = vld [vmem:[#allocation13 + $0x138] sm:$0xff]  }
 0x98e   :  { %v8127_v38 = vmul.f32 %v6165_v45, %v6163_v62  ;;  %v6167_v47 = vpop.eup %6166  ;;  %v5859_v62 = vld [vmem:[#allocation13 + $0x120] sm:$0xff]   ;;  %v5860_v45 = vld [vmem:[#allocation13 + $0x168] sm:$0xff]  }
 0x990   :  { %v6169_v7 = vpop.eup %6168 }
 0x991   :  { %v6171_v20 = vpop.eup %6170  ;;  %v8131_v8 = vmul.f32 %v6169_v7, %v6167_v47  ;;  %v5864_v47 = vld [vmem:[#allocation13 + $0x178] sm:$0xff]   ;;  %v5866_v7 = vld [vmem:[#allocation13 + $0x240] sm:$0xff]  }
 0x992   :  { %v6173_v36 = vpop.eup %6172  ;;  %v3923_v6 = vadd.f32 1.0, %v6171_v20  ;;  %v5867_v20 = vld [vmem:[#allocation13 + $0x200] sm:$0xff]  }
 0x993   :  { %v3935_v55 = vadd.f32 1.0, %v6173_v36  ;;  %v3813_v32 = vpack.c.bf16 %v8131_v8, %v8127_v38  ;;  %v6175_v59 = vpop.eup %6174  ;;  %v5868_v36 = vld [vmem:[#allocation13 + $0x248] sm:$0xff]  }
 0x994   :  { %6184 = vrcp.f32 %v3923_v6  ;;  %v3924_v53 = vadd.f32 1.0, %v6175_v59  ;;  %v6177_v13 = vpop.eup %6176  ;;  %v8359_v6 = vld [vmem:[#allocation18_spill] sm:$0xff]  ;;  %v5870_v59 = vld [vmem:[#allocation13 + $0x250] sm:$0xff]  }
 0x995   :  { %6186 = vrcp.f32 %v3935_v55  ;;  %v3936_v25 = vadd.f32 1.0, %v6177_v13  ;;  %v6179_v19 = vpop.eup %6178  ;;  %v5869_v55 = vld [vmem:[#allocation13 + $0x208] sm:$0xff]   ;;  %v5872_v13 = vld [vmem:[#allocation13 + $0x258] sm:$0xff]  }
 0x996   :  { %6188 = vpow2.f32 %v5064_v28  ;;  %v6181_v57 = vpop.eup %6180  ;;  %v8360_v28 = vld [vmem:[#allocation42_spill] sm:$0xff] }
 0x997   :  { %6190 = vrcp.f32 %v3924_v53  ;;  %v6183_v27 = vpop.eup %6182  ;;  %v3949_v52 = vadd.f32 1.0, %v6181_v57  ;;  %v5871_v53 = vld [vmem:[#allocation13 + $0x210] sm:$0xff]   ;;  %v5875_v57 = vld [vmem:[#allocation13 + $0x220] sm:$0xff]  }
 0x998   :  { %6192 = vrcp.f32 %v3936_v25  ;;  %v5873_v25 = vld [vmem:[#allocation13 + $0x218] sm:$0xff]  }
 0x999   :  { %6194 = vrcp.f32 %v3949_v52  ;;  %v5880_v52 = vld [vmem:[#allocation13 + $0x278] sm:$0xff]  }
 0x99e   :  { %v6185_v11 = vpop.eup %6184 }
 0x99f   :  { %v6187_v39 = vpop.eup %6186  ;;  %v3957_v30 = vmul.f32 %v6185_v11, %v6179_v19  ;;  %v5874_v19 = vld [vmem:[#allocation13 + $0x260] sm:$0xff]   ;;  %v5877_v11 = vld [vmem:[#allocation13 + $0x228] sm:$0xff]  }
 0x9a0   :  { %v6189_v9 = vpop.eup %6188  ;;  %v3955_v14 = vmul.f32 %v6187_v39, %v8083_v42  ;;  %v5878_v39 = vld [vmem:[#allocation13 + $0x270] sm:$0xff]  }
 0x9a1   :  { %v6191_v43 = vpop.eup %6190  ;;  %v3950_v24 = vadd.f32 1.0, %v6189_v9  ;;  %v5881_v9 = vld [vmem:[#allocation13 + $0x238] sm:$0xff]  }
 0x9a2   :  { %v3958_v29 = vmul.f32 %v6191_v43, %v6183_v27  ;;  %v5301_v46 = vpop.f32.mrb[100].mxu1  ;;  %v3959_v60 = vadd.f32 %v3957_v30, %v3955_v14  ;;  %v6193_v5 = vpop.eup %6192  ;;  %v5876_v27 = vld [vmem:[#allocation13 + $0x268] sm:$0xff]   ;;  %v5879_v30 = vld [vmem:[#allocation13 + $0x230] sm:$0xff]  }
 0x9a3   :  { %v5302_v21 = vpop.f32.mrb[101].mxu1  ;;  %v3956_v31 = vmul.f32 %v6193_v5, %v8091_v1  ;;  %v6195_v42 = vpop.eup %6194  ;;  %v8358_v1 = vld [vmem:[#allocation48_spill] sm:$0xff]  ;;  %v5065_v43 = vld [vmem:[%s8176_s11] ss:$0 sm:$0xff] }
 0x9a4   :  { %v8137_v10 = vadd.f32 %v5302_v21, %v5301_v46  ;;  %v5304_v63 = vpop.f32.mrb[102].mxu1  ;;  %6196 = vtanh.f32 %v3959_v60 }
 0x9a5   :  { %v5305_v58 = vpop.f32.mrb[103].mxu1  ;;  %v3960_v4 = vadd.f32 %v3958_v29, %v3956_v31  ;;  %6198 = vrcp.f32 %v3950_v24 }
 0x9a6   :  { %v8139_v18 = vadd.f32 %v5305_v58, %v5304_v63 }
 0x9a7   :  { %6200 = vtanh.f32 %v3960_v4 }
 0x9ae   :  { %v6197_v56 = vpop.eup %6196 }
 0x9af   :  { %v3963_v26 = vmul.f32 %v6197_v56, %v6195_v42  ;;  %v6199_v15 = vpop.eup %6198 }
 0x9b1   :  { %v6201_v12 = vpop.eup %6200 }
 0x9b2   :  { %v3964_v37 = vmul.f32 %v6201_v12, %v6199_v15 }
 0x9b4   :  { %v3965_v17 = vpack.c.bf16 %v3964_v37, %v3963_v26 }
 0x9b6   :  { %4656 = vmatprep.mubr.bf16.mxu0 %v3965_v17 }
 0x9b7   :  { %4657 = vmatmul.mubr.bf16.vlgmr.msra.gmra.mrb[100].mxu0 %v8358_v1 }
 0x9b8   :  { %5308 = vmatpush3.bf16.msra.mxu0 %v5851_v49  ;;  %4738 = vmatprep.mubr.bf16.mxu0 %v8002_v3 }
 0x9b9   :  { %5309 = vmatprep.subr.bf16.mxu0 %v5852_v35 }
 0x9bc   :  { %5310 = vmatpush3.bf16.msra.mxu0 %v5853_v0 }
 0x9bd   :  { %5311 = vmatprep.subr.bf16.mxu0 %v5854_v23 }
 0x9c0   :  { %5312 = vmatpush3.bf16.msra.mxu0 %v5855_v44 }
 0x9c1   :  { %5313 = vmatprep.subr.bf16.mxu0 %v5856_v33 }
 0x9c2   :  { %v5345_v48 = vpop.f32.mrb[104].mxu1 }
 0x9c3   :  { %v5346_v41 = vpop.f32.mrb[105].mxu1 }
 0x9c4   :  { %v8143_v51 = vadd.f32 %v5346_v41, %v5345_v48  ;;  %v5348_v54 = vpop.f32.mrb[106].mxu1  ;;  %5314 = vmatpush3.bf16.msra.mxu0 %v5857_v40 }
 0x9c5   :  { %v5349_v61 = vpop.f32.mrb[107].mxu1  ;;  %5315 = vmatprep.subr.bf16.mxu0 %v5858_v50 }
 0x9c6   :  { %v8145_v3 = vadd.f32 %v5349_v61, %v5348_v54 }
 0x9c8   :  { %5316 = vmatpush3.bf16.msra.mxu0 %v5859_v62 }
 0x9c9   :  { %5317 = vmatprep.subr.bf16.mxu0 %v5860_v45 }
 0x9cc   :  { %5318 = vmatpush3.bf16.msra.mxu0 %v5861_v2 }
 0x9cd   :  { %5319 = vmatprep.subr.bf16.mxu0 %v5862_v22 }
 0x9d0   :  { %5320 = vmatpush3.bf16.msra.mxu0 %v5863_v34 }
 0x9d1   :  { %5321 = vmatprep.subr.bf16.mxu0 %v5864_v47 }
 0x9d4   :  { %5322 = vmatpush3.bf16.msra.mxu0 %v5865_v16 }
 0x9d5   :  { %5351 = vmatprep.subr.bf16.mxu0 %v5866_v7 }
 0x9d7   :  { %4739 = vmatmul.mubr.bf16.vlgmr.msra.gmra.mrb[104].mxu0 %v8359_v6 }
 0x9d8   :  { %5352 = vmatpush3.bf16.msra.mxu0 %v5867_v20  ;;  %4820 = vmatprep.mubr.bf16.mxu0 %v8360_v28 }
 0x9d9   :  { %5353 = vmatprep.subr.bf16.mxu0 %v5868_v36 }
 0x9dc   :  { %5354 = vmatpush3.bf16.msra.mxu0 %v5869_v55 }
 0x9dd   :  { %5355 = vmatprep.subr.bf16.mxu0 %v5870_v59 }
 0x9e0   :  { %5356 = vmatpush3.bf16.msra.mxu0 %v5871_v53 }
 0x9e1   :  { %5357 = vmatprep.subr.bf16.mxu0 %v5872_v13 }
 0x9e4   :  { %5358 = vmatpush3.bf16.msra.mxu0 %v5873_v25 }
 0x9e5   :  { %5359 = vmatprep.subr.bf16.mxu0 %v5874_v19 }
 0x9e8   :  { %5360 = vmatpush3.bf16.msra.mxu0 %v5875_v57 }
 0x9e9   :  { %5361 = vmatprep.subr.bf16.mxu0 %v5876_v27 }
 0x9ec   :  { %5362 = vmatpush3.bf16.msra.mxu0 %v5877_v11 }
 0x9ed   :  { %5363 = vmatprep.subr.bf16.mxu0 %v5878_v39 }
 0x9f0   :  { %5364 = vmatpush3.bf16.msra.mxu0 %v5879_v30 }
 0x9f1   :  { %5365 = vmatprep.subr.bf16.mxu0 %v5880_v52 }
 0x9f4   :  { %5366 = vmatpush3.bf16.msra.mxu0 %v5881_v9 }
 0x9f7   :  { %4821 = vmatmul.mubr.bf16.vlgmr.msra.gmra.mrb[108].mxu0 %v3813_v32 }
 0xa8a   :  { %v5279_v14 = vpop.f32.mrb[100].mxu0 }
 0xa8b   :  { %v5280_v29 = vpop.f32.mrb[101].mxu0 }
 0xa8c   :  { %v5281_v46 = vadd.f32 %v5280_v29, %v5279_v14  ;;  %v5282_v60 = vpop.f32.mrb[102].mxu0 }
 0xa8d   :  { %v5283_v5 = vpop.f32.mrb[103].mxu0 }
 0xa8e   :  { %v4659_v24 = vadd.f32 %v5281_v46, %v5065_v43  ;;  %v5284_v21 = vadd.f32 %v5283_v5, %v5282_v60 }
 0xa90   :  { %v4662_v31 = vadd.f32 %v5284_v21, %v5065_v43  ;;  %v4700_v63 = vadd.f32 %v8137_v10, %v4659_v24 }
 0xa92   :  { %v4703_v58 = vadd.f32 %v8139_v18, %v4662_v31 }
 0xaaa   :  { %v5323_v4 = vpop.f32.mrb[104].mxu0 }
 0xaab   :  { %v5324_v42 = vpop.f32.mrb[105].mxu0 }
 0xaac   :  { %v5325_v38 = vadd.f32 %v5324_v42, %v5323_v4  ;;  %v5326_v8 = vpop.f32.mrb[106].mxu0 }
 0xaad   :  { %v5327_v32 = vpop.f32.mrb[107].mxu0 }
 0xaae   :  { %v4741_v56 = vadd.f32 %v5325_v38, %v4700_v63  ;;  %v5328_v26 = vadd.f32 %v5327_v32, %v5326_v8 }
 0xab0   :  { %v4744_v15 = vadd.f32 %v5328_v26, %v4703_v58  ;;  %v4782_v12 = vadd.f32 %v8143_v51, %v4741_v56 }
 0xab2   :  { %v4785_v37 = vadd.f32 %v8145_v3, %v4744_v15 }
 0xaca   :  { %v5367_v17 = vpop.f32.mrb[108].mxu0 }
 0xacb   :  { %v5368_v49 = vpop.f32.mrb[109].mxu0 }
 0xacc   :  { %v5369_v35 = vadd.f32 %v5368_v49, %v5367_v17  ;;  %v5370_v1 = vpop.f32.mrb[110].mxu0 }
 0xacd   :  { %v5371_v0 = vpop.f32.mrb[111].mxu0 }
 0xace   :  { %v4823_v10 = vadd.f32 %v5369_v35, %v4782_v12  ;;  %v5372_v23 = vadd.f32 %v5371_v0, %v5370_v1 }
 0xad0   :  { %4829 = vst [vmem:[%s8177_s12] sm:$0xff] %v4823_v10  ;;  %v4826_v18 = vadd.f32 %v5372_v23, %v4785_v37 }
 0xad2   :  { %4830 = vst [vmem:[%s8177_s12 + $0x8] sm:$0xff] %v4826_v18 }
 0xad3   :  { %4835 = vsyncpa [#allocation7], 1 }
 0xad4   :  { %4836 = vsyncpa [#allocation9], 1 }
 0xad5   :  { %4837 = vsyncpa [#allocation12], 1 }

</bundles_post_ra>
